<compile_context>
chip_gen: v7x
topology: tpu7x:2x2x1
jax: 0.10.0
libtpu: 0.0.40
codegen_flags: <defaults>
</compile_context>

<pallas_src>
import math

import jax
import jax.numpy as jnp
from jax.experimental import pallas as pl
from jax.experimental.pallas import tpu as pltpu

POS_DIM = 3 + 3 * 2 * 10      # Trigonometric_kernel(L=10, include_input) on 3-D pos -> 63
DIR_DIM = 3 + 3 * 2 * 4       # Trigonometric_kernel(L=4,  include_input) on 3-D dir -> 27
POS_PAD = 64                  # lane-friendly padded widths
DIR_PAD = 32
BACKBONE = 256
HEAD = 128
HEAD_W = 136                  # 128 rgb-hidden cols + 1 density col + 7 zero pad
OUT_W = 4                     # merged output: [r, g, b, density]
TILE_CANDIDATES = (1024, 512, 256)


# ------------------------------------------------------------------ encoding
def trig_encode(x, L):
    feats = [x]
    for i in range(L):
        f = float(2 ** i)
        feats.append(jnp.sin(f * x))
        feats.append(jnp.cos(f * x))
    return jnp.concatenate(feats, axis=-1)


# ------------------------------------------------------------------ kernel
def spacenet_kernel(pos_ref, dir_ref,
                    w11, b11, w12, b12, w13, b13, w14, b14,
                    w21a, w21p, b21, w22, b22, w23, b23,
                    whx, whd, bh, w2f, b2f,
                    out_ref):
    f32, bf16 = jnp.float32, jnp.bfloat16

    p = pos_ref[...]                       # (T, 64)  bf16 encoded positions
    d = dir_ref[...]                       # (T, 32)  bf16 encoded directions

    def mm(a, w_ref):                      # bf16 x bf16 -> f32 on the MXU
        return jnp.dot(a, w_ref[...], preferred_element_type=f32)

    def lin_relu(x, w_ref, b_ref):         # bias add / ReLU stay in f32 (VPU)
        return jnp.maximum(mm(x.astype(bf16), w_ref) + b_ref[...], 0.0)

    # ---- stage1: 4 x (Linear + ReLU)
    x = jnp.maximum(mm(p, w11) + b11[...], 0.0)
    x = lin_relu(x, w12, b12)
    x = lin_relu(x, w13, b13)
    x = lin_relu(x, w14, b14)

    # ---- stage2: Linear(cat([x, pos_enc])) as a concat-free split matmul
    x = jnp.maximum(mm(x.astype(bf16), w21a) + mm(p, w21p) + b21[...], 0.0)
    x = lin_relu(x, w22, b22)
    x = lin_relu(x, w23, b23)

    # ---- fused rgb-head layer-1 + density head (one matmul for both heads):
    #      cols [0,128) = rgb hidden pre-activation, col 128 = density, rest 0.
    #      The module applies ReLU to cat([x, dir_enc]); x is already
    #      post-ReLU so only the dir features need it.
    dr = jnp.maximum(d.astype(f32), 0.0).astype(bf16)
    h = mm(x.astype(bf16), whx) + mm(dr, whd) + bh[...]          # (T, 136) f32

    # ReLU only the rgb-hidden columns; the density column passes through raw.
    lane = jax.lax.broadcasted_iota(jnp.int32, h.shape, 1)
    g = jnp.where(lane < HEAD, jnp.maximum(h, 0.0), h)

    # ---- fused final layer (tiny, f32): cols 0:3 = rgb, col 3 = density
    out_ref[...] = jnp.dot(g, w2f[...], preferred_element_type=f32) + b2f[...]


# ------------------------------------------------------------------ wrapper
def _choose_tile_m(m):
    # Biggest tile that still gives >= 4 grid steps (amortizes per-step
    # overhead, keeps the 'parallel' axis shardable across v7x's 2 TCs and
    # bounds padded-row waste); fall back to 128 for tiny batches.
    for t in TILE_CANDIDATES:
        if m >= 4 * t:
            return t
    return 128


def spacenet_pallas(pos_enc, dir_enc, params, tile):
    m_pad = pos_enc.shape[0]
    grid = (m_pad // tile,)

    row = lambda n: pl.BlockSpec((tile, n), lambda i: (i, 0))
    # Weights/biases: constant index_map -> fetched once, resident in VMEM.
    full = lambda a: pl.BlockSpec(a.shape, lambda i: (0, 0))

    return pl.pallas_call(
        spacenet_kernel,
        grid=grid,
        in_specs=[row(POS_PAD), row(DIR_PAD)] + [full(a) for a in params],
        out_specs=row(OUT_W),
        out_shape=jax.ShapeDtypeStruct((m_pad, OUT_W), jnp.float32),
        compiler_params=pltpu.CompilerParams(
            dimension_semantics=("parallel",)),
    )(pos_enc, dir_enc, *params)


def spacenet_forward(kernel_params, pos, rays, maxs=None, mins=None):
    """Mirrors SpaceNet.forward (use_dir=True, use_time=False, deep_rgb=False)."""
    bins_mode = pos.ndim > 2
    dirs = rays[..., 3:6]
    if bins_mode:
        L = pos.shape[1]
        pos = pos.reshape(-1, 3)
        dirs = jnp.repeat(dirs[:, None, :], L, axis=1).reshape(-1, 3)
    if maxs is not None:
        pos = ((pos - mins) / (maxs - mins) - 0.5) * 2.0

    # Positional encodings, zero-padded to lane-friendly widths, stored bf16
    # (they are MXU operands anyway; halves encoding HBM traffic).
    pos_enc = jnp.pad(trig_encode(pos, 10),
                      ((0, 0), (0, POS_PAD - POS_DIM))).astype(jnp.bfloat16)
    dir_enc = jnp.pad(trig_encode(dirs, 4),
                      ((0, 0), (0, DIR_PAD - DIR_DIM))).astype(jnp.bfloat16)

    m = pos_enc.shape[0]
    tile = _choose_tile_m(m)
    m_pad = ((m + tile - 1) // tile) * tile
    pos_enc = jnp.pad(pos_enc, ((0, m_pad - m), (0, 0)))
    dir_enc = jnp.pad(dir_enc, ((0, m_pad - m), (0, 0)))

    out = spacenet_pallas(pos_enc, dir_enc, kernel_params, tile)
    rgb, density = out[:m, 0:3], out[:m, 3:4]

    if bins_mode:
        rgb = rgb.reshape(-1, L, 3)
        density = density.reshape(-1, L, 1)
    return rgb, density


# ------------------------------------------------------------------ params
def init_params(key):
    """Module-layout params (same layout as the PyTorch Linear weights^T)."""
    def linear(k, din, dout):
        kw, kb = jax.random.split(k)
        bound = 1.0 / math.sqrt(din)
        w = jax.random.uniform(kw, (din, dout), jnp.float32, -bound, bound)
        b = jax.random.uniform(kb, (1, dout), jnp.float32, -bound, bound)
        return w, b

    ks = jax.random.split(key, 10)
    w11, b11 = linear(ks[0], POS_DIM, BACKBONE)
    w12, b12 = linear(ks[1], BACKBONE, BACKBONE)
    w13, b13 = linear(ks[2], BACKBONE, BACKBONE)
    w14, b14 = linear(ks[3], BACKBONE, BACKBONE)
    w21, b21 = linear(ks[4], BACKBONE + POS_DIM, BACKBONE)
    w22, b22 = linear(ks[5], BACKBONE, BACKBONE)
    w23, b23 = linear(ks[6], BACKBONE, BACKBONE)
    wd,  bd  = linear(ks[7], BACKBONE, 1)
    wr1, br1 = linear(ks[8], BACKBONE + DIR_DIM, HEAD)
    wr2, br2 = linear(ks[9], HEAD, 3)
    return [w11, b11, w12, b12, w13, b13, w14, b14, w21, b21, w22, b22,
            w23, b23, wd, bd, wr1, br1, wr2, br2]


def prepare_params(p):
    """Pack module-layout params into the kernel layout (pad / split / fuse / bf16)."""
    (w11, b11, w12, b12, w13, b13, w14, b14, w21, b21, w22, b22, w23, b23,
     wd, bd, wr1, br1, wr2, br2) = p
    bf = lambda a: a.astype(jnp.bfloat16)

    # pos-encoding consumers: pad K from 63 -> 64 with zero rows
    w11p = jnp.pad(w11, ((0, POS_PAD - POS_DIM), (0, 0)))
    w21a = w21[:BACKBONE]
    w21p = jnp.pad(w21[BACKBONE:], ((0, POS_PAD - POS_DIM), (0, 0)))

    # fused head layer-1: cols [0,128) = wr1 (x part), col 128 = density wd
    whx = jnp.zeros((BACKBONE, HEAD_W), jnp.float32)
    whx = whx.at[:, :HEAD].set(wr1[:BACKBONE]).at[:, HEAD:HEAD + 1].set(wd)
    whd = jnp.zeros((DIR_PAD, HEAD_W), jnp.float32)
    whd = whd.at[:DIR_DIM, :HEAD].set(wr1[BACKBONE:])
    bh = jnp.zeros((1, HEAD_W), jnp.float32)
    bh = bh.at[:, :HEAD].set(br1).at[:, HEAD:HEAD + 1].set(bd)

    # fused final layer: rgb = relu(hidden) @ wr2 + br2; density passes
    # through column 128 -> output column 3 (unit weight, bias already in bh).
    w2f = jnp.zeros((HEAD_W, OUT_W), jnp.float32)
    w2f = w2f.at[:HEAD, 0:3].set(wr2).at[HEAD, 3].set(1.0)
    b2f = jnp.zeros((1, OUT_W), jnp.float32)
    b2f = b2f.at[:, 0:3].set(br2)

    # weights -> bf16 (MXU operands); biases and the tiny final matmul stay f32
    return [bf(w11p), b11, bf(w12), b12, bf(w13), b13, bf(w14), b14,
            bf(w21a), bf(w21p), b21, bf(w22), b22, bf(w23), b23,
            bf(whx), bf(whd), bh, w2f, b2f]


# ------------------------------------------------------------------ pure-JAX reference (validation only)
def spacenet_reference(params, pos, rays):
    (w11, b11, w12, b12, w13, b13, w14, b14, w21, b21, w22, b22, w23, b23,
     wd, bd, wr1, br1, wr2, br2) = params
    L = pos.shape[1]
    p = pos.reshape(-1, 3)
    d = jnp.repeat(rays[:, None, 3:6], L, axis=1).reshape(-1, 3)
    pe = trig_encode(p, 10)
    de = trig_encode(d, 4)

    relu = lambda x: jnp.maximum(x, 0.0)
    x = relu(pe @ w11 + b11)
    x = relu(x @ w12 + b12)
    x = relu(x @ w13 + b13)
    x = relu(x @ w14 + b14)
    x = relu(jnp.concatenate([x, pe], axis=1) @ w21 + b21)
    x = relu(x @ w22 + b22)
    x = relu(x @ w23 + b23)
    density = x @ wd + bd
    x1 = relu(jnp.concatenate([x, de], axis=1))
    rgb = relu(x1 @ wr1 + br1) @ wr2 + br2
    return rgb.reshape(-1, L, 3), density.reshape(-1, L, 1)


if __name__ == "__main__":
    key = jax.random.PRNGKey(0)
    kparam, kpos, kray = jax.random.split(key, 3)

    module_params = init_params(kparam)
    kernel_params = prepare_params(module_params)

    N, L = 2, 8                                   # 2 rays x 8 samples per ray
    pos = jax.random.uniform(kpos, (N, L, 3), jnp.float32, -1.0, 1.0)
    rays = jax.random.normal(kray, (N, 6), jnp.float32)

    forward = jax.jit(spacenet_forward)
    rgb, density = forward(kernel_params, pos, rays)
    jax.block_until_ready((rgb, density))

    assert rgb.shape == (N, L, 3) and density.shape == (N, L, 1)

    rgb_ref, den_ref = spacenet_reference(module_params, pos, rays)
    # bf16 matmul operands (f32 accumulation) across 9 layers -> looser tol
    assert jnp.allclose(rgb, rgb_ref, atol=3e-2, rtol=3e-2), \
        float(jnp.max(jnp.abs(rgb - rgb_ref)))
    assert jnp.allclose(density, den_ref, atol=3e-2, rtol=3e-2), \
        float(jnp.max(jnp.abs(density - den_ref)))

    print("KERNEL_OK")
</pallas_src>

<mosaic_0001>
module attributes {stable_mosaic.version = 11 : i64} {
  func.func @spacenet_kernel(%arg0: i32, %arg1: memref<128x64xbf16, #tpu.memory_space<vmem>>, %arg2: memref<128x32xbf16, #tpu.memory_space<vmem>>, %arg3: memref<64x256xbf16, #tpu.memory_space<vmem>>, %arg4: memref<1x256xf32, #tpu.memory_space<vmem>>, %arg5: memref<256x256xbf16, #tpu.memory_space<vmem>>, %arg6: memref<1x256xf32, #tpu.memory_space<vmem>>, %arg7: memref<256x256xbf16, #tpu.memory_space<vmem>>, %arg8: memref<1x256xf32, #tpu.memory_space<vmem>>, %arg9: memref<256x256xbf16, #tpu.memory_space<vmem>>, %arg10: memref<1x256xf32, #tpu.memory_space<vmem>>, %arg11: memref<256x256xbf16, #tpu.memory_space<vmem>>, %arg12: memref<64x256xbf16, #tpu.memory_space<vmem>>, %arg13: memref<1x256xf32, #tpu.memory_space<vmem>>, %arg14: memref<256x256xbf16, #tpu.memory_space<vmem>>, %arg15: memref<1x256xf32, #tpu.memory_space<vmem>>, %arg16: memref<256x256xbf16, #tpu.memory_space<vmem>>, %arg17: memref<1x256xf32, #tpu.memory_space<vmem>>, %arg18: memref<256x136xbf16, #tpu.memory_space<vmem>>, %arg19: memref<32x136xbf16, #tpu.memory_space<vmem>>, %arg20: memref<1x136xf32, #tpu.memory_space<vmem>>, %arg21: memref<136x4xf32, #tpu.memory_space<vmem>>, %arg22: memref<1x4xf32, #tpu.memory_space<vmem>>, %arg23: memref<128x4xf32, #tpu.memory_space<vmem>>) attributes {dimension_semantics = [#tpu.dimension_semantics<parallel>], iteration_bounds = array<i64: 1>, scalar_prefetch = 0 : i64, scratch_operands = 0 : i64, tpu.core_type = #tpu.core_type<tc>, window_params = [{transform_indices = @transform_0, window_bounds = array<i64: 128, 64>}, {transform_indices = @transform_1, window_bounds = array<i64: 128, 32>}, {pipeline_mode = #tpu.pipeline_mode<synchronous>, transform_indices = @transform_2, window_bounds = array<i64: 64, 256>}, {pipeline_mode = #tpu.pipeline_mode<synchronous>, transform_indices = @transform_3, window_bounds = array<i64: 1, 256>}, {pipeline_mode = #tpu.pipeline_mode<synchronous>, transform_indices = @transform_4, window_bounds = array<i64: 256, 256>}, {pipeline_mode = #tpu.pipeline_mode<synchronous>, transform_indices = @transform_5, window_bounds = array<i64: 1, 256>}, {pipeline_mode = #tpu.pipeline_mode<synchronous>, transform_indices = @transform_6, window_bounds = array<i64: 256, 256>}, {pipeline_mode = #tpu.pipeline_mode<synchronous>, transform_indices = @transform_7, window_bounds = array<i64: 1, 256>}, {pipeline_mode = #tpu.pipeline_mode<synchronous>, transform_indices = @transform_8, window_bounds = array<i64: 256, 256>}, {pipeline_mode = #tpu.pipeline_mode<synchronous>, transform_indices = @transform_9, window_bounds = array<i64: 1, 256>}, {pipeline_mode = #tpu.pipeline_mode<synchronous>, transform_indices = @transform_10, window_bounds = array<i64: 256, 256>}, {pipeline_mode = #tpu.pipeline_mode<synchronous>, transform_indices = @transform_11, window_bounds = array<i64: 64, 256>}, {pipeline_mode = #tpu.pipeline_mode<synchronous>, transform_indices = @transform_12, window_bounds = array<i64: 1, 256>}, {pipeline_mode = #tpu.pipeline_mode<synchronous>, transform_indices = @transform_13, window_bounds = array<i64: 256, 256>}, {pipeline_mode = #tpu.pipeline_mode<synchronous>, transform_indices = @transform_14, window_bounds = array<i64: 1, 256>}, {pipeline_mode = #tpu.pipeline_mode<synchronous>, transform_indices = @transform_15, window_bounds = array<i64: 256, 256>}, {pipeline_mode = #tpu.pipeline_mode<synchronous>, transform_indices = @transform_16, window_bounds = array<i64: 1, 256>}, {pipeline_mode = #tpu.pipeline_mode<synchronous>, transform_indices = @transform_17, window_bounds = array<i64: 256, 136>}, {pipeline_mode = #tpu.pipeline_mode<synchronous>, transform_indices = @transform_18, window_bounds = array<i64: 32, 136>}, {pipeline_mode = #tpu.pipeline_mode<synchronous>, transform_indices = @transform_19, window_bounds = array<i64: 1, 136>}, {pipeline_mode = #tpu.pipeline_mode<synchronous>, transform_indices = @transform_20, window_bounds = array<i64: 136, 4>}, {pipeline_mode = #tpu.pipeline_mode<synchronous>, transform_indices = @transform_21, window_bounds = array<i64: 1, 4>}, {transform_indices = @transform_22, window_bounds = array<i64: 128, 4>}]} {
    %c0 = arith.constant 0 : index
    %c0_0 = arith.constant 0 : index
    %0 = vector.load %arg1[%c0, %c0_0] : memref<128x64xbf16, #tpu.memory_space<vmem>>, vector<128x64xbf16>
    %c0_1 = arith.constant 0 : index
    %c0_2 = arith.constant 0 : index
    %1 = vector.load %arg2[%c0_1, %c0_2] : memref<128x32xbf16, #tpu.memory_space<vmem>>, vector<128x32xbf16>
    %c0_3 = arith.constant 0 : index
    %c0_4 = arith.constant 0 : index
    %2 = vector.load %arg3[%c0_3, %c0_4] : memref<64x256xbf16, #tpu.memory_space<vmem>>, vector<64x256xbf16>
    %cst = arith.constant dense<0.000000e+00> : vector<128x256xf32>
    %3 = tpu.matmul %0, %2, %cst {dimension_numbers = #tpu.dot_dimension_numbers<[1], [0], [0], [1], [0, 0, 1, 1], [], []>} : vector<128x64xbf16>, vector<64x256xbf16>, vector<128x256xf32> -> vector<128x256xf32>
    %c0_5 = arith.constant 0 : index
    %c0_6 = arith.constant 0 : index
    %4 = vector.load %arg4[%c0_5, %c0_6] : memref<1x256xf32, #tpu.memory_space<vmem>>, vector<1x256xf32>
    %5 = vector.broadcast %4 : vector<1x256xf32> to vector<128x256xf32>
    %6 = arith.addf %3, %5 : vector<128x256xf32>
    %cst_7 = arith.constant 0.000000e+00 : f32
    %7 = vector.broadcast %cst_7 : f32 to vector<128x256xf32>
    %8 = arith.maximumf %6, %7 : vector<128x256xf32>
    %9 = arith.truncf %8 : vector<128x256xf32> to vector<128x256xbf16>
    %c0_8 = arith.constant 0 : index
    %c0_9 = arith.constant 0 : index
    %10 = vector.load %arg5[%c0_8, %c0_9] : memref<256x256xbf16, #tpu.memory_space<vmem>>, vector<256x256xbf16>
    %cst_10 = arith.constant dense<0.000000e+00> : vector<128x256xf32>
    %11 = tpu.matmul %9, %10, %cst_10 {dimension_numbers = #tpu.dot_dimension_numbers<[1], [0], [0], [1], [0, 0, 1, 1], [], []>} : vector<128x256xbf16>, vector<256x256xbf16>, vector<128x256xf32> -> vector<128x256xf32>
    %c0_11 = arith.constant 0 : index
    %c0_12 = arith.constant 0 : index
    %12 = vector.load %arg6[%c0_11, %c0_12] : memref<1x256xf32, #tpu.memory_space<vmem>>, vector<1x256xf32>
    %13 = vector.broadcast %12 : vector<1x256xf32> to vector<128x256xf32>
    %14 = arith.addf %11, %13 : vector<128x256xf32>
    %cst_13 = arith.constant 0.000000e+00 : f32
    %15 = vector.broadcast %cst_13 : f32 to vector<128x256xf32>
    %16 = arith.maximumf %14, %15 : vector<128x256xf32>
    %17 = arith.truncf %16 : vector<128x256xf32> to vector<128x256xbf16>
    %c0_14 = arith.constant 0 : index
    %c0_15 = arith.constant 0 : index
    %18 = vector.load %arg7[%c0_14, %c0_15] : memref<256x256xbf16, #tpu.memory_space<vmem>>, vector<256x256xbf16>
    %cst_16 = arith.constant dense<0.000000e+00> : vector<128x256xf32>
    %19 = tpu.matmul %17, %18, %cst_16 {dimension_numbers = #tpu.dot_dimension_numbers<[1], [0], [0], [1], [0, 0, 1, 1], [], []>} : vector<128x256xbf16>, vector<256x256xbf16>, vector<128x256xf32> -> vector<128x256xf32>
    %c0_17 = arith.constant 0 : index
    %c0_18 = arith.constant 0 : index
    %20 = vector.load %arg8[%c0_17, %c0_18] : memref<1x256xf32, #tpu.memory_space<vmem>>, vector<1x256xf32>
    %21 = vector.broadcast %20 : vector<1x256xf32> to vector<128x256xf32>
    %22 = arith.addf %19, %21 : vector<128x256xf32>
    %cst_19 = arith.constant 0.000000e+00 : f32
    %23 = vector.broadcast %cst_19 : f32 to vector<128x256xf32>
    %24 = arith.maximumf %22, %23 : vector<128x256xf32>
    %25 = arith.truncf %24 : vector<128x256xf32> to vector<128x256xbf16>
    %c0_20 = arith.constant 0 : index
    %c0_21 = arith.constant 0 : index
    %26 = vector.load %arg9[%c0_20, %c0_21] : memref<256x256xbf16, #tpu.memory_space<vmem>>, vector<256x256xbf16>
    %cst_22 = arith.constant dense<0.000000e+00> : vector<128x256xf32>
    %27 = tpu.matmul %25, %26, %cst_22 {dimension_numbers = #tpu.dot_dimension_numbers<[1], [0], [0], [1], [0, 0, 1, 1], [], []>} : vector<128x256xbf16>, vector<256x256xbf16>, vector<128x256xf32> -> vector<128x256xf32>
    %c0_23 = arith.constant 0 : index
    %c0_24 = arith.constant 0 : index
    %28 = vector.load %arg10[%c0_23, %c0_24] : memref<1x256xf32, #tpu.memory_space<vmem>>, vector<1x256xf32>
    %29 = vector.broadcast %28 : vector<1x256xf32> to vector<128x256xf32>
    %30 = arith.addf %27, %29 : vector<128x256xf32>
    %cst_25 = arith.constant 0.000000e+00 : f32
    %31 = vector.broadcast %cst_25 : f32 to vector<128x256xf32>
    %32 = arith.maximumf %30, %31 : vector<128x256xf32>
    %33 = arith.truncf %32 : vector<128x256xf32> to vector<128x256xbf16>
    %c0_26 = arith.constant 0 : index
    %c0_27 = arith.constant 0 : index
    %34 = vector.load %arg11[%c0_26, %c0_27] : memref<256x256xbf16, #tpu.memory_space<vmem>>, vector<256x256xbf16>
    %cst_28 = arith.constant dense<0.000000e+00> : vector<128x256xf32>
    %35 = tpu.matmul %33, %34, %cst_28 {dimension_numbers = #tpu.dot_dimension_numbers<[1], [0], [0], [1], [0, 0, 1, 1], [], []>} : vector<128x256xbf16>, vector<256x256xbf16>, vector<128x256xf32> -> vector<128x256xf32>
    %c0_29 = arith.constant 0 : index
    %c0_30 = arith.constant 0 : index
    %36 = vector.load %arg12[%c0_29, %c0_30] : memref<64x256xbf16, #tpu.memory_space<vmem>>, vector<64x256xbf16>
    %cst_31 = arith.constant dense<0.000000e+00> : vector<128x256xf32>
    %37 = tpu.matmul %0, %36, %cst_31 {dimension_numbers = #tpu.dot_dimension_numbers<[1], [0], [0], [1], [0, 0, 1, 1], [], []>} : vector<128x64xbf16>, vector<64x256xbf16>, vector<128x256xf32> -> vector<128x256xf32>
    %38 = arith.addf %35, %37 : vector<128x256xf32>
    %c0_32 = arith.constant 0 : index
    %c0_33 = arith.constant 0 : index
    %39 = vector.load %arg13[%c0_32, %c0_33] : memref<1x256xf32, #tpu.memory_space<vmem>>, vector<1x256xf32>
    %40 = vector.broadcast %39 : vector<1x256xf32> to vector<128x256xf32>
    %41 = arith.addf %38, %40 : vector<128x256xf32>
    %cst_34 = arith.constant 0.000000e+00 : f32
    %42 = vector.broadcast %cst_34 : f32 to vector<128x256xf32>
    %43 = arith.maximumf %41, %42 : vector<128x256xf32>
    %44 = arith.truncf %43 : vector<128x256xf32> to vector<128x256xbf16>
    %c0_35 = arith.constant 0 : index
    %c0_36 = arith.constant 0 : index
    %45 = vector.load %arg14[%c0_35, %c0_36] : memref<256x256xbf16, #tpu.memory_space<vmem>>, vector<256x256xbf16>
    %cst_37 = arith.constant dense<0.000000e+00> : vector<128x256xf32>
    %46 = tpu.matmul %44, %45, %cst_37 {dimension_numbers = #tpu.dot_dimension_numbers<[1], [0], [0], [1], [0, 0, 1, 1], [], []>} : vector<128x256xbf16>, vector<256x256xbf16>, vector<128x256xf32> -> vector<128x256xf32>
    %c0_38 = arith.constant 0 : index
    %c0_39 = arith.constant 0 : index
    %47 = vector.load %arg15[%c0_38, %c0_39] : memref<1x256xf32, #tpu.memory_space<vmem>>, vector<1x256xf32>
    %48 = vector.broadcast %47 : vector<1x256xf32> to vector<128x256xf32>
    %49 = arith.addf %46, %48 : vector<128x256xf32>
    %cst_40 = arith.constant 0.000000e+00 : f32
    %50 = vector.broadcast %cst_40 : f32 to vector<128x256xf32>
    %51 = arith.maximumf %49, %50 : vector<128x256xf32>
    %52 = arith.truncf %51 : vector<128x256xf32> to vector<128x256xbf16>
    %c0_41 = arith.constant 0 : index
    %c0_42 = arith.constant 0 : index
    %53 = vector.load %arg16[%c0_41, %c0_42] : memref<256x256xbf16, #tpu.memory_space<vmem>>, vector<256x256xbf16>
    %cst_43 = arith.constant dense<0.000000e+00> : vector<128x256xf32>
    %54 = tpu.matmul %52, %53, %cst_43 {dimension_numbers = #tpu.dot_dimension_numbers<[1], [0], [0], [1], [0, 0, 1, 1], [], []>} : vector<128x256xbf16>, vector<256x256xbf16>, vector<128x256xf32> -> vector<128x256xf32>
    %c0_44 = arith.constant 0 : index
    %c0_45 = arith.constant 0 : index
    %55 = vector.load %arg17[%c0_44, %c0_45] : memref<1x256xf32, #tpu.memory_space<vmem>>, vector<1x256xf32>
    %56 = vector.broadcast %55 : vector<1x256xf32> to vector<128x256xf32>
    %57 = arith.addf %54, %56 : vector<128x256xf32>
    %cst_46 = arith.constant 0.000000e+00 : f32
    %58 = vector.broadcast %cst_46 : f32 to vector<128x256xf32>
    %59 = arith.maximumf %57, %58 : vector<128x256xf32>
    %60 = arith.extf %1 : vector<128x32xbf16> to vector<128x32xf32>
    %cst_47 = arith.constant 0.000000e+00 : f32
    %61 = vector.broadcast %cst_47 : f32 to vector<128x32xf32>
    %62 = arith.maximumf %60, %61 : vector<128x32xf32>
    %63 = arith.truncf %62 : vector<128x32xf32> to vector<128x32xbf16>
    %64 = arith.truncf %59 : vector<128x256xf32> to vector<128x256xbf16>
    %c0_48 = arith.constant 0 : index
    %c0_49 = arith.constant 0 : index
    %65 = vector.load %arg18[%c0_48, %c0_49] : memref<256x136xbf16, #tpu.memory_space<vmem>>, vector<256x136xbf16>
    %cst_50 = arith.constant dense<0.000000e+00> : vector<128x136xf32>
    %66 = tpu.matmul %64, %65, %cst_50 {dimension_numbers = #tpu.dot_dimension_numbers<[1], [0], [0], [1], [0, 0, 1, 1], [], []>} : vector<128x256xbf16>, vector<256x136xbf16>, vector<128x136xf32> -> vector<128x136xf32>
    %c0_51 = arith.constant 0 : index
    %c0_52 = arith.constant 0 : index
    %67 = vector.load %arg19[%c0_51, %c0_52] : memref<32x136xbf16, #tpu.memory_space<vmem>>, vector<32x136xbf16>
    %cst_53 = arith.constant dense<0.000000e+00> : vector<128x136xf32>
    %68 = tpu.matmul %63, %67, %cst_53 {dimension_numbers = #tpu.dot_dimension_numbers<[1], [0], [0], [1], [0, 0, 1, 1], [], []>} : vector<128x32xbf16>, vector<32x136xbf16>, vector<128x136xf32> -> vector<128x136xf32>
    %69 = arith.addf %66, %68 : vector<128x136xf32>
    %c0_54 = arith.constant 0 : index
    %c0_55 = arith.constant 0 : index
    %70 = vector.load %arg20[%c0_54, %c0_55] : memref<1x136xf32, #tpu.memory_space<vmem>>, vector<1x136xf32>
    %71 = vector.broadcast %70 : vector<1x136xf32> to vector<128x136xf32>
    %72 = arith.addf %69, %71 : vector<128x136xf32>
    %73 = tpu.iota {dimensions = array<i32: 1>} : vector<128x136xi32>
    %c128_i32 = arith.constant 128 : i32
    %74 = vector.broadcast %c128_i32 : i32 to vector<128x136xi32>
    %75 = arith.cmpi slt, %73, %74 : vector<128x136xi32>
    %cst_56 = arith.constant 0.000000e+00 : f32
    %76 = vector.broadcast %cst_56 : f32 to vector<128x136xf32>
    %77 = arith.maximumf %72, %76 : vector<128x136xf32>
    %78 = arith.select %75, %77, %72 : vector<128x136xi1>, vector<128x136xf32>
    %c0_57 = arith.constant 0 : index
    %c0_58 = arith.constant 0 : index
    %79 = vector.load %arg21[%c0_57, %c0_58] : memref<136x4xf32, #tpu.memory_space<vmem>>, vector<136x4xf32>
    %cst_59 = arith.constant dense<0.000000e+00> : vector<128x4xf32>
    %80 = tpu.matmul %78, %79, %cst_59 {dimension_numbers = #tpu.dot_dimension_numbers<[1], [0], [0], [1], [0, 0, 1, 1], [], []>} : vector<128x136xf32>, vector<136x4xf32>, vector<128x4xf32> -> vector<128x4xf32>
    %c0_60 = arith.constant 0 : index
    %c0_61 = arith.constant 0 : index
    %81 = vector.load %arg22[%c0_60, %c0_61] : memref<1x4xf32, #tpu.memory_space<vmem>>, vector<1x4xf32>
    %82 = vector.broadcast %81 : vector<1x4xf32> to vector<128x4xf32>
    %83 = arith.addf %80, %82 : vector<128x4xf32>
    %c0_62 = arith.constant 0 : index
    %c0_63 = arith.constant 0 : index
    %84 = vector.load %arg23[%c0_62, %c0_63] : memref<128x4xf32, #tpu.memory_space<vmem>>, vector<128x4xf32>
    tpu.vector_store %arg23[%c0_62, %c0_63], %83 {strides = array<i32>} : memref<128x4xf32, #tpu.memory_space<vmem>>, vector<128x4xf32>,
    return
  }
  func.func @transform_0(%arg0: i32) -> (i32, i32) {
    %c0_i32 = arith.constant 0 : i32
    %c0_i32_0 = arith.constant 0 : i32
    return %arg0, %c0_i32 : i32, i32
  }
  func.func @transform_1(%arg0: i32) -> (i32, i32) {
    %c0_i32 = arith.constant 0 : i32
    %c0_i32_0 = arith.constant 0 : i32
    return %arg0, %c0_i32 : i32, i32
  }
  func.func @transform_2(%arg0: i32) -> (i32, i32) {
    %c0_i32 = arith.constant 0 : i32
    %c0_i32_0 = arith.constant 0 : i32
    %c0_i32_1 = arith.constant 0 : i32
    return %c0_i32, %c0_i32_0 : i32, i32
  }
  func.func @transform_3(%arg0: i32) -> (i32, i32) {
    %c0_i32 = arith.constant 0 : i32
    %c0_i32_0 = arith.constant 0 : i32
    %c0_i32_1 = arith.constant 0 : i32
    return %c0_i32, %c0_i32_0 : i32, i32
  }
  func.func @transform_4(%arg0: i32) -> (i32, i32) {
    %c0_i32 = arith.constant 0 : i32
    %c0_i32_0 = arith.constant 0 : i32
    %c0_i32_1 = arith.constant 0 : i32
    return %c0_i32, %c0_i32_0 : i32, i32
  }
  func.func @transform_5(%arg0: i32) -> (i32, i32) {
    %c0_i32 = arith.constant 0 : i32
    %c0_i32_0 = arith.constant 0 : i32
    %c0_i32_1 = arith.constant 0 : i32
    return %c0_i32, %c0_i32_0 : i32, i32
  }
  func.func @transform_6(%arg0: i32) -> (i32, i32) {
    %c0_i32 = arith.constant 0 : i32
    %c0_i32_0 = arith.constant 0 : i32
    %c0_i32_1 = arith.constant 0 : i32
    return %c0_i32, %c0_i32_0 : i32, i32
  }
  func.func @transform_7(%arg0: i32) -> (i32, i32) {
    %c0_i32 = arith.constant 0 : i32
    %c0_i32_0 = arith.constant 0 : i32
    %c0_i32_1 = arith.constant 0 : i32
    return %c0_i32, %c0_i32_0 : i32, i32
  }
  func.func @transform_8(%arg0: i32) -> (i32, i32) {
    %c0_i32 = arith.constant 0 : i32
    %c0_i32_0 = arith.constant 0 : i32
    %c0_i32_1 = arith.constant 0 : i32
    return %c0_i32, %c0_i32_0 : i32, i32
  }
  func.func @transform_9(%arg0: i32) -> (i32, i32) {
    %c0_i32 = arith.constant 0 : i32
    %c0_i32_0 = arith.constant 0 : i32
    %c0_i32_1 = arith.constant 0 : i32
    return %c0_i32, %c0_i32_0 : i32, i32
  }
  func.func @transform_10(%arg0: i32) -> (i32, i32) {
    %c0_i32 = arith.constant 0 : i32
    %c0_i32_0 = arith.constant 0 : i32
    %c0_i32_1 = arith.constant 0 : i32
    return %c0_i32, %c0_i32_0 : i32, i32
  }
  func.func @transform_11(%arg0: i32) -> (i32, i32) {
    %c0_i32 = arith.constant 0 : i32
    %c0_i32_0 = arith.constant 0 : i32
    %c0_i32_1 = arith.constant 0 : i32
    return %c0_i32, %c0_i32_0 : i32, i32
  }
  func.func @transform_12(%arg0: i32) -> (i32, i32) {
    %c0_i32 = arith.constant 0 : i32
    %c0_i32_0 = arith.constant 0 : i32
    %c0_i32_1 = arith.constant 0 : i32
    return %c0_i32, %c0_i32_0 : i32, i32
  }
  func.func @transform_13(%arg0: i32) -> (i32, i32) {
    %c0_i32 = arith.constant 0 : i32
    %c0_i32_0 = arith.constant 0 : i32
    %c0_i32_1 = arith.constant 0 : i32
    return %c0_i32, %c0_i32_0 : i32, i32
  }
  func.func @transform_14(%arg0: i32) -> (i32, i32) {
    %c0_i32 = arith.constant 0 : i32
    %c0_i32_0 = arith.constant 0 : i32
    %c0_i32_1 = arith.constant 0 : i32
    return %c0_i32, %c0_i32_0 : i32, i32
  }
  func.func @transform_15(%arg0: i32) -> (i32, i32) {
    %c0_i32 = arith.constant 0 : i32
    %c0_i32_0 = arith.constant 0 : i32
    %c0_i32_1 = arith.constant 0 : i32
    return %c0_i32, %c0_i32_0 : i32, i32
  }
  func.func @transform_16(%arg0: i32) -> (i32, i32) {
    %c0_i32 = arith.constant 0 : i32
    %c0_i32_0 = arith.constant 0 : i32
    %c0_i32_1 = arith.constant 0 : i32
    return %c0_i32, %c0_i32_0 : i32, i32
  }
  func.func @transform_17(%arg0: i32) -> (i32, i32) {
    %c0_i32 = arith.constant 0 : i32
    %c0_i32_0 = arith.constant 0 : i32
    %c0_i32_1 = arith.constant 0 : i32
    return %c0_i32, %c0_i32_0 : i32, i32
  }
  func.func @transform_18(%arg0: i32) -> (i32, i32) {
    %c0_i32 = arith.constant 0 : i32
    %c0_i32_0 = arith.constant 0 : i32
    %c0_i32_1 = arith.constant 0 : i32
    return %c0_i32, %c0_i32_0 : i32, i32
  }
  func.func @transform_19(%arg0: i32) -> (i32, i32) {
    %c0_i32 = arith.constant 0 : i32
    %c0_i32_0 = arith.constant 0 : i32
    %c0_i32_1 = arith.constant 0 : i32
    return %c0_i32, %c0_i32_0 : i32, i32
  }
  func.func @transform_20(%arg0: i32) -> (i32, i32) {
    %c0_i32 = arith.constant 0 : i32
    %c0_i32_0 = arith.constant 0 : i32
    %c0_i32_1 = arith.constant 0 : i32
    return %c0_i32, %c0_i32_0 : i32, i32
  }
  func.func @transform_21(%arg0: i32) -> (i32, i32) {
    %c0_i32 = arith.constant 0 : i32
    %c0_i32_0 = arith.constant 0 : i32
    %c0_i32_1 = arith.constant 0 : i32
    return %c0_i32, %c0_i32_0 : i32, i32
  }
  func.func @transform_22(%arg0: i32) -> (i32, i32) {
    %c0_i32 = arith.constant 0 : i32
    %c0_i32_0 = arith.constant 0 : i32
    return %arg0, %c0_i32 : i32, i32
  }
}

</mosaic_0001>

<bundles_post_ra>
// kernel: spacenet_forward.1
= control target key start
LH: loop header
LB: loop body
LE: loop exit
PB: predicated region body
PF: predicated region fallthrough
CT: control target
= control target key end

     0   :  { %s6188_s0 = inlined_call_operand.vmem [shape: bf16[128,64], index: 0, kind: input, shape index: {}]   ;;  %s6189_s1 = inlined_call_operand.vmem [shape: bf16[128,32], index: 1, kind: input, shape index: {}]   ;;  %s6190_s2 = inlined_call_operand.hbm [shape: bf16[64,256], index: 2, kind: input, shape index: {}]   ;;  %s6191_s3 = inlined_call_operand.hbm [shape: f32[1,256], index: 3, kind: input, shape index: {}]   ;;  %s6192_s4 = inlined_call_operand.vmem [shape: bf16[256,256], index: 4, kind: input, shape index: {}]   ;;  %s6193_s5 = inlined_call_operand.hbm [shape: f32[1,256], index: 5, kind: input, shape index: {}]   ;;  %s6194_s6 = inlined_call_operand.vmem [shape: bf16[256,256], index: 6, kind: input, shape index: {}]   ;;  %s6195_s7 = inlined_call_operand.hbm [shape: f32[1,256], index: 7, kind: input, shape index: {}]   ;;  %s6196_s8 = inlined_call_operand.vmem [shape: bf16[256,256], index: 8, kind: input, shape index: {}]   ;;  %s6197_s9 = inlined_call_operand.hbm [shape: f32[1,256], index: 9, kind: input, shape index: {}]   ;;  %s6198_s10 = inlined_call_operand.vmem [shape: bf16[256,256], index: 10, kind: input, shape index: {}]   ;;  %s6199_s11 = inlined_call_operand.hbm [shape: bf16[64,256], index: 11, kind: input, shape index: {}]   ;;  %s6200_s12 = inlined_call_operand.hbm [shape: f32[1,256], index: 12, kind: input, shape index: {}]   ;;  %s6201_s13 = inlined_call_operand.vmem [shape: bf16[256,256], index: 13, kind: input, shape index: {}]   ;;  %s6202_s14 = inlined_call_operand.vmem [shape: f32[1,256], index: 14, kind: input, shape index: {}]   ;;  %s6203_s15 = inlined_call_operand.vmem [shape: bf16[256,256], index: 15, kind: input, shape index: {}]   ;;  %s6204_s16 = inlined_call_operand.vmem [shape: f32[1,256], index: 16, kind: input, shape index: {}]   ;;  %s6205_s17 = inlined_call_operand.vmem [shape: bf16[256,136], index: 17, kind: input, shape index: {}]   ;;  %s6206_s18 = inlined_call_operand.vmem [shape: bf16[32,136], index: 18, kind: input, shape index: {}]   ;;  %s6207_s19 = inlined_call_operand.vmem [shape: f32[1,136], index: 19, kind: input, shape index: {}]   ;;  %s6208_s20 = inlined_call_operand.vmem [shape: f32[136,4], index: 20, kind: input, shape index: {}]   ;;  %s6209_s21 = inlined_call_operand.vmem [shape: f32[1,4], index: 21, kind: input, shape index: {}]   ;;  %s6210_s22 = inlined_call_operand.vmem [shape: f32[128,4], index: 22, kind: output, shape index: {}]  }
   0x1   :  { %6219 = sst [smem:[#allocation17_spill]] %s6188_s0 }
   0x2   :  { %6220 = sst [smem:[#allocation18_spill]] %s6189_s1 }
   0x3   :  { %6221 = sst [smem:[#allocation19_spill]] %s6190_s2 }
   0x4   :  { %6222 = sst [smem:[#allocation20_spill]] %s6191_s3 }
   0x5   :  { %6223 = sst [smem:[#allocation21_spill]] %s6192_s4 }
   0x6   :  { %6224 = sst [smem:[#allocation22_spill]] %s6193_s5 }
   0x7   :  { %6225 = sst [smem:[#allocation23_spill]] %s6194_s6 }
   0x8   :  { %6226 = sst [smem:[#allocation24_spill]] %s6210_s22 }
   0x9   :  { %27 = vsyncpa [#allocation3], 0 }
   0xa   :  { %28 = vsyncpa [#allocation5], 0 }
   0xb   :  { %29 = vsyncpa [#allocation8], 0 }
   0xc   :  { %30 = vsyncpa [#allocation11], 0  ;;  %s4697_s3 = smov [#allocation4]   ;;  %s4698_s29 = smov [#allocation7]  }
   0xd   :  { %s53_s28 = sshll.u32 %s4697_s3, 4  ;;  %s77_s30 = sshll.u32 %s4698_s29, 4  ;;  %s54_s28 = int_to_ptr.vmem [resolvable:$true] %s53_s28  ;;  %s78_s30 = int_to_ptr.vmem [resolvable:$true] %s77_s30 }
   0xe   :  { %s6227_s23 = sld [smem:[#allocation20_spill]] }
  0x14   :  { %s4535_s1 = scalar_lea.hbm %s6227_s23, 32 }
  0x15   :  { %p4536_p0 = scmp.ne.s32.totalorder %s6227_s23, %s4535_s1  ;;  %p4539_p1 = scmp.lt.u32.totalorder %s4535_s1, %s6227_s23 }
  0x17   :  { %p4541_p2 = pnand %p4539_p1, %p4536_p0 }
  0x19   :  { %4544 = shalt.err (!%p4541_p2)
}
  0x1a   :  { %s4545_s26 = scalar_lea.vmem %s54_s28, 32  ;;  %p4550_p4 = scmp.lt.s32.totalorder %s54_s28, %s54_s28 }
  0x1b   :  { %p4546_p3 = scmp.ne.s32.totalorder %s54_s28, %s4545_s26  ;;  %p4551_p5 = scmp.lt.s32.totalorder %s4545_s26, %s4545_s26 }
  0x1d   :  { %p4552_p6 = por %p4551_p5, %p4550_p4 }
  0x1f   :  { %p4553_p7 = pnand %p4552_p6, %p4546_p3 }
  0x21   :  { %4556 = shalt.err (!%p4553_p7)
}
  0x22   :  { %56 = dma.hbm_to_vmem [thread:$0]  %s6227_s23, 32, %s54_s28, [#allocation5]  }
  0x23   :  { %s4557_s4 = scalar_lea.hbm %s6195_s7, 32 }
  0x24   :  { %p4558_p8 = scmp.ne.s32.totalorder %s6195_s7, %s4557_s4  ;;  %p4561_p9 = scmp.lt.u32.totalorder %s4557_s4, %s6195_s7 }
  0x26   :  { %p4563_p10 = pnand %p4561_p9, %p4558_p8 }
  0x28   :  { %4566 = shalt.err (!%p4563_p10)
}
  0x29   :  { %s4567_s6 = scalar_lea.vmem %s78_s30, 32  ;;  %p4572_p12 = scmp.lt.s32.totalorder %s78_s30, %s78_s30 }
  0x2a   :  { %p4568_p11 = scmp.ne.s32.totalorder %s78_s30, %s4567_s6  ;;  %p4573_p13 = scmp.lt.s32.totalorder %s4567_s6, %s4567_s6 }
  0x2c   :  { %p4574_p0 = por %p4573_p13, %p4572_p12 }
  0x2e   :  { %p4575_p1 = pnand %p4574_p0, %p4568_p11 }
  0x30   :  { %4578 = shalt.err (!%p4575_p1)
}
  0x31   :  { %80 = dma.hbm_to_vmem [thread:$0]  %s6195_s7, 32, %s78_s30, [#allocation8]  }
  0x32   :  { %s4699_s25 = smov [#allocation10]   ;;  %s4700_s2 = smov [#allocation2]  }
  0x33   :  { %s100_s26 = sshll.u32 %s4699_s25, 4  ;;  %s40_s27 = sshll.u32 %s4700_s2, 4  ;;  %s101_s26 = int_to_ptr.vmem [resolvable:$true] %s100_s26  ;;  %s4848_s27 = int_to_ptr.vmem [resolvable:$true] %s40_s27 }
  0x34   :  { %s4579_s4 = scalar_lea.hbm %s6199_s11, 1024 }
  0x35   :  { %p4580_p2 = scmp.ne.s32.totalorder %s6199_s11, %s4579_s4  ;;  %p4583_p3 = scmp.lt.u32.totalorder %s4579_s4, %s6199_s11 }
  0x37   :  { %p4585_p4 = pnand %p4583_p3, %p4580_p2 }
  0x39   :  { %4588 = shalt.err (!%p4585_p4)
}
  0x3a   :  { %s4589_s7 = scalar_lea.vmem %s101_s26, 1024  ;;  %p4594_p6 = scmp.lt.s32.totalorder %s101_s26, %s101_s26 }
  0x3b   :  { %p4590_p5 = scmp.ne.s32.totalorder %s101_s26, %s4589_s7  ;;  %p4595_p7 = scmp.lt.s32.totalorder %s4589_s7, %s4589_s7 }
  0x3d   :  { %p4596_p8 = por %p4595_p7, %p4594_p6 }
  0x3f   :  { %p4597_p9 = pnand %p4596_p8, %p4590_p5 }
  0x41   :  { %4600 = shalt.err (!%p4597_p9)
}
  0x42   :  { %s4701_s30 = smov 128   ;;  %s4702_s6 = smov 8  }
  0x43   :  { %106 = dma.hbm_to_vmem [thread:$0]  %s6199_s11, 1024, %s101_s26, [#allocation11], %s4701_s30, %s4701_s30, %s4702_s6  }
  0x44   :  { %s6228_s3 = sld [smem:[#allocation19_spill]] }
  0x4a   :  { %s4601_s29 = scalar_lea.hbm %s6228_s3, 1024 }
  0x4b   :  { %p4602_p10 = scmp.ne.s32.totalorder %s6228_s3, %s4601_s29  ;;  %p4605_p11 = scmp.lt.u32.totalorder %s4601_s29, %s6228_s3 }
  0x4d   :  { %p4607_p12 = pnand %p4605_p11, %p4602_p10 }
  0x4f   :  { %4610 = shalt.err (!%p4607_p12)
}
  0x50   :  { %s4611_s24 = scalar_lea.vmem %s4848_s27, 1024  ;;  %p4616_p0 = scmp.lt.s32.totalorder %s4848_s27, %s4848_s27 }
  0x51   :  { %p4612_p13 = scmp.ne.s32.totalorder %s4848_s27, %s4611_s24  ;;  %p4617_p1 = scmp.lt.s32.totalorder %s4611_s24, %s4611_s24 }
  0x53   :  { %p4618_p2 = por %p4617_p1, %p4616_p0 }
  0x55   :  { %p4619_p3 = pnand %p4618_p2, %p4612_p13 }
  0x57   :  { %4622 = shalt.err (!%p4619_p3)
}
  0x58   :  { %46 = dma.hbm_to_vmem [thread:$0]  %s6228_s3, 1024, %s4848_s27, [#allocation3], %s4701_s30, %s4701_s30, %s4702_s6  }
  0x59   :  { %s4703_s7 = smov [#allocation6]   ;;  %s4704_s23 = smov [#allocation9]  }
  0x5a   :  { %s65_s28 = sshll.u32 %s4703_s7, 4  ;;  %s89_s25 = sshll.u32 %s4704_s23, 4  ;;  %s66_s28 = int_to_ptr.vmem [resolvable:$true] %s65_s28  ;;  %s90_s25 = int_to_ptr.vmem [resolvable:$true] %s89_s25 }
  0x5b   :  { %s6229_s4 = sld [smem:[#allocation22_spill]] }
  0x61   :  { %s4623_s0 = scalar_lea.hbm %s6229_s4, 32 }
  0x62   :  { %p4624_p4 = scmp.ne.s32.totalorder %s6229_s4, %s4623_s0  ;;  %p4627_p5 = scmp.lt.u32.totalorder %s4623_s0, %s6229_s4 }
  0x64   :  { %p4629_p6 = pnand %p4627_p5, %p4624_p4 }
  0x66   :  { %4632 = shalt.err (!%p4629_p6)
}
  0x67   :  { %s4633_s27 = scalar_lea.vmem %s66_s28, 32  ;;  %p4638_p8 = scmp.lt.s32.totalorder %s66_s28, %s66_s28 }
  0x68   :  { %p4634_p7 = scmp.ne.s32.totalorder %s66_s28, %s4633_s27  ;;  %p4639_p9 = scmp.lt.s32.totalorder %s4633_s27, %s4633_s27 }
  0x6a   :  { %p4640_p10 = por %p4639_p9, %p4638_p8 }
  0x6c   :  { %p4641_p11 = pnand %p4640_p10, %p4634_p7 }
  0x6e   :  { %4644 = shalt.err (!%p4641_p11)
}
  0x6f   :  { %68 = dma.hbm_to_vmem [thread:$0]  %s6229_s4, 32, %s66_s28, [#allocation5]  }
  0x70   :  { %s4645_s26 = scalar_lea.hbm %s6197_s9, 32 }
  0x71   :  { %p4646_p12 = scmp.ne.s32.totalorder %s6197_s9, %s4645_s26  ;;  %p4649_p13 = scmp.lt.u32.totalorder %s4645_s26, %s6197_s9 }
  0x73   :  { %p4651_p0 = pnand %p4649_p13, %p4646_p12 }
  0x75   :  { %4654 = shalt.err (!%p4651_p0)
}
  0x76   :  { %s4655_s29 = scalar_lea.vmem %s90_s25, 32  ;;  %p4660_p2 = scmp.lt.s32.totalorder %s90_s25, %s90_s25 }
  0x77   :  { %p4656_p1 = scmp.ne.s32.totalorder %s90_s25, %s4655_s29  ;;  %p4661_p3 = scmp.lt.s32.totalorder %s4655_s29, %s4655_s29 }
  0x79   :  { %p4662_p4 = por %p4661_p3, %p4660_p2 }
  0x7b   :  { %p4663_p5 = pnand %p4662_p4, %p4656_p1 }
  0x7d   :  { %4666 = shalt.err (!%p4663_p5)
}
  0x7e   :  { %92 = dma.hbm_to_vmem [thread:$0]  %s6197_s9, 32, %s90_s25, [#allocation8]  }
  0x7f   :  { %s4705_s0 = smov [#allocation12]   ;;  %s4667_s27 = scalar_lea.hbm %s6200_s12, 32 }
  0x80   :  { %s113_s5 = sshll.u32 %s4705_s0, 4  ;;  %p4668_p6 = scmp.ne.s32.totalorder %s6200_s12, %s4667_s27  ;;  %s114_s5 = int_to_ptr.vmem [resolvable:$true] %s113_s5 }
  0x81   :  { %p4671_p7 = scmp.lt.u32.totalorder %s4667_s27, %s6200_s12 }
  0x83   :  { %p4673_p8 = pnand %p4671_p7, %p4668_p6 }
  0x85   :  { %4676 = shalt.err (!%p4673_p8)
}
  0x86   :  { %s4677_s26 = scalar_lea.vmem %s114_s5, 32  ;;  %p4682_p10 = scmp.lt.s32.totalorder %s114_s5, %s114_s5 }
  0x87   :  { %p4678_p9 = scmp.ne.s32.totalorder %s114_s5, %s4677_s26  ;;  %p4683_p11 = scmp.lt.s32.totalorder %s4677_s26, %s4677_s26 }
  0x89   :  { %p4684_p12 = por %p4683_p11, %p4682_p10 }
  0x8b   :  { %p4685_p13 = pnand %p4684_p12, %p4678_p9 }
  0x8d   :  { %4688 = shalt.err (!%p4685_p13)
}
  0x8e   :  { %116 = dma.hbm_to_vmem [thread:$0]  %s6200_s12, 32, %s114_s5, [#allocation11]  }
  0x8f   :  { %4689 = dma.done.wait [#allocation3], 1024  }
  0x90   :  { %4690 = vsyncadd [#allocation3], 4294966272 }
  0x91   :  { %4691 = dma.done.wait [#allocation5], 64  }
  0x92   :  { %4692 = vsyncadd [#allocation5], 4294967232 }
  0x93   :  { %4693 = dma.done.wait [#allocation8], 64  }
  0x94   :  { %4694 = vsyncadd [#allocation8], 4294967232 }
  0x95   :  { %4695 = dma.done.wait [#allocation11], 1056  }
  0x96   :  { %4696 = vsyncadd [#allocation11], 4294966240  ;;  %v4706_v0 = vmov 0   ;;  %v4153_v1 = vld [vmem:[#allocation2 + $0x4] ss:$8 sps:$4 sm:$0xff]   ;;  %s6230_s22 = sld [smem:[#allocation17_spill]] }
  0x97   :  { %346 = vmatprep.mubr.bf16.mxu0 %v4706_v0  ;;  %v4155_v2 = vld [vmem:[#allocation2] ss:$8 sps:$4 sm:$0xff]   ;;  %314 = vmatprep.subr.bf16.mxu0 %v4153_v1  ;;  %v4156_v3 = vld [vmem:[#allocation2 + $0x14] ss:$8 sps:$4 sm:$0xff]   ;;  %v4158_v4 = vld [vmem:[#allocation2 + $0x10] ss:$8 sps:$4 sm:$0xff]  }
  0x98   :  { %315 = vmatpush1.bf16.msra.mxu0 %v4155_v2  ;;  %v4159_v5 = vld [vmem:[#allocation2 + $0x24] ss:$8 sps:$4 sm:$0xff]   ;;  %v4161_v6 = vld [vmem:[#allocation2 + $0x20] ss:$8 sps:$4 sm:$0xff]   ;;  %v4162_v7 = vld [vmem:[#allocation2 + $0x34] ss:$8 sps:$4 sm:$0xff]  }
  0x99   :  { %316 = vmatprep.subr.bf16.mxu0 %v4156_v3  ;;  %v4164_v8 = vld [vmem:[#allocation2 + $0x30] ss:$8 sps:$4 sm:$0xff]   ;;  %s6231_s29 = sld [smem:[#allocation21_spill]]  ;;  %vm289_vm0 = vcmask 523264   ;;  %s6232_s27 = sld [smem:[#allocation23_spill]]  ;;  %vm2954_vm1 = vcmask 261120  }
  0x9a   :  { %s6233_s0 = sld [smem:[#allocation18_spill]]  ;;  %vm3502_vm2 = vcmask 64512   ;;  %vm3696_vm3 = vcmask 31744   ;;  %s6234_s23 = sld [smem:[#allocation24_spill]] }
  0x9c   :  { %317 = vmatpush1.bf16.msra.mxu0 %v4158_v4  ;;  %v4165_v9 = vld [vmem:[%s6230_s22] sm:$0xff]   ;;  %v4166_v16 = vld [vmem:[%s6230_s22 + $0x8] sm:$0xff]   ;;  %v4167_v21 = vld [vmem:[%s6230_s22 + $0x10] sm:$0xff]  }
  0x9d   :  { %318 = vmatprep.subr.bf16.mxu0 %v4159_v5  ;;  %v4168_v26 = vld [vmem:[%s6230_s22 + $0x18] sm:$0xff]   ;;  %v4169_v31 = vld [vmem:[%s6230_s22 + $0x20] sm:$0xff]   ;;  %v4170_v36 = vld [vmem:[%s6230_s22 + $0x28] sm:$0xff]  }
  0x9e   :  { %v4171_v41 = vld [vmem:[%s6230_s22 + $0x30] sm:$0xff]   ;;  %v4172_v43 = vld [vmem:[%s6230_s22 + $0x38] sm:$0xff]  }
  0x9f   :  { %v4173_v10 = vld [vmem:[%s6231_s29 + $0x4] ss:$8 sps:$4 sm:$0xff]   ;;  %v4175_v11 = vld [vmem:[%s6231_s29] ss:$8 sps:$4 sm:$0xff]   ;;  %v4176_v12 = vld [vmem:[%s6231_s29 + $0x14] ss:$8 sps:$4 sm:$0xff]  }
  0xa0   :  { %319 = vmatpush1.bf16.msra.mxu0 %v4161_v6  ;;  %679 = vmatprep.subr.bf16.mxu1 %v4173_v10  ;;  %v4178_v13 = vld [vmem:[%s6231_s29 + $0x10] ss:$8 sps:$4 sm:$0xff]   ;;  %v4179_v14 = vld [vmem:[%s6231_s29 + $0x24] ss:$8 sps:$4 sm:$0xff]   ;;  %v4181_v15 = vld [vmem:[%s6231_s29 + $0x20] ss:$8 sps:$4 sm:$0xff]  }
  0xa1   :  { %320 = vmatprep.subr.bf16.mxu0 %v4162_v7  ;;  %680 = vmatpush1.bf16.msra.mxu1 %v4175_v11  ;;  %v4182_v17 = vld [vmem:[%s6231_s29 + $0x34] ss:$8 sps:$4 sm:$0xff]   ;;  %v4184_v18 = vld [vmem:[%s6231_s29 + $0x30] ss:$8 sps:$4 sm:$0xff]   ;;  %v4185_v19 = vld [vmem:[%s6231_s29 + $0x44] ss:$8 sps:$4 sm:$0xff]   ;;  %v199_v11 = vlaneseq }
  0xa2   :  { %681 = vmatprep.subr.bf16.mxu1 %v4176_v12  ;;  %v4187_v20 = vld [vmem:[%s6231_s29 + $0x40] ss:$8 sps:$4 sm:$0xff]   ;;  %v4188_v22 = vld [vmem:[%s6231_s29 + $0x54] ss:$8 sps:$4 sm:$0xff]   ;;  %v4190_v23 = vld [vmem:[%s6231_s29 + $0x50] ss:$8 sps:$4 sm:$0xff]  }
  0xa3   :  { %v4191_v24 = vld [vmem:[%s6231_s29 + $0x64] ss:$8 sps:$4 sm:$0xff]   ;;  %v4193_v25 = vld [vmem:[%s6231_s29 + $0x60] ss:$8 sps:$4 sm:$0xff]   ;;  %v4194_v27 = vld [vmem:[%s6231_s29 + $0x74] ss:$8 sps:$4 sm:$0xff]  }
  0xa4   :  { %321 = vmatpush1.bf16.msra.mxu0 %v4164_v8  ;;  %v4196_v28 = vld [vmem:[%s6231_s29 + $0x70] ss:$8 sps:$4 sm:$0xff]   ;;  %v4197_v29 = vld [vmem:[%s6231_s29 + $0x84] ss:$8 sps:$4 sm:$0xff]   ;;  %v4199_v30 = vld [vmem:[%s6231_s29 + $0x80] ss:$8 sps:$4 sm:$0xff]  }
  0xa5   :  { %682 = vmatpush1.bf16.msra.mxu1 %v4178_v13  ;;  %v4200_v32 = vld [vmem:[%s6231_s29 + $0x94] ss:$8 sps:$4 sm:$0xff]   ;;  %v4202_v33 = vld [vmem:[%s6231_s29 + $0x90] ss:$8 sps:$4 sm:$0xff]   ;;  %v4203_v34 = vld [vmem:[%s6231_s29 + $0xa4] ss:$8 sps:$4 sm:$0xff]  }
  0xa6   :  { %683 = vmatprep.subr.bf16.mxu1 %v4179_v14  ;;  %v4205_v35 = vld [vmem:[%s6231_s29 + $0xa0] ss:$8 sps:$4 sm:$0xff]   ;;  %v4206_v37 = vld [vmem:[%s6231_s29 + $0xb4] ss:$8 sps:$4 sm:$0xff]   ;;  %v4208_v38 = vld [vmem:[%s6231_s29 + $0xb0] ss:$8 sps:$4 sm:$0xff]  }
  0xa7   :  { %3737 = vmatmul.mubr.msk.bf16.vlgmr.msra.gmra.mrb[0].mxu0 %vm289_vm0, %v4165_v9  ;;  %v4209_v39 = vld [vmem:[%s6231_s29 + $0xc4] ss:$8 sps:$4 sm:$0xff]   ;;  %v4211_v40 = vld [vmem:[%s6231_s29 + $0xc0] ss:$8 sps:$4 sm:$0xff]   ;;  %v4212_v42 = vld [vmem:[%s6231_s29 + $0xd4] ss:$8 sps:$4 sm:$0xff]  }
  0xa8   :  { %356 = vmatprep.mubr.bf16.mxu0 %v4706_v0  ;;  %v4214_v44 = vld [vmem:[%s6231_s29 + $0xd0] ss:$8 sps:$4 sm:$0xff]   ;;  %v4215_v45 = vld [vmem:[%s6231_s29 + $0xe4] ss:$8 sps:$4 sm:$0xff]   ;;  %v4217_v46 = vld [vmem:[%s6231_s29 + $0xe0] ss:$8 sps:$4 sm:$0xff]  }
  0xa9   :  { %684 = vmatpush1.bf16.msra.mxu1 %v4181_v15  ;;  %v4218_v47 = vld [vmem:[%s6231_s29 + $0xf4] ss:$8 sps:$4 sm:$0xff]   ;;  %v4220_v48 = vld [vmem:[%s6231_s29 + $0xf0] ss:$8 sps:$4 sm:$0xff]   ;;  %v4221_v49 = vld [vmem:[%s6232_s27] ss:$8 sps:$4 sm:$0xff]  }
  0xaa   :  { %685 = vmatprep.subr.bf16.mxu1 %v4182_v17  ;;  %v4223_v50 = vld [vmem:[%s6232_s27 + $0x4] ss:$8 sps:$4 sm:$0xff]   ;;  %v4226_v51 = vld [vmem:[%s6232_s27 + $0x14] ss:$8 sps:$4 sm:$0xff]   ;;  %v4224_v52 = vld [vmem:[%s6232_s27 + $0x10] ss:$8 sps:$4 sm:$0xff]  }
  0xab   :  { %1044 = vmatprep.subr.bf16.mxu0 %v4223_v50  ;;  %v4229_v53 = vld [vmem:[%s6232_s27 + $0x24] ss:$8 sps:$4 sm:$0xff]   ;;  %v4227_v54 = vld [vmem:[%s6232_s27 + $0x20] ss:$8 sps:$4 sm:$0xff]   ;;  %v4232_v55 = vld [vmem:[%s6232_s27 + $0x34] ss:$8 sps:$4 sm:$0xff]  }
  0xac   :  { %1045 = vmatpush1.bf16.msra.mxu0 %v4221_v49  ;;  %v4230_v56 = vld [vmem:[%s6232_s27 + $0x30] ss:$8 sps:$4 sm:$0xff]   ;;  %v4235_v57 = vld [vmem:[%s6232_s27 + $0x44] ss:$8 sps:$4 sm:$0xff]   ;;  %v4233_v58 = vld [vmem:[%s6232_s27 + $0x40] ss:$8 sps:$4 sm:$0xff]  }
  0xad   :  { %686 = vmatpush1.bf16.msra.mxu1 %v4184_v18  ;;  %1046 = vmatprep.subr.bf16.mxu0 %v4226_v51  ;;  %v4238_v59 = vld [vmem:[%s6232_s27 + $0x54] ss:$8 sps:$4 sm:$0xff]   ;;  %v4236_v60 = vld [vmem:[%s6232_s27 + $0x50] ss:$8 sps:$4 sm:$0xff]   ;;  %v4241_v61 = vld [vmem:[%s6232_s27 + $0x64] ss:$8 sps:$4 sm:$0xff]  }
  0xae   :  { %687 = vmatprep.subr.bf16.mxu1 %v4185_v19  ;;  %v4239_v62 = vld [vmem:[%s6232_s27 + $0x60] ss:$8 sps:$4 sm:$0xff]   ;;  %v4244_v63 = vld [vmem:[%s6232_s27 + $0x74] ss:$8 sps:$4 sm:$0xff]   ;;  %v4242_v1 = vld [vmem:[%s6232_s27 + $0x70] ss:$8 sps:$4 sm:$0xff]  }
  0xaf   :  { %3738 = vmatmul.mubr.msk.bf16.gmra.mrb[4].mxu0 %vm289_vm0, %v4166_v16  ;;  %v4247_v2 = vld [vmem:[%s6232_s27 + $0x84] ss:$8 sps:$4 sm:$0xff]   ;;  %v4245_v3 = vld [vmem:[%s6232_s27 + $0x80] ss:$8 sps:$4 sm:$0xff]   ;;  %v4250_v4 = vld [vmem:[%s6232_s27 + $0x94] ss:$8 sps:$4 sm:$0xff]  }
  0xb0   :  { %366 = vmatprep.mubr.bf16.mxu0 %v4706_v0  ;;  %1047 = vmatpush1.bf16.msra.mxu0 %v4224_v52  ;;  %v4248_v5 = vld [vmem:[%s6232_s27 + $0x90] ss:$8 sps:$4 sm:$0xff]   ;;  %v4253_v6 = vld [vmem:[%s6232_s27 + $0xa4] ss:$8 sps:$4 sm:$0xff]   ;;  %v4251_v7 = vld [vmem:[%s6232_s27 + $0xa0] ss:$8 sps:$4 sm:$0xff]  }
  0xb1   :  { %688 = vmatpush1.bf16.msra.mxu1 %v4187_v20  ;;  %1048 = vmatprep.subr.bf16.mxu0 %v4229_v53  ;;  %v4256_v8 = vld [vmem:[%s6232_s27 + $0xb4] ss:$8 sps:$4 sm:$0xff]   ;;  %v4254_v9 = vld [vmem:[%s6232_s27 + $0xb0] ss:$8 sps:$4 sm:$0xff]   ;;  %v4259_v10 = vld [vmem:[%s6232_s27 + $0xc4] ss:$8 sps:$4 sm:$0xff]  }
  0xb2   :  { %689 = vmatprep.subr.bf16.mxu1 %v4188_v22  ;;  %v4257_v12 = vld [vmem:[%s6232_s27 + $0xc0] ss:$8 sps:$4 sm:$0xff]   ;;  %v4262_v13 = vld [vmem:[%s6232_s27 + $0xd4] ss:$8 sps:$4 sm:$0xff]   ;;  %v200_v14 = vshrl.u32 %v199_v11, 7 }
  0xb3   :  { %v4260_v15 = vld [vmem:[%s6232_s27 + $0xd0] ss:$8 sps:$4 sm:$0xff]   ;;  %v197_v17 = vld [vmem:[#allocation4] sm:$0x3] }
  0xb4   :  { %1049 = vmatpush1.bf16.msra.mxu0 %v4227_v54  ;;  %v5135_v16 = vsub.s32 0, %v200_v14  ;;  %v5137_v18 = vsub.s32 1, %v200_v14 }
  0xb5   :  { %690 = vmatpush1.bf16.msra.mxu1 %v4190_v23  ;;  %1050 = vmatprep.subr.bf16.mxu0 %v4232_v55 }
  0xb6   :  { %691 = vmatprep.subr.bf16.mxu1 %v4191_v24  ;;  %v5140_v19 = vrot.slane %v197_v17, %v5135_v16  ;;  %v5143_v20 = vrot.slane %v197_v17, %v5137_v18 }
  0xb7   :  { %3739 = vmatmul.mubr.msk.bf16.gmra.mrb[8].mxu0 %vm289_vm0, %v4167_v21 }
  0xb8   :  { %376 = vmatprep.mubr.bf16.mxu0 %v4706_v0  ;;  %1051 = vmatpush1.bf16.msra.mxu0 %v4230_v56 }
  0xb9   :  { %692 = vmatpush1.bf16.msra.mxu1 %v4193_v25  ;;  %1052 = vmatprep.subr.bf16.mxu0 %v4235_v57 }
  0xba   :  { %693 = vmatprep.subr.bf16.mxu1 %v4194_v27 }
  0xbc   :  { %1053 = vmatpush1.bf16.msra.mxu0 %v4233_v58 }
  0xbd   :  { %694 = vmatpush1.bf16.msra.mxu1 %v4196_v28  ;;  %1054 = vmatprep.subr.bf16.mxu0 %v4238_v59 }
  0xbe   :  { %695 = vmatprep.subr.bf16.mxu1 %v4197_v29 }
  0xbf   :  { %3740 = vmatmul.mubr.msk.bf16.gmra.mrb[12].mxu0 %vm289_vm0, %v4168_v26 }
  0xc0   :  { %386 = vmatprep.mubr.bf16.mxu0 %v4706_v0  ;;  %1055 = vmatpush1.bf16.msra.mxu0 %v4236_v60 }
  0xc1   :  { %696 = vmatpush1.bf16.msra.mxu1 %v4199_v30  ;;  %1056 = vmatprep.subr.bf16.mxu0 %v4241_v61 }
  0xc2   :  { %697 = vmatprep.subr.bf16.mxu1 %v4200_v32 }
  0xc4   :  { %1057 = vmatpush1.bf16.msra.mxu0 %v4239_v62 }
  0xc5   :  { %698 = vmatpush1.bf16.msra.mxu1 %v4202_v33  ;;  %1058 = vmatprep.subr.bf16.mxu0 %v4244_v63 }
  0xc6   :  { %699 = vmatprep.subr.bf16.mxu1 %v4203_v34 }
  0xc7   :  { %3741 = vmatmul.mubr.msk.bf16.gmra.mrb[16].mxu0 %vm289_vm0, %v4169_v31 }
  0xc8   :  { %396 = vmatprep.mubr.bf16.mxu0 %v4706_v0  ;;  %1059 = vmatpush1.bf16.msra.mxu0 %v4242_v1 }
  0xc9   :  { %700 = vmatpush1.bf16.msra.mxu1 %v4205_v35  ;;  %1060 = vmatprep.subr.bf16.mxu0 %v4247_v2 }
  0xca   :  { %701 = vmatprep.subr.bf16.mxu1 %v4206_v37 }
  0xcc   :  { %1061 = vmatpush1.bf16.msra.mxu0 %v4245_v3 }
  0xcd   :  { %702 = vmatpush1.bf16.msra.mxu1 %v4208_v38  ;;  %1062 = vmatprep.subr.bf16.mxu0 %v4250_v4 }
  0xce   :  { %703 = vmatprep.subr.bf16.mxu1 %v4209_v39 }
  0xcf   :  { %3742 = vmatmul.mubr.msk.bf16.gmra.mrb[20].mxu0 %vm289_vm0, %v4170_v36 }
  0xd0   :  { %406 = vmatprep.mubr.bf16.mxu0 %v4706_v0  ;;  %1063 = vmatpush1.bf16.msra.mxu0 %v4248_v5 }
  0xd1   :  { %704 = vmatpush1.bf16.msra.mxu1 %v4211_v40  ;;  %1064 = vmatprep.subr.bf16.mxu0 %v4253_v6 }
  0xd2   :  { %705 = vmatprep.subr.bf16.mxu1 %v4212_v42 }
  0xd4   :  { %1065 = vmatpush1.bf16.msra.mxu0 %v4251_v7 }
  0xd5   :  { %706 = vmatpush1.bf16.msra.mxu1 %v4214_v44  ;;  %1066 = vmatprep.subr.bf16.mxu0 %v4256_v8 }
  0xd6   :  { %707 = vmatprep.subr.bf16.mxu1 %v4215_v45 }
  0xd7   :  { %3743 = vmatmul.mubr.msk.bf16.gmra.mrb[24].mxu0 %vm289_vm0, %v4171_v41 }
  0xd8   :  { %416 = vmatprep.mubr.bf16.mxu0 %v4706_v0  ;;  %1067 = vmatpush1.bf16.msra.mxu0 %v4254_v9 }
  0xd9   :  { %708 = vmatpush1.bf16.msra.mxu1 %v4217_v46  ;;  %1068 = vmatprep.subr.bf16.mxu0 %v4259_v10 }
  0xda   :  { %709 = vmatprep.subr.bf16.mxu1 %v4218_v47 }
  0xdc   :  { %1069 = vmatpush1.bf16.msra.mxu0 %v4257_v12 }
  0xdd   :  { %710 = vmatpush1.bf16.msra.mxu1 %v4220_v48  ;;  %1070 = vmatprep.subr.bf16.mxu0 %v4262_v13 }
  0xdf   :  { %3744 = vmatmul.mubr.msk.bf16.gmra.mrb[28].mxu0 %vm289_vm0, %v4172_v43 }
  0xe0   :  { %1071 = vmatpush1.bf16.msra.mxu0 %v4260_v15 }
 0x17a   :  { %v348_v21 = vpop.f32.mrb[0].mxu0 }
 0x17b   :  { %v349_v22 = vadd.f32 %v348_v21, %v5140_v19  ;;  %v350_v23 = vpop.f32.mrb[1].mxu0 }
 0x17c   :  { %v351_v24 = vadd.f32 %v350_v23, %v5143_v20  ;;  %v352_v25 = vpop.f32.mrb[2].mxu0 }
 0x17d   :  { %v353_v26 = vadd.f32 %v352_v25, %v5140_v19  ;;  %v354_v27 = vpop.f32.mrb[3].mxu0  ;;  %v427_v29 = vmax.f32 %v349_v22, 0.0 }
 0x17e   :  { %v355_v28 = vadd.f32 %v354_v27, %v5143_v20  ;;  %v428_v31 = vmax.f32 %v351_v24, 0.0 }
 0x17f   :  { %v429_v30 = vmax.f32 %v353_v26, 0.0 }
 0x180   :  { %v430_v32 = vmax.f32 %v355_v28, 0.0 }
 0x181   :  { %v459_v33 = vpack.c.bf16 %v429_v30, %v427_v29 }
 0x182   :  { %v358_v34 = vpop.f32.mrb[4].mxu0  ;;  %v460_v35 = vpack.c.bf16 %v430_v32, %v428_v31 }
 0x183   :  { %v359_v36 = vadd.f32 %v358_v34, %v5140_v19  ;;  %v360_v37 = vpop.f32.mrb[5].mxu0 }
 0x184   :  { %v361_v38 = vadd.f32 %v360_v37, %v5143_v20  ;;  %v362_v39 = vpop.f32.mrb[6].mxu0  ;;  %711 = vmatprep.mubr.bf16.mxu1 %v460_v35 }
 0x185   :  { %v363_v40 = vadd.f32 %v362_v39, %v5140_v19  ;;  %v364_v41 = vpop.f32.mrb[7].mxu0  ;;  %712 = vmatmul.mubr.bf16.vlgmr.msra.gmra.mrb[0].mxu1 %v459_v33  ;;  %v431_v43 = vmax.f32 %v359_v36, 0.0 }
 0x186   :  { %v365_v42 = vadd.f32 %v364_v41, %v5143_v20  ;;  %v432_v45 = vmax.f32 %v361_v38, 0.0 }
 0x187   :  { %v433_v44 = vmax.f32 %v363_v40, 0.0 }
 0x188   :  { %v434_v46 = vmax.f32 %v365_v42, 0.0 }
 0x189   :  { %v461_v47 = vpack.c.bf16 %v433_v44, %v431_v43 }
 0x18a   :  { %v462_v48 = vpack.c.bf16 %v434_v46, %v432_v45  ;;  %v368_v49 = vpop.f32.mrb[8].mxu0 }
 0x18b   :  { %v369_v50 = vadd.f32 %v368_v49, %v5140_v19  ;;  %v370_v51 = vpop.f32.mrb[9].mxu0 }
 0x18c   :  { %v371_v52 = vadd.f32 %v370_v51, %v5143_v20  ;;  %v372_v53 = vpop.f32.mrb[10].mxu0  ;;  %721 = vmatprep.mubr.bf16.mxu1 %v462_v48 }
 0x18d   :  { %v373_v54 = vadd.f32 %v372_v53, %v5140_v19  ;;  %v374_v55 = vpop.f32.mrb[11].mxu0  ;;  %722 = vmatmul.mubr.bf16.gmra.mrb[4].mxu1 %v461_v47  ;;  %v435_v57 = vmax.f32 %v369_v50, 0.0 }
 0x18e   :  { %v375_v56 = vadd.f32 %v374_v55, %v5143_v20  ;;  %v436_v59 = vmax.f32 %v371_v52, 0.0 }
 0x18f   :  { %v437_v58 = vmax.f32 %v373_v54, 0.0 }
 0x190   :  { %v438_v60 = vmax.f32 %v375_v56, 0.0 }
 0x191   :  { %v463_v61 = vpack.c.bf16 %v437_v58, %v435_v57 }
 0x192   :  { %v464_v62 = vpack.c.bf16 %v438_v60, %v436_v59  ;;  %v378_v63 = vpop.f32.mrb[12].mxu0 }
 0x193   :  { %v379_v1 = vadd.f32 %v378_v63, %v5140_v19  ;;  %v380_v2 = vpop.f32.mrb[13].mxu0 }
 0x194   :  { %v381_v3 = vadd.f32 %v380_v2, %v5143_v20  ;;  %v382_v4 = vpop.f32.mrb[14].mxu0  ;;  %731 = vmatprep.mubr.bf16.mxu1 %v464_v62 }
 0x195   :  { %v383_v5 = vadd.f32 %v382_v4, %v5140_v19  ;;  %v384_v6 = vpop.f32.mrb[15].mxu0  ;;  %732 = vmatmul.mubr.bf16.gmra.mrb[8].mxu1 %v463_v61  ;;  %v439_v8 = vmax.f32 %v379_v1, 0.0 }
 0x196   :  { %v385_v7 = vadd.f32 %v384_v6, %v5143_v20  ;;  %v440_v10 = vmax.f32 %v381_v3, 0.0 }
 0x197   :  { %v441_v9 = vmax.f32 %v383_v5, 0.0 }
 0x198   :  { %v442_v11 = vmax.f32 %v385_v7, 0.0 }
 0x199   :  { %v465_v12 = vpack.c.bf16 %v441_v9, %v439_v8 }
 0x19a   :  { %v466_v13 = vpack.c.bf16 %v442_v11, %v440_v10  ;;  %v388_v14 = vpop.f32.mrb[16].mxu0  ;;  %v4265_v11 = vld [vmem:[%s6232_s27 + $0xe4] ss:$8 sps:$4 sm:$0xff]  }
 0x19b   :  { %v389_v15 = vadd.f32 %v388_v14, %v5140_v19  ;;  %v390_v17 = vpop.f32.mrb[17].mxu0  ;;  %1072 = vmatprep.subr.bf16.mxu0 %v4265_v11  ;;  %v4271_v14 = vld [vmem:[%s6196_s8 + $0x4] ss:$8 sps:$4 sm:$0xff]  }
 0x19c   :  { %v391_v21 = vadd.f32 %v390_v17, %v5143_v20  ;;  %v392_v22 = vpop.f32.mrb[18].mxu0  ;;  %741 = vmatprep.mubr.bf16.mxu1 %v466_v13  ;;  %v4269_v13 = vld [vmem:[%s6196_s8] ss:$8 sps:$4 sm:$0xff]   ;;  %1409 = vmatprep.subr.bf16.mxu1 %v4271_v14  ;;  %v4272_v17 = vld [vmem:[%s6196_s8 + $0x10] ss:$8 sps:$4 sm:$0xff]  }
 0x19d   :  { %v393_v23 = vadd.f32 %v392_v22, %v5140_v19  ;;  %v394_v24 = vpop.f32.mrb[19].mxu0  ;;  %742 = vmatmul.mubr.bf16.gmra.mrb[12].mxu1 %v465_v12  ;;  %v443_v26 = vmax.f32 %v389_v15, 0.0  ;;  %v4266_v12 = vld [vmem:[%s6232_s27 + $0xf0] ss:$8 sps:$4 sm:$0xff]   ;;  %v4274_v15 = vld [vmem:[%s6196_s8 + $0x14] ss:$8 sps:$4 sm:$0xff]  }
 0x19e   :  { %v395_v25 = vadd.f32 %v394_v24, %v5143_v20  ;;  %v444_v28 = vmax.f32 %v391_v21, 0.0  ;;  %1410 = vmatpush1.bf16.msra.mxu1 %v4269_v13  ;;  %v4277_v21 = vld [vmem:[%s6196_s8 + $0x24] ss:$8 sps:$4 sm:$0xff]   ;;  %v4275_v22 = vld [vmem:[%s6196_s8 + $0x20] ss:$8 sps:$4 sm:$0xff]  }
 0x19f   :  { %v445_v27 = vmax.f32 %v393_v23, 0.0  ;;  %1411 = vmatprep.subr.bf16.mxu1 %v4274_v15  ;;  %v4280_v23 = vld [vmem:[%s6196_s8 + $0x34] ss:$8 sps:$4 sm:$0xff]   ;;  %v4278_v24 = vld [vmem:[%s6196_s8 + $0x30] ss:$8 sps:$4 sm:$0xff]  }
 0x1a0   :  { %v446_v29 = vmax.f32 %v395_v25, 0.0  ;;  %v4283_v25 = vld [vmem:[%s6196_s8 + $0x44] ss:$8 sps:$4 sm:$0xff]  }
 0x1a1   :  { %v467_v30 = vpack.c.bf16 %v445_v27, %v443_v26  ;;  %v4281_v26 = vld [vmem:[%s6196_s8 + $0x40] ss:$8 sps:$4 sm:$0xff]   ;;  %v4286_v27 = vld [vmem:[%s6196_s8 + $0x54] ss:$8 sps:$4 sm:$0xff]  }
 0x1a2   :  { %v468_v31 = vpack.c.bf16 %v446_v29, %v444_v28  ;;  %v398_v32 = vpop.f32.mrb[20].mxu0  ;;  %1412 = vmatpush1.bf16.msra.mxu1 %v4272_v17  ;;  %v4284_v28 = vld [vmem:[%s6196_s8 + $0x50] ss:$8 sps:$4 sm:$0xff]   ;;  %v4289_v29 = vld [vmem:[%s6196_s8 + $0x64] ss:$8 sps:$4 sm:$0xff]  }
 0x1a3   :  { %v399_v33 = vadd.f32 %v398_v32, %v5140_v19  ;;  %v400_v34 = vpop.f32.mrb[21].mxu0  ;;  %1413 = vmatprep.subr.bf16.mxu1 %v4277_v21  ;;  %v4290_v32 = vld [vmem:[%s6196_s8 + $0x70] ss:$8 sps:$4 sm:$0xff]  }
 0x1a4   :  { %v401_v35 = vadd.f32 %v400_v34, %v5143_v20  ;;  %v402_v36 = vpop.f32.mrb[22].mxu0  ;;  %751 = vmatprep.mubr.bf16.mxu1 %v468_v31  ;;  %v4292_v31 = vld [vmem:[%s6196_s8 + $0x74] ss:$8 sps:$4 sm:$0xff]   ;;  %v4293_v34 = vld [vmem:[%s6196_s8 + $0x80] ss:$8 sps:$4 sm:$0xff]  }
 0x1a5   :  { %v403_v37 = vadd.f32 %v402_v36, %v5140_v19  ;;  %v404_v38 = vpop.f32.mrb[23].mxu0  ;;  %752 = vmatmul.mubr.bf16.gmra.mrb[16].mxu1 %v467_v30  ;;  %v447_v40 = vmax.f32 %v399_v33, 0.0  ;;  %v4287_v30 = vld [vmem:[%s6196_s8 + $0x60] ss:$8 sps:$4 sm:$0xff]   ;;  %v4295_v33 = vld [vmem:[%s6196_s8 + $0x84] ss:$8 sps:$4 sm:$0xff]  }
 0x1a6   :  { %v405_v39 = vadd.f32 %v404_v38, %v5143_v20  ;;  %v448_v42 = vmax.f32 %v401_v35, 0.0  ;;  %1414 = vmatpush1.bf16.msra.mxu1 %v4275_v22  ;;  %v4298_v35 = vld [vmem:[%s6196_s8 + $0x94] ss:$8 sps:$4 sm:$0xff]   ;;  %v4296_v36 = vld [vmem:[%s6196_s8 + $0x90] ss:$8 sps:$4 sm:$0xff]  }
 0x1a7   :  { %v449_v41 = vmax.f32 %v403_v37, 0.0  ;;  %1415 = vmatprep.subr.bf16.mxu1 %v4280_v23  ;;  %v4301_v37 = vld [vmem:[%s6196_s8 + $0xa4] ss:$8 sps:$4 sm:$0xff]   ;;  %v4299_v38 = vld [vmem:[%s6196_s8 + $0xa0] ss:$8 sps:$4 sm:$0xff]  }
 0x1a8   :  { %v450_v43 = vmax.f32 %v405_v39, 0.0  ;;  %v4304_v39 = vld [vmem:[%s6196_s8 + $0xb4] ss:$8 sps:$4 sm:$0xff]  }
 0x1a9   :  { %v469_v44 = vpack.c.bf16 %v449_v41, %v447_v40  ;;  %v4302_v40 = vld [vmem:[%s6196_s8 + $0xb0] ss:$8 sps:$4 sm:$0xff]   ;;  %v4307_v41 = vld [vmem:[%s6196_s8 + $0xc4] ss:$8 sps:$4 sm:$0xff]  }
 0x1aa   :  { %v470_v45 = vpack.c.bf16 %v450_v43, %v448_v42  ;;  %v408_v46 = vpop.f32.mrb[24].mxu0  ;;  %1416 = vmatpush1.bf16.msra.mxu1 %v4278_v24  ;;  %v4305_v42 = vld [vmem:[%s6196_s8 + $0xc0] ss:$8 sps:$4 sm:$0xff]   ;;  %v4310_v43 = vld [vmem:[%s6196_s8 + $0xd4] ss:$8 sps:$4 sm:$0xff]  }
 0x1ab   :  { %v409_v47 = vadd.f32 %v408_v46, %v5140_v19  ;;  %v410_v48 = vpop.f32.mrb[25].mxu0  ;;  %1417 = vmatprep.subr.bf16.mxu1 %v4283_v25 }
 0x1ac   :  { %v411_v49 = vadd.f32 %v410_v48, %v5143_v20  ;;  %v412_v50 = vpop.f32.mrb[26].mxu0  ;;  %761 = vmatprep.mubr.bf16.mxu1 %v470_v45  ;;  %v507_v45 = vld [vmem:[#allocation6] sm:$0x3] }
 0x1ad   :  { %v413_v51 = vadd.f32 %v412_v50, %v5140_v19  ;;  %v414_v52 = vpop.f32.mrb[27].mxu0  ;;  %762 = vmatmul.mubr.bf16.gmra.mrb[20].mxu1 %v469_v44  ;;  %v451_v54 = vmax.f32 %v409_v47, 0.0  ;;  %v4308_v44 = vld [vmem:[%s6196_s8 + $0xd0] ss:$8 sps:$4 sm:$0xff]   ;;  %v5274_v46 = vrot.slane %v507_v45, %v5135_v16  ;;  %v5277_v47 = vrot.slane %v507_v45, %v5137_v18 }
 0x1ae   :  { %v415_v53 = vadd.f32 %v414_v52, %v5143_v20  ;;  %v452_v56 = vmax.f32 %v411_v49, 0.0  ;;  %1418 = vmatpush1.bf16.msra.mxu1 %v4281_v26 }
 0x1af   :  { %v453_v55 = vmax.f32 %v413_v51, 0.0  ;;  %1419 = vmatprep.subr.bf16.mxu1 %v4286_v27 }
 0x1b0   :  { %v454_v57 = vmax.f32 %v415_v53, 0.0 }
 0x1b1   :  { %v471_v58 = vpack.c.bf16 %v453_v55, %v451_v54 }
 0x1b2   :  { %v472_v59 = vpack.c.bf16 %v454_v57, %v452_v56  ;;  %v418_v60 = vpop.f32.mrb[28].mxu0  ;;  %1420 = vmatpush1.bf16.msra.mxu1 %v4284_v28 }
 0x1b3   :  { %v419_v61 = vadd.f32 %v418_v60, %v5140_v19  ;;  %v420_v62 = vpop.f32.mrb[29].mxu0  ;;  %1421 = vmatprep.subr.bf16.mxu1 %v4289_v29 }
 0x1b4   :  { %v421_v63 = vadd.f32 %v420_v62, %v5143_v20  ;;  %v422_v1 = vpop.f32.mrb[30].mxu0  ;;  %771 = vmatprep.mubr.bf16.mxu1 %v472_v59 }
 0x1b5   :  { %v423_v2 = vadd.f32 %v422_v1, %v5140_v19  ;;  %v424_v3 = vpop.f32.mrb[31].mxu0  ;;  %772 = vmatmul.mubr.bf16.gmra.mrb[24].mxu1 %v471_v58  ;;  %v455_v5 = vmax.f32 %v419_v61, 0.0  ;;  %v4263_v19 = vld [vmem:[%s6232_s27 + $0xe0] ss:$8 sps:$4 sm:$0xff]  }
 0x1b6   :  { %v425_v4 = vadd.f32 %v424_v3, %v5143_v20  ;;  %v456_v7 = vmax.f32 %v421_v63, 0.0  ;;  %1073 = vmatpush1.bf16.msra.mxu0 %v4263_v19  ;;  %v4268_v20 = vld [vmem:[%s6232_s27 + $0xf4] ss:$8 sps:$4 sm:$0xff]   ;;  %1422 = vmatpush1.bf16.msra.mxu1 %v4287_v30 }
 0x1b7   :  { %v457_v6 = vmax.f32 %v423_v2, 0.0  ;;  %1074 = vmatprep.subr.bf16.mxu0 %v4268_v20  ;;  %1423 = vmatprep.subr.bf16.mxu1 %v4292_v31 }
 0x1b8   :  { %v458_v8 = vmax.f32 %v425_v4, 0.0 }
 0x1b9   :  { %v473_v9 = vpack.c.bf16 %v457_v6, %v455_v5 }
 0x1ba   :  { %v474_v10 = vpack.c.bf16 %v458_v8, %v456_v7  ;;  %1075 = vmatpush1.bf16.msra.mxu0 %v4266_v12  ;;  %1424 = vmatpush1.bf16.msra.mxu1 %v4290_v32 }
 0x1bb   :  { %1425 = vmatprep.subr.bf16.mxu1 %v4295_v33 }
 0x1bc   :  { %781 = vmatprep.mubr.bf16.mxu1 %v474_v10 }
 0x1bd   :  { %782 = vmatmul.mubr.bf16.gmra.mrb[28].mxu1 %v473_v9 }
 0x1be   :  { %1426 = vmatpush1.bf16.msra.mxu1 %v4293_v34 }
 0x1bf   :  { %1427 = vmatprep.subr.bf16.mxu1 %v4298_v35 }
 0x1c2   :  { %1428 = vmatpush1.bf16.msra.mxu1 %v4296_v36 }
 0x1c3   :  { %1429 = vmatprep.subr.bf16.mxu1 %v4301_v37 }
 0x1c6   :  { %1430 = vmatpush1.bf16.msra.mxu1 %v4299_v38 }
 0x1c7   :  { %1431 = vmatprep.subr.bf16.mxu1 %v4304_v39 }
 0x1ca   :  { %1432 = vmatpush1.bf16.msra.mxu1 %v4302_v40 }
 0x1cb   :  { %1433 = vmatprep.subr.bf16.mxu1 %v4307_v41 }
 0x1ce   :  { %1434 = vmatpush1.bf16.msra.mxu1 %v4305_v42 }
 0x1cf   :  { %1435 = vmatprep.subr.bf16.mxu1 %v4310_v43 }
 0x1d2   :  { %1436 = vmatpush1.bf16.msra.mxu1 %v4308_v44 }
 0x258   :  { %v713_v48 = vpop.f32.mrb[0].mxu1 }
 0x259   :  { %v714_v49 = vadd.f32 %v713_v48, %v5274_v46  ;;  %v715_v50 = vpop.f32.mrb[1].mxu1 }
 0x25a   :  { %v716_v51 = vadd.f32 %v715_v50, %v5277_v47  ;;  %v717_v52 = vpop.f32.mrb[2].mxu1 }
 0x25b   :  { %v718_v53 = vadd.f32 %v717_v52, %v5274_v46  ;;  %v719_v54 = vpop.f32.mrb[3].mxu1  ;;  %v792_v56 = vmax.f32 %v714_v49, 0.0 }
 0x25c   :  { %v720_v55 = vadd.f32 %v719_v54, %v5277_v47  ;;  %v793_v58 = vmax.f32 %v716_v51, 0.0 }
 0x25d   :  { %v794_v57 = vmax.f32 %v718_v53, 0.0 }
 0x25e   :  { %v795_v59 = vmax.f32 %v720_v55, 0.0 }
 0x25f   :  { %v824_v60 = vpack.c.bf16 %v794_v57, %v792_v56 }
 0x260   :  { %v825_v61 = vpack.c.bf16 %v795_v59, %v793_v58  ;;  %v723_v62 = vpop.f32.mrb[4].mxu1 }
 0x261   :  { %v724_v63 = vadd.f32 %v723_v62, %v5274_v46  ;;  %v725_v1 = vpop.f32.mrb[5].mxu1 }
 0x262   :  { %v726_v2 = vadd.f32 %v725_v1, %v5277_v47  ;;  %v727_v3 = vpop.f32.mrb[6].mxu1  ;;  %1076 = vmatprep.mubr.bf16.mxu0 %v825_v61 }
 0x263   :  { %v728_v4 = vadd.f32 %v727_v3, %v5274_v46  ;;  %v729_v5 = vpop.f32.mrb[7].mxu1  ;;  %1077 = vmatmul.mubr.bf16.vlgmr.msra.gmra.mrb[32].mxu0 %v824_v60  ;;  %v796_v7 = vmax.f32 %v724_v63, 0.0 }
 0x264   :  { %v730_v6 = vadd.f32 %v729_v5, %v5277_v47  ;;  %v797_v9 = vmax.f32 %v726_v2, 0.0 }
 0x265   :  { %v798_v8 = vmax.f32 %v728_v4, 0.0 }
 0x266   :  { %v799_v10 = vmax.f32 %v730_v6, 0.0 }
 0x267   :  { %v826_v11 = vpack.c.bf16 %v798_v8, %v796_v7 }
 0x268   :  { %v827_v19 = vpack.c.bf16 %v799_v10, %v797_v9  ;;  %v733_v20 = vpop.f32.mrb[8].mxu1 }
 0x269   :  { %v734_v12 = vadd.f32 %v733_v20, %v5274_v46  ;;  %v735_v13 = vpop.f32.mrb[9].mxu1 }
 0x26a   :  { %v736_v14 = vadd.f32 %v735_v13, %v5277_v47  ;;  %v737_v15 = vpop.f32.mrb[10].mxu1  ;;  %1086 = vmatprep.mubr.bf16.mxu0 %v827_v19 }
 0x26b   :  { %v738_v17 = vadd.f32 %v737_v15, %v5274_v46  ;;  %v739_v21 = vpop.f32.mrb[11].mxu1  ;;  %1087 = vmatmul.mubr.bf16.gmra.mrb[36].mxu0 %v826_v11  ;;  %v800_v23 = vmax.f32 %v734_v12, 0.0 }
 0x26c   :  { %v740_v22 = vadd.f32 %v739_v21, %v5277_v47  ;;  %v801_v25 = vmax.f32 %v736_v14, 0.0 }
 0x26d   :  { %v802_v24 = vmax.f32 %v738_v17, 0.0 }
 0x26e   :  { %v803_v26 = vmax.f32 %v740_v22, 0.0 }
 0x26f   :  { %v828_v27 = vpack.c.bf16 %v802_v24, %v800_v23 }
 0x270   :  { %v829_v28 = vpack.c.bf16 %v803_v26, %v801_v25  ;;  %v743_v29 = vpop.f32.mrb[12].mxu1 }
 0x271   :  { %v744_v30 = vadd.f32 %v743_v29, %v5274_v46  ;;  %v745_v31 = vpop.f32.mrb[13].mxu1 }
 0x272   :  { %v746_v32 = vadd.f32 %v745_v31, %v5277_v47  ;;  %v747_v33 = vpop.f32.mrb[14].mxu1  ;;  %1096 = vmatprep.mubr.bf16.mxu0 %v829_v28 }
 0x273   :  { %v748_v34 = vadd.f32 %v747_v33, %v5274_v46  ;;  %v749_v35 = vpop.f32.mrb[15].mxu1  ;;  %1097 = vmatmul.mubr.bf16.gmra.mrb[40].mxu0 %v828_v27  ;;  %v804_v37 = vmax.f32 %v744_v30, 0.0 }
 0x274   :  { %v750_v36 = vadd.f32 %v749_v35, %v5277_v47  ;;  %v805_v39 = vmax.f32 %v746_v32, 0.0 }
 0x275   :  { %v806_v38 = vmax.f32 %v748_v34, 0.0 }
 0x276   :  { %v807_v40 = vmax.f32 %v750_v36, 0.0 }
 0x277   :  { %v830_v41 = vpack.c.bf16 %v806_v38, %v804_v37 }
 0x278   :  { %v831_v42 = vpack.c.bf16 %v807_v40, %v805_v39  ;;  %v753_v43 = vpop.f32.mrb[16].mxu1  ;;  %v4313_v40 = vld [vmem:[%s6196_s8 + $0xe4] ss:$8 sps:$4 sm:$0xff]  }
 0x279   :  { %v754_v44 = vadd.f32 %v753_v43, %v5274_v46  ;;  %v755_v45 = vpop.f32.mrb[17].mxu1  ;;  %1437 = vmatprep.subr.bf16.mxu1 %v4313_v40  ;;  %v4319_v43 = vld [vmem:[#allocation10 + $0x4] ss:$8 sps:$4 sm:$0xff]   ;;  %v4368_v40 = vld [vmem:[%s6198_s10 + $0xd0] ss:$8 sps:$4 sm:$0xff]  }
 0x27a   :  { %v756_v48 = vadd.f32 %v755_v45, %v5277_v47  ;;  %v757_v49 = vpop.f32.mrb[18].mxu1  ;;  %1106 = vmatprep.mubr.bf16.mxu0 %v831_v42  ;;  %v4317_v42 = vld [vmem:[#allocation10] ss:$8 sps:$4 sm:$0xff]   ;;  %1650 = vmatprep.subr.bf16.mxu0 %v4319_v43  ;;  %v4320_v45 = vld [vmem:[#allocation10 + $0x10] ss:$8 sps:$4 sm:$0xff]  }
 0x27b   :  { %v758_v50 = vadd.f32 %v757_v49, %v5274_v46  ;;  %v759_v51 = vpop.f32.mrb[19].mxu1  ;;  %1107 = vmatmul.mubr.bf16.gmra.mrb[44].mxu0 %v830_v41  ;;  %v808_v53 = vmax.f32 %v754_v44, 0.0  ;;  %v4314_v41 = vld [vmem:[%s6196_s8 + $0xf0] ss:$8 sps:$4 sm:$0xff]   ;;  %v4322_v44 = vld [vmem:[#allocation10 + $0x14] ss:$8 sps:$4 sm:$0xff]  }
 0x27c   :  { %v760_v52 = vadd.f32 %v759_v51, %v5277_v47  ;;  %v809_v55 = vmax.f32 %v756_v48, 0.0  ;;  %1651 = vmatpush1.bf16.msra.mxu0 %v4317_v42  ;;  %v4325_v48 = vld [vmem:[#allocation10 + $0x24] ss:$8 sps:$4 sm:$0xff]   ;;  %v4323_v49 = vld [vmem:[#allocation10 + $0x20] ss:$8 sps:$4 sm:$0xff]  }
 0x27d   :  { %v810_v54 = vmax.f32 %v758_v50, 0.0  ;;  %1652 = vmatprep.subr.bf16.mxu0 %v4322_v44  ;;  %v4328_v50 = vld [vmem:[#allocation10 + $0x34] ss:$8 sps:$4 sm:$0xff]   ;;  %v4326_v51 = vld [vmem:[#allocation10 + $0x30] ss:$8 sps:$4 sm:$0xff]  }
 0x27e   :  { %v811_v56 = vmax.f32 %v760_v52, 0.0  ;;  %v4331_v52 = vld [vmem:[%s6198_s10 + $0x4] ss:$8 sps:$4 sm:$0xff]  }
 0x27f   :  { %v832_v57 = vpack.c.bf16 %v810_v54, %v808_v53  ;;  %v4329_v53 = vld [vmem:[%s6198_s10] ss:$8 sps:$4 sm:$0xff]   ;;  %v4334_v54 = vld [vmem:[%s6198_s10 + $0x14] ss:$8 sps:$4 sm:$0xff]  }
 0x280   :  { %v833_v58 = vpack.c.bf16 %v811_v56, %v809_v55  ;;  %v763_v59 = vpop.f32.mrb[20].mxu1  ;;  %1653 = vmatpush1.bf16.msra.mxu0 %v4320_v45  ;;  %v4527_v55 = vld [vmem:[%s6230_s22] sm:$0xff]   ;;  %v4332_v56 = vld [vmem:[%s6198_s10 + $0x10] ss:$8 sps:$4 sm:$0xff]  }
 0x281   :  { %v764_v60 = vadd.f32 %v763_v59, %v5274_v46  ;;  %v765_v61 = vpop.f32.mrb[21].mxu1  ;;  %1654 = vmatprep.subr.bf16.mxu0 %v4325_v48  ;;  %v4340_v59 = vld [vmem:[%s6198_s10 + $0x34] ss:$8 sps:$4 sm:$0xff]  }
 0x282   :  { %v766_v62 = vadd.f32 %v765_v61, %v5277_v47  ;;  %v767_v63 = vpop.f32.mrb[22].mxu1  ;;  %1116 = vmatprep.mubr.bf16.mxu0 %v833_v58  ;;  %v4335_v58 = vld [vmem:[%s6198_s10 + $0x20] ss:$8 sps:$4 sm:$0xff]   ;;  %v4338_v61 = vld [vmem:[%s6198_s10 + $0x30] ss:$8 sps:$4 sm:$0xff]  }
 0x283   :  { %v768_v1 = vadd.f32 %v767_v63, %v5274_v46  ;;  %v769_v2 = vpop.f32.mrb[23].mxu1  ;;  %1117 = vmatmul.mubr.bf16.gmra.mrb[48].mxu0 %v832_v57  ;;  %v812_v4 = vmax.f32 %v764_v60, 0.0  ;;  %v4337_v57 = vld [vmem:[%s6198_s10 + $0x24] ss:$8 sps:$4 sm:$0xff]   ;;  %v4341_v63 = vld [vmem:[%s6198_s10 + $0x40] ss:$8 sps:$4 sm:$0xff]  }
 0x284   :  { %v770_v3 = vadd.f32 %v769_v2, %v5277_v47  ;;  %v813_v6 = vmax.f32 %v766_v62, 0.0  ;;  %1655 = vmatpush1.bf16.msra.mxu0 %v4323_v49  ;;  %v4528_v60 = vld [vmem:[%s6230_s22 + $0x8] sm:$0xff]   ;;  %v4529_v2 = vld [vmem:[%s6230_s22 + $0x10] sm:$0xff]  }
 0x285   :  { %v814_v5 = vmax.f32 %v768_v1, 0.0  ;;  %1656 = vmatprep.subr.bf16.mxu0 %v4328_v50  ;;  %v4343_v62 = vld [vmem:[%s6198_s10 + $0x44] ss:$8 sps:$4 sm:$0xff]   ;;  %v4346_v1 = vld [vmem:[%s6198_s10 + $0x54] ss:$8 sps:$4 sm:$0xff]  }
 0x286   :  { %v815_v7 = vmax.f32 %v770_v3, 0.0  ;;  %v4344_v3 = vld [vmem:[%s6198_s10 + $0x50] ss:$8 sps:$4 sm:$0xff]  }
 0x287   :  { %v834_v8 = vpack.c.bf16 %v814_v5, %v812_v4  ;;  %v4349_v4 = vld [vmem:[%s6198_s10 + $0x64] ss:$8 sps:$4 sm:$0xff]   ;;  %v4347_v5 = vld [vmem:[%s6198_s10 + $0x60] ss:$8 sps:$4 sm:$0xff]  }
 0x288   :  { %v835_v9 = vpack.c.bf16 %v815_v7, %v813_v6  ;;  %v773_v10 = vpop.f32.mrb[24].mxu1  ;;  %1657 = vmatpush1.bf16.msra.mxu0 %v4326_v51  ;;  %v4352_v6 = vld [vmem:[%s6198_s10 + $0x74] ss:$8 sps:$4 sm:$0xff]  }
 0x289   :  { %v774_v11 = vadd.f32 %v773_v10, %v5274_v46  ;;  %v775_v19 = vpop.f32.mrb[25].mxu1  ;;  %1923 = vmatprep.subr.bf16.mxu0 %v4331_v52  ;;  %v4530_v7 = vld [vmem:[%s6230_s22 + $0x18] sm:$0xff]   ;;  %v4353_v10 = vld [vmem:[%s6198_s10 + $0x80] ss:$8 sps:$4 sm:$0xff]  }
 0x28a   :  { %v776_v20 = vadd.f32 %v775_v19, %v5277_v47  ;;  %v777_v12 = vpop.f32.mrb[26].mxu1  ;;  %1126 = vmatprep.mubr.bf16.mxu0 %v835_v9  ;;  %v4355_v9 = vld [vmem:[%s6198_s10 + $0x84] ss:$8 sps:$4 sm:$0xff]  }
 0x28b   :  { %v778_v13 = vadd.f32 %v777_v12, %v5274_v46  ;;  %v779_v14 = vpop.f32.mrb[27].mxu1  ;;  %1127 = vmatmul.mubr.bf16.gmra.mrb[52].mxu0 %v834_v8  ;;  %v816_v17 = vmax.f32 %v774_v11, 0.0  ;;  %v4350_v8 = vld [vmem:[%s6198_s10 + $0x70] ss:$8 sps:$4 sm:$0xff]   ;;  %v4358_v11 = vld [vmem:[%s6198_s10 + $0x94] ss:$8 sps:$4 sm:$0xff]  }
 0x28c   :  { %v780_v15 = vadd.f32 %v779_v14, %v5277_v47  ;;  %v817_v22 = vmax.f32 %v776_v20, 0.0  ;;  %v4531_v19 = vld [vmem:[%s6230_s22 + $0x20] sm:$0xff]   ;;  %v4356_v20 = vld [vmem:[%s6198_s10 + $0x90] ss:$8 sps:$4 sm:$0xff]  }
 0x28d   :  { %v818_v21 = vmax.f32 %v778_v13, 0.0  ;;  %v4361_v12 = vld [vmem:[%s6198_s10 + $0xa4] ss:$8 sps:$4 sm:$0xff]   ;;  %v4359_v14 = vld [vmem:[%s6198_s10 + $0xa0] ss:$8 sps:$4 sm:$0xff]  }
 0x28e   :  { %v819_v23 = vmax.f32 %v780_v15, 0.0  ;;  %v872_v13 = vld [vmem:[#allocation7] sm:$0x3]  ;;  %v4364_v15 = vld [vmem:[%s6198_s10 + $0xb4] ss:$8 sps:$4 sm:$0xff]  }
 0x28f   :  { %v836_v24 = vpack.c.bf16 %v818_v21, %v816_v17  ;;  %v5419_v17 = vrot.slane %v872_v13, %v5135_v16  ;;  %v4532_v21 = vld [vmem:[%s6230_s22 + $0x28] sm:$0xff]  }
 0x290   :  { %v837_v25 = vpack.c.bf16 %v819_v23, %v817_v22  ;;  %v783_v26 = vpop.f32.mrb[28].mxu1  ;;  %v5426_v22 = vrot.slane %v872_v13, %v5137_v18  ;;  %v4362_v23 = vld [vmem:[%s6198_s10 + $0xb0] ss:$8 sps:$4 sm:$0xff]  }
 0x291   :  { %v784_v27 = vadd.f32 %v783_v26, %v5274_v46  ;;  %v785_v28 = vpop.f32.mrb[29].mxu1 }
 0x292   :  { %v786_v29 = vadd.f32 %v785_v28, %v5277_v47  ;;  %v787_v30 = vpop.f32.mrb[30].mxu1  ;;  %1136 = vmatprep.mubr.bf16.mxu0 %v837_v25 }
 0x293   :  { %v788_v31 = vadd.f32 %v787_v30, %v5274_v46  ;;  %v789_v32 = vpop.f32.mrb[31].mxu1  ;;  %1137 = vmatmul.mubr.bf16.gmra.mrb[56].mxu0 %v836_v24  ;;  %v820_v34 = vmax.f32 %v784_v27, 0.0  ;;  %v4311_v46 = vld [vmem:[%s6196_s8 + $0xe0] ss:$8 sps:$4 sm:$0xff]   ;;  %v4367_v24 = vld [vmem:[%s6198_s10 + $0xc4] ss:$8 sps:$4 sm:$0xff]  }
 0x294   :  { %v790_v33 = vadd.f32 %v789_v32, %v5277_v47  ;;  %v821_v36 = vmax.f32 %v786_v29, 0.0  ;;  %1438 = vmatpush1.bf16.msra.mxu1 %v4311_v46  ;;  %v4316_v47 = vld [vmem:[%s6196_s8 + $0xf4] ss:$8 sps:$4 sm:$0xff]   ;;  %v4365_v30 = vld [vmem:[%s6198_s10 + $0xc0] ss:$8 sps:$4 sm:$0xff]  }
 0x295   :  { %v822_v35 = vmax.f32 %v788_v31, 0.0  ;;  %1439 = vmatprep.subr.bf16.mxu1 %v4316_v47 }
 0x296   :  { %v823_v37 = vmax.f32 %v790_v33, 0.0  ;;  %v4370_v33 = vld [vmem:[%s6198_s10 + $0xd4] ss:$8 sps:$4 sm:$0xff]  }
 0x297   :  { %v838_v38 = vpack.c.bf16 %v822_v35, %v820_v34 }
 0x298   :  { %v839_v39 = vpack.c.bf16 %v823_v37, %v821_v36  ;;  %1440 = vmatpush1.bf16.msra.mxu1 %v4314_v41  ;;  %v4533_v37 = vld [vmem:[%s6230_s22 + $0x30] sm:$0xff]  }
 0x29a   :  { %1146 = vmatprep.mubr.bf16.mxu0 %v839_v39 }
 0x29b   :  { %1147 = vmatmul.mubr.bf16.gmra.mrb[60].mxu0 %v838_v38 }
 0x29c   :  { %1682 = vmatprep.mubr.bf16.mxu0 %v4706_v0 }
 0x2a3   :  { %3849 = vmatmul.mubr.msk.bf16.vlgmr.msra.gmra.mrb[64].mxu0 %vm289_vm0, %v4527_v55 }
 0x2a4   :  { %1924 = vmatpush1.bf16.msra.mxu0 %v4329_v53  ;;  %1692 = vmatprep.mubr.bf16.mxu0 %v4706_v0  ;;  %v4534_v53 = vld [vmem:[%s6230_s22 + $0x38] sm:$0xff]  }
 0x2a5   :  { %1925 = vmatprep.subr.bf16.mxu0 %v4334_v54 }
 0x2a8   :  { %1926 = vmatpush1.bf16.msra.mxu0 %v4332_v56 }
 0x2a9   :  { %1927 = vmatprep.subr.bf16.mxu0 %v4337_v57 }
 0x2ab   :  { %3850 = vmatmul.mubr.msk.bf16.gmra.mrb[68].mxu0 %vm289_vm0, %v4528_v60 }
 0x2ac   :  { %1928 = vmatpush1.bf16.msra.mxu0 %v4335_v58  ;;  %1702 = vmatprep.mubr.bf16.mxu0 %v4706_v0 }
 0x2ad   :  { %1929 = vmatprep.subr.bf16.mxu0 %v4340_v59 }
 0x2b0   :  { %1930 = vmatpush1.bf16.msra.mxu0 %v4338_v61 }
 0x2b1   :  { %1931 = vmatprep.subr.bf16.mxu0 %v4343_v62 }
 0x2b3   :  { %3851 = vmatmul.mubr.msk.bf16.gmra.mrb[72].mxu0 %vm289_vm0, %v4529_v2 }
 0x2b4   :  { %1932 = vmatpush1.bf16.msra.mxu0 %v4341_v63  ;;  %1712 = vmatprep.mubr.bf16.mxu0 %v4706_v0 }
 0x2b5   :  { %1933 = vmatprep.subr.bf16.mxu0 %v4346_v1 }
 0x2b8   :  { %1934 = vmatpush1.bf16.msra.mxu0 %v4344_v3 }
 0x2b9   :  { %1935 = vmatprep.subr.bf16.mxu0 %v4349_v4 }
 0x2bb   :  { %3852 = vmatmul.mubr.msk.bf16.gmra.mrb[76].mxu0 %vm289_vm0, %v4530_v7 }
 0x2bc   :  { %1936 = vmatpush1.bf16.msra.mxu0 %v4347_v5  ;;  %1722 = vmatprep.mubr.bf16.mxu0 %v4706_v0 }
 0x2bd   :  { %1937 = vmatprep.subr.bf16.mxu0 %v4352_v6 }
 0x2c0   :  { %1938 = vmatpush1.bf16.msra.mxu0 %v4350_v8 }
 0x2c1   :  { %1939 = vmatprep.subr.bf16.mxu0 %v4355_v9 }
 0x2c3   :  { %3853 = vmatmul.mubr.msk.bf16.gmra.mrb[80].mxu0 %vm289_vm0, %v4531_v19 }
 0x2c4   :  { %1940 = vmatpush1.bf16.msra.mxu0 %v4353_v10  ;;  %1732 = vmatprep.mubr.bf16.mxu0 %v4706_v0 }
 0x2c5   :  { %1941 = vmatprep.subr.bf16.mxu0 %v4358_v11 }
 0x2c8   :  { %1942 = vmatpush1.bf16.msra.mxu0 %v4356_v20 }
 0x2c9   :  { %1943 = vmatprep.subr.bf16.mxu0 %v4361_v12 }
 0x2cb   :  { %3854 = vmatmul.mubr.msk.bf16.gmra.mrb[84].mxu0 %vm289_vm0, %v4532_v21 }
 0x2cc   :  { %1944 = vmatpush1.bf16.msra.mxu0 %v4359_v14  ;;  %1742 = vmatprep.mubr.bf16.mxu0 %v4706_v0 }
 0x2cd   :  { %1945 = vmatprep.subr.bf16.mxu0 %v4364_v15 }
 0x2d0   :  { %1946 = vmatpush1.bf16.msra.mxu0 %v4362_v23 }
 0x2d1   :  { %1947 = vmatprep.subr.bf16.mxu0 %v4367_v24 }
 0x2d3   :  { %3855 = vmatmul.mubr.msk.bf16.gmra.mrb[88].mxu0 %vm289_vm0, %v4533_v37 }
 0x2d4   :  { %1948 = vmatpush1.bf16.msra.mxu0 %v4365_v30  ;;  %1752 = vmatprep.mubr.bf16.mxu0 %v4706_v0 }
 0x2d5   :  { %1949 = vmatprep.subr.bf16.mxu0 %v4370_v33 }
 0x2d8   :  { %1950 = vmatpush1.bf16.msra.mxu0 %v4368_v40 }
 0x2db   :  { %3856 = vmatmul.mubr.msk.bf16.gmra.mrb[92].mxu0 %vm289_vm0, %v4534_v53 }
 0x336   :  { %v1078_v25 = vpop.f32.mrb[32].mxu0 }
 0x337   :  { %v1079_v26 = vadd.f32 %v1078_v25, %v5419_v17  ;;  %v1080_v27 = vpop.f32.mrb[33].mxu0 }
 0x338   :  { %v1081_v28 = vadd.f32 %v1080_v27, %v5426_v22  ;;  %v1082_v29 = vpop.f32.mrb[34].mxu0 }
 0x339   :  { %v1083_v31 = vadd.f32 %v1082_v29, %v5419_v17  ;;  %v1084_v32 = vpop.f32.mrb[35].mxu0  ;;  %v1157_v35 = vmax.f32 %v1079_v26, 0.0 }
 0x33a   :  { %v1085_v34 = vadd.f32 %v1084_v32, %v5426_v22  ;;  %v1158_v38 = vmax.f32 %v1081_v28, 0.0 }
 0x33b   :  { %v1159_v36 = vmax.f32 %v1083_v31, 0.0 }
 0x33c   :  { %v1160_v39 = vmax.f32 %v1085_v34, 0.0 }
 0x33d   :  { %v1189_v46 = vpack.c.bf16 %v1159_v36, %v1157_v35 }
 0x33e   :  { %v1190_v47 = vpack.c.bf16 %v1160_v39, %v1158_v38  ;;  %v1088_v41 = vpop.f32.mrb[36].mxu0 }
 0x33f   :  { %v1089_v42 = vadd.f32 %v1088_v41, %v5419_v17  ;;  %v1090_v43 = vpop.f32.mrb[37].mxu0 }
 0x340   :  { %v1091_v44 = vadd.f32 %v1090_v43, %v5426_v22  ;;  %v1092_v45 = vpop.f32.mrb[38].mxu0  ;;  %1441 = vmatprep.mubr.bf16.mxu1 %v1190_v47 }
 0x341   :  { %v1093_v48 = vadd.f32 %v1092_v45, %v5419_v17  ;;  %v1094_v49 = vpop.f32.mrb[39].mxu0  ;;  %1442 = vmatmul.mubr.bf16.vlgmr.msra.gmra.mrb[32].mxu1 %v1189_v46  ;;  %v1161_v51 = vmax.f32 %v1089_v42, 0.0 }
 0x342   :  { %v1095_v50 = vadd.f32 %v1094_v49, %v5426_v22  ;;  %v1162_v54 = vmax.f32 %v1091_v44, 0.0 }
 0x343   :  { %v1163_v52 = vmax.f32 %v1093_v48, 0.0 }
 0x344   :  { %v1164_v55 = vmax.f32 %v1095_v50, 0.0 }
 0x345   :  { %v1191_v56 = vpack.c.bf16 %v1163_v52, %v1161_v51 }
 0x346   :  { %v1192_v57 = vpack.c.bf16 %v1164_v55, %v1162_v54  ;;  %v1098_v58 = vpop.f32.mrb[40].mxu0 }
 0x347   :  { %v1099_v59 = vadd.f32 %v1098_v58, %v5419_v17  ;;  %v1100_v60 = vpop.f32.mrb[41].mxu0 }
 0x348   :  { %v1101_v61 = vadd.f32 %v1100_v60, %v5426_v22  ;;  %v1102_v62 = vpop.f32.mrb[42].mxu0  ;;  %1451 = vmatprep.mubr.bf16.mxu1 %v1192_v57 }
 0x349   :  { %v1103_v63 = vadd.f32 %v1102_v62, %v5419_v17  ;;  %v1104_v1 = vpop.f32.mrb[43].mxu0  ;;  %1452 = vmatmul.mubr.bf16.gmra.mrb[36].mxu1 %v1191_v56  ;;  %v1165_v3 = vmax.f32 %v1099_v59, 0.0 }
 0x34a   :  { %v1105_v2 = vadd.f32 %v1104_v1, %v5426_v22  ;;  %v1166_v5 = vmax.f32 %v1101_v61, 0.0 }
 0x34b   :  { %v1167_v4 = vmax.f32 %v1103_v63, 0.0 }
 0x34c   :  { %v1168_v6 = vmax.f32 %v1105_v2, 0.0 }
 0x34d   :  { %v1193_v7 = vpack.c.bf16 %v1167_v4, %v1165_v3 }
 0x34e   :  { %v1194_v8 = vpack.c.bf16 %v1168_v6, %v1166_v5  ;;  %v1108_v9 = vpop.f32.mrb[44].mxu0 }
 0x34f   :  { %v1109_v10 = vadd.f32 %v1108_v9, %v5419_v17  ;;  %v1110_v11 = vpop.f32.mrb[45].mxu0 }
 0x350   :  { %v1111_v19 = vadd.f32 %v1110_v11, %v5426_v22  ;;  %v1112_v20 = vpop.f32.mrb[46].mxu0  ;;  %1461 = vmatprep.mubr.bf16.mxu1 %v1194_v8 }
 0x351   :  { %v1113_v12 = vadd.f32 %v1112_v20, %v5419_v17  ;;  %v1114_v13 = vpop.f32.mrb[47].mxu0  ;;  %1462 = vmatmul.mubr.bf16.gmra.mrb[40].mxu1 %v1193_v7  ;;  %v1169_v15 = vmax.f32 %v1109_v10, 0.0 }
 0x352   :  { %v1115_v14 = vadd.f32 %v1114_v13, %v5426_v22  ;;  %v1170_v23 = vmax.f32 %v1111_v19, 0.0 }
 0x353   :  { %v1171_v21 = vmax.f32 %v1113_v12, 0.0 }
 0x354   :  { %v1172_v24 = vmax.f32 %v1115_v14, 0.0 }
 0x355   :  { %v1195_v25 = vpack.c.bf16 %v1171_v21, %v1169_v15 }
 0x356   :  { %v1196_v26 = vpack.c.bf16 %v1172_v24, %v1170_v23  ;;  %v1118_v27 = vpop.f32.mrb[48].mxu0  ;;  %v4373_v24 = vld [vmem:[%s6198_s10 + $0xe4] ss:$8 sps:$4 sm:$0xff]  }
 0x357   :  { %v1119_v28 = vadd.f32 %v1118_v27, %v5419_v17  ;;  %v1120_v29 = vpop.f32.mrb[49].mxu0  ;;  %1951 = vmatprep.subr.bf16.mxu0 %v4373_v24  ;;  %v4379_v27 = vld [vmem:[%s6201_s13 + $0x4] ss:$8 sps:$4 sm:$0xff]  }
 0x358   :  { %v1121_v30 = vadd.f32 %v1120_v29, %v5426_v22  ;;  %v1122_v31 = vpop.f32.mrb[50].mxu0  ;;  %1471 = vmatprep.mubr.bf16.mxu1 %v1196_v26  ;;  %v4377_v26 = vld [vmem:[%s6201_s13] ss:$8 sps:$4 sm:$0xff]   ;;  %2332 = vmatprep.subr.bf16.mxu1 %v4379_v27  ;;  %v4380_v29 = vld [vmem:[%s6201_s13 + $0x10] ss:$8 sps:$4 sm:$0xff]  }
 0x359   :  { %v1123_v32 = vadd.f32 %v1122_v31, %v5419_v17  ;;  %v1124_v33 = vpop.f32.mrb[51].mxu0  ;;  %1472 = vmatmul.mubr.bf16.gmra.mrb[44].mxu1 %v1195_v25  ;;  %v1173_v35 = vmax.f32 %v1119_v28, 0.0  ;;  %v4374_v25 = vld [vmem:[%s6198_s10 + $0xf0] ss:$8 sps:$4 sm:$0xff]   ;;  %v4382_v28 = vld [vmem:[%s6201_s13 + $0x14] ss:$8 sps:$4 sm:$0xff]  }
 0x35a   :  { %v1125_v34 = vadd.f32 %v1124_v33, %v5426_v22  ;;  %v1174_v37 = vmax.f32 %v1121_v30, 0.0  ;;  %2333 = vmatpush1.bf16.msra.mxu1 %v4377_v26  ;;  %v4385_v30 = vld [vmem:[%s6201_s13 + $0x24] ss:$8 sps:$4 sm:$0xff]   ;;  %v4383_v31 = vld [vmem:[%s6201_s13 + $0x20] ss:$8 sps:$4 sm:$0xff]  }
 0x35b   :  { %v1175_v36 = vmax.f32 %v1123_v32, 0.0  ;;  %2334 = vmatprep.subr.bf16.mxu1 %v4382_v28  ;;  %v4388_v32 = vld [vmem:[%s6201_s13 + $0x34] ss:$8 sps:$4 sm:$0xff]   ;;  %v4386_v33 = vld [vmem:[%s6201_s13 + $0x30] ss:$8 sps:$4 sm:$0xff]  }
 0x35c   :  { %v1176_v38 = vmax.f32 %v1125_v34, 0.0  ;;  %v4391_v34 = vld [vmem:[%s6201_s13 + $0x44] ss:$8 sps:$4 sm:$0xff]  }
 0x35d   :  { %v1197_v39 = vpack.c.bf16 %v1175_v36, %v1173_v35  ;;  %v4389_v35 = vld [vmem:[%s6201_s13 + $0x40] ss:$8 sps:$4 sm:$0xff]   ;;  %v4394_v36 = vld [vmem:[%s6201_s13 + $0x54] ss:$8 sps:$4 sm:$0xff]  }
 0x35e   :  { %v1198_v40 = vpack.c.bf16 %v1176_v38, %v1174_v37  ;;  %v1128_v46 = vpop.f32.mrb[52].mxu0  ;;  %2335 = vmatpush1.bf16.msra.mxu1 %v4380_v29  ;;  %v4392_v37 = vld [vmem:[%s6201_s13 + $0x50] ss:$8 sps:$4 sm:$0xff]   ;;  %v4397_v38 = vld [vmem:[%s6201_s13 + $0x64] ss:$8 sps:$4 sm:$0xff]  }
 0x35f   :  { %v1129_v47 = vadd.f32 %v1128_v46, %v5419_v17  ;;  %v1130_v41 = vpop.f32.mrb[53].mxu0  ;;  %2336 = vmatprep.subr.bf16.mxu1 %v4385_v30  ;;  %v4398_v46 = vld [vmem:[%s6201_s13 + $0x70] ss:$8 sps:$4 sm:$0xff]  }
 0x360   :  { %v1131_v42 = vadd.f32 %v1130_v41, %v5426_v22  ;;  %v1132_v43 = vpop.f32.mrb[54].mxu0  ;;  %1481 = vmatprep.mubr.bf16.mxu1 %v1198_v40  ;;  %v4400_v40 = vld [vmem:[%s6201_s13 + $0x74] ss:$8 sps:$4 sm:$0xff]   ;;  %v4401_v41 = vld [vmem:[%s6201_s13 + $0x80] ss:$8 sps:$4 sm:$0xff]  }
 0x361   :  { %v1133_v44 = vadd.f32 %v1132_v43, %v5419_v17  ;;  %v1134_v45 = vpop.f32.mrb[55].mxu0  ;;  %1482 = vmatmul.mubr.bf16.gmra.mrb[48].mxu1 %v1197_v39  ;;  %v1177_v49 = vmax.f32 %v1129_v47, 0.0  ;;  %v4395_v39 = vld [vmem:[%s6201_s13 + $0x60] ss:$8 sps:$4 sm:$0xff]   ;;  %v4403_v47 = vld [vmem:[%s6201_s13 + $0x84] ss:$8 sps:$4 sm:$0xff]  }
 0x362   :  { %v1135_v48 = vadd.f32 %v1134_v45, %v5426_v22  ;;  %v1178_v51 = vmax.f32 %v1131_v42, 0.0  ;;  %2337 = vmatpush1.bf16.msra.mxu1 %v4383_v31  ;;  %v4406_v42 = vld [vmem:[%s6201_s13 + $0x94] ss:$8 sps:$4 sm:$0xff]   ;;  %v4404_v43 = vld [vmem:[%s6201_s13 + $0x90] ss:$8 sps:$4 sm:$0xff]  }
 0x363   :  { %v1179_v50 = vmax.f32 %v1133_v44, 0.0  ;;  %2338 = vmatprep.subr.bf16.mxu1 %v4388_v32  ;;  %v4409_v44 = vld [vmem:[%s6201_s13 + $0xa4] ss:$8 sps:$4 sm:$0xff]   ;;  %v4407_v45 = vld [vmem:[%s6201_s13 + $0xa0] ss:$8 sps:$4 sm:$0xff]  }
 0x364   :  { %v1180_v52 = vmax.f32 %v1135_v48, 0.0  ;;  %v4412_v48 = vld [vmem:[%s6201_s13 + $0xb4] ss:$8 sps:$4 sm:$0xff]  }
 0x365   :  { %v1199_v53 = vpack.c.bf16 %v1179_v50, %v1177_v49  ;;  %v4410_v49 = vld [vmem:[%s6201_s13 + $0xb0] ss:$8 sps:$4 sm:$0xff]   ;;  %v4415_v50 = vld [vmem:[%s6201_s13 + $0xc4] ss:$8 sps:$4 sm:$0xff]  }
 0x366   :  { %v1200_v54 = vpack.c.bf16 %v1180_v52, %v1178_v51  ;;  %v1138_v55 = vpop.f32.mrb[56].mxu0  ;;  %2339 = vmatpush1.bf16.msra.mxu1 %v4386_v33  ;;  %v4413_v51 = vld [vmem:[%s6201_s13 + $0xc0] ss:$8 sps:$4 sm:$0xff]   ;;  %v4418_v52 = vld [vmem:[%s6201_s13 + $0xd4] ss:$8 sps:$4 sm:$0xff]  }
 0x367   :  { %v1139_v56 = vadd.f32 %v1138_v55, %v5419_v17  ;;  %v1140_v57 = vpop.f32.mrb[57].mxu0  ;;  %2340 = vmatprep.subr.bf16.mxu1 %v4391_v34 }
 0x368   :  { %v1141_v58 = vadd.f32 %v1140_v57, %v5426_v22  ;;  %v1142_v59 = vpop.f32.mrb[58].mxu0  ;;  %1491 = vmatprep.mubr.bf16.mxu1 %v1200_v54  ;;  %v1237_v54 = vld [vmem:[#allocation9] sm:$0x3] }
 0x369   :  { %v1143_v60 = vadd.f32 %v1142_v59, %v5419_v17  ;;  %v1144_v61 = vpop.f32.mrb[59].mxu0  ;;  %1492 = vmatmul.mubr.bf16.gmra.mrb[52].mxu1 %v1199_v53  ;;  %v1181_v63 = vmax.f32 %v1139_v56, 0.0  ;;  %v4416_v53 = vld [vmem:[%s6201_s13 + $0xd0] ss:$8 sps:$4 sm:$0xff]   ;;  %v5582_v55 = vrot.slane %v1237_v54, %v5135_v16  ;;  %v5585_v56 = vrot.slane %v1237_v54, %v5137_v18 }
 0x36a   :  { %v1145_v62 = vadd.f32 %v1144_v61, %v5426_v22  ;;  %v1182_v2 = vmax.f32 %v1141_v58, 0.0  ;;  %2341 = vmatpush1.bf16.msra.mxu1 %v4389_v35 }
 0x36b   :  { %v1183_v1 = vmax.f32 %v1143_v60, 0.0  ;;  %2342 = vmatprep.subr.bf16.mxu1 %v4394_v36 }
 0x36c   :  { %v1184_v3 = vmax.f32 %v1145_v62, 0.0 }
 0x36d   :  { %v1201_v4 = vpack.c.bf16 %v1183_v1, %v1181_v63 }
 0x36e   :  { %v1202_v5 = vpack.c.bf16 %v1184_v3, %v1182_v2  ;;  %v1148_v6 = vpop.f32.mrb[60].mxu0  ;;  %2343 = vmatpush1.bf16.msra.mxu1 %v4392_v37 }
 0x36f   :  { %v1149_v7 = vadd.f32 %v1148_v6, %v5419_v17  ;;  %v1150_v8 = vpop.f32.mrb[61].mxu0  ;;  %2344 = vmatprep.subr.bf16.mxu1 %v4397_v38 }
 0x370   :  { %v1151_v9 = vadd.f32 %v1150_v8, %v5426_v22  ;;  %v1152_v10 = vpop.f32.mrb[62].mxu0  ;;  %1501 = vmatprep.mubr.bf16.mxu1 %v1202_v5 }
 0x371   :  { %v1153_v11 = vadd.f32 %v1152_v10, %v5419_v17  ;;  %v1154_v19 = vpop.f32.mrb[63].mxu0  ;;  %1502 = vmatmul.mubr.bf16.gmra.mrb[56].mxu1 %v1201_v4  ;;  %v1185_v12 = vmax.f32 %v1149_v7, 0.0  ;;  %v4371_v17 = vld [vmem:[%s6198_s10 + $0xe0] ss:$8 sps:$4 sm:$0xff]  }
 0x372   :  { %v1155_v20 = vadd.f32 %v1154_v19, %v5426_v22  ;;  %v1186_v14 = vmax.f32 %v1151_v9, 0.0  ;;  %1952 = vmatpush1.bf16.msra.mxu0 %v4371_v17  ;;  %v4376_v22 = vld [vmem:[%s6198_s10 + $0xf4] ss:$8 sps:$4 sm:$0xff]   ;;  %2345 = vmatpush1.bf16.msra.mxu1 %v4395_v39 }
 0x373   :  { %v1187_v13 = vmax.f32 %v1153_v11, 0.0  ;;  %1953 = vmatprep.subr.bf16.mxu0 %v4376_v22  ;;  %2346 = vmatprep.subr.bf16.mxu1 %v4400_v40 }
 0x374   :  { %v1188_v15 = vmax.f32 %v1155_v20, 0.0 }
 0x375   :  { %v1203_v21 = vpack.c.bf16 %v1187_v13, %v1185_v12 }
 0x376   :  { %v1204_v23 = vpack.c.bf16 %v1188_v15, %v1186_v14  ;;  %1954 = vmatpush1.bf16.msra.mxu0 %v4374_v25  ;;  %2347 = vmatpush1.bf16.msra.mxu1 %v4398_v46 }
 0x377   :  { %2348 = vmatprep.subr.bf16.mxu1 %v4403_v47 }
 0x378   :  { %1511 = vmatprep.mubr.bf16.mxu1 %v1204_v23 }
 0x379   :  { %1512 = vmatmul.mubr.bf16.gmra.mrb[60].mxu1 %v1203_v21 }
 0x37a   :  { %2349 = vmatpush1.bf16.msra.mxu1 %v4401_v41 }
 0x37b   :  { %2350 = vmatprep.subr.bf16.mxu1 %v4406_v42 }
 0x37e   :  { %2351 = vmatpush1.bf16.msra.mxu1 %v4404_v43 }
 0x37f   :  { %2352 = vmatprep.subr.bf16.mxu1 %v4409_v44 }
 0x382   :  { %2353 = vmatpush1.bf16.msra.mxu1 %v4407_v45 }
 0x383   :  { %2354 = vmatprep.subr.bf16.mxu1 %v4412_v48 }
 0x386   :  { %2355 = vmatpush1.bf16.msra.mxu1 %v4410_v49 }
 0x387   :  { %2356 = vmatprep.subr.bf16.mxu1 %v4415_v50 }
 0x38a   :  { %2357 = vmatpush1.bf16.msra.mxu1 %v4413_v51 }
 0x38b   :  { %2358 = vmatprep.subr.bf16.mxu1 %v4418_v52 }
 0x38e   :  { %2359 = vmatpush1.bf16.msra.mxu1 %v4416_v53 }
 0x414   :  { %v1443_v57 = vpop.f32.mrb[32].mxu1 }
 0x415   :  { %v1444_v58 = vadd.f32 %v1443_v57, %v5582_v55  ;;  %v1445_v59 = vpop.f32.mrb[33].mxu1 }
 0x416   :  { %v1446_v60 = vadd.f32 %v1445_v59, %v5585_v56  ;;  %v1447_v61 = vpop.f32.mrb[34].mxu1 }
 0x417   :  { %v1448_v62 = vadd.f32 %v1447_v61, %v5582_v55  ;;  %v1449_v63 = vpop.f32.mrb[35].mxu1  ;;  %v1522_v2 = vmax.f32 %v1444_v58, 0.0 }
 0x418   :  { %v1450_v1 = vadd.f32 %v1449_v63, %v5585_v56  ;;  %v1523_v4 = vmax.f32 %v1446_v60, 0.0 }
 0x419   :  { %v1524_v3 = vmax.f32 %v1448_v62, 0.0 }
 0x41a   :  { %v1525_v5 = vmax.f32 %v1450_v1, 0.0 }
 0x41b   :  { %v1554_v6 = vpack.c.bf16 %v1524_v3, %v1522_v2 }
 0x41c   :  { %v1555_v7 = vpack.c.bf16 %v1525_v5, %v1523_v4  ;;  %v1453_v8 = vpop.f32.mrb[36].mxu1 }
 0x41d   :  { %v1454_v9 = vadd.f32 %v1453_v8, %v5582_v55  ;;  %v1455_v10 = vpop.f32.mrb[37].mxu1 }
 0x41e   :  { %v1456_v11 = vadd.f32 %v1455_v10, %v5585_v56  ;;  %v1457_v19 = vpop.f32.mrb[38].mxu1  ;;  %1955 = vmatprep.mubr.bf16.mxu0 %v1555_v7 }
 0x41f   :  { %v1458_v20 = vadd.f32 %v1457_v19, %v5582_v55  ;;  %v1459_v12 = vpop.f32.mrb[39].mxu1  ;;  %1956 = vmatmul.mubr.bf16.vlgmr.msra.gmra.mrb[64].mxu0 %v1554_v6  ;;  %v1526_v14 = vmax.f32 %v1454_v9, 0.0 }
 0x420   :  { %v1460_v13 = vadd.f32 %v1459_v12, %v5585_v56  ;;  %v1527_v21 = vmax.f32 %v1456_v11, 0.0 }
 0x421   :  { %v1528_v15 = vmax.f32 %v1458_v20, 0.0 }
 0x422   :  { %v1529_v23 = vmax.f32 %v1460_v13, 0.0 }
 0x423   :  { %v1556_v24 = vpack.c.bf16 %v1528_v15, %v1526_v14 }
 0x424   :  { %v1557_v17 = vpack.c.bf16 %v1529_v23, %v1527_v21  ;;  %v1463_v22 = vpop.f32.mrb[40].mxu1 }
 0x425   :  { %v1464_v25 = vadd.f32 %v1463_v22, %v5582_v55  ;;  %v1465_v26 = vpop.f32.mrb[41].mxu1 }
 0x426   :  { %v1466_v27 = vadd.f32 %v1465_v26, %v5585_v56  ;;  %v1467_v28 = vpop.f32.mrb[42].mxu1  ;;  %1965 = vmatprep.mubr.bf16.mxu0 %v1557_v17 }
 0x427   :  { %v1468_v29 = vadd.f32 %v1467_v28, %v5582_v55  ;;  %v1469_v30 = vpop.f32.mrb[43].mxu1  ;;  %1966 = vmatmul.mubr.bf16.gmra.mrb[68].mxu0 %v1556_v24  ;;  %v1530_v32 = vmax.f32 %v1464_v25, 0.0 }
 0x428   :  { %v1470_v31 = vadd.f32 %v1469_v30, %v5585_v56  ;;  %v1531_v34 = vmax.f32 %v1466_v27, 0.0 }
 0x429   :  { %v1532_v33 = vmax.f32 %v1468_v29, 0.0 }
 0x42a   :  { %v1533_v35 = vmax.f32 %v1470_v31, 0.0 }
 0x42b   :  { %v1558_v36 = vpack.c.bf16 %v1532_v33, %v1530_v32 }
 0x42c   :  { %v1559_v37 = vpack.c.bf16 %v1533_v35, %v1531_v34  ;;  %v1473_v38 = vpop.f32.mrb[44].mxu1 }
 0x42d   :  { %v1474_v39 = vadd.f32 %v1473_v38, %v5582_v55  ;;  %v1475_v40 = vpop.f32.mrb[45].mxu1 }
 0x42e   :  { %v1476_v46 = vadd.f32 %v1475_v40, %v5585_v56  ;;  %v1477_v47 = vpop.f32.mrb[46].mxu1  ;;  %1975 = vmatprep.mubr.bf16.mxu0 %v1559_v37 }
 0x42f   :  { %v1478_v41 = vadd.f32 %v1477_v47, %v5582_v55  ;;  %v1479_v42 = vpop.f32.mrb[47].mxu1  ;;  %1976 = vmatmul.mubr.bf16.gmra.mrb[72].mxu0 %v1558_v36  ;;  %v1534_v44 = vmax.f32 %v1474_v39, 0.0 }
 0x430   :  { %v1480_v43 = vadd.f32 %v1479_v42, %v5585_v56  ;;  %v1535_v48 = vmax.f32 %v1476_v46, 0.0 }
 0x431   :  { %v1536_v45 = vmax.f32 %v1478_v41, 0.0 }
 0x432   :  { %v1537_v49 = vmax.f32 %v1480_v43, 0.0 }
 0x433   :  { %v1560_v50 = vpack.c.bf16 %v1536_v45, %v1534_v44 }
 0x434   :  { %v1561_v51 = vpack.c.bf16 %v1537_v49, %v1535_v48  ;;  %v1483_v52 = vpop.f32.mrb[48].mxu1  ;;  %v4421_v49 = vld [vmem:[%s6201_s13 + $0xe4] ss:$8 sps:$4 sm:$0xff]  }
 0x435   :  { %v1484_v53 = vadd.f32 %v1483_v52, %v5582_v55  ;;  %v1485_v54 = vpop.f32.mrb[49].mxu1  ;;  %2360 = vmatprep.subr.bf16.mxu1 %v4421_v49  ;;  %v2036_v52 = vld [vmem:[#allocation12] sm:$0x3] }
 0x436   :  { %v1486_v57 = vadd.f32 %v1485_v54, %v5585_v56  ;;  %v1487_v58 = vpop.f32.mrb[50].mxu1  ;;  %1985 = vmatprep.mubr.bf16.mxu0 %v1561_v51  ;;  %v4427_v51 = vld [vmem:[%s6203_s15 + $0x4] ss:$8 sps:$4 sm:$0xff]   ;;  %v5639_v54 = vrot.slane %v2036_v52, %v5137_v18 }
 0x437   :  { %v1488_v59 = vadd.f32 %v1487_v58, %v5582_v55  ;;  %v1489_v60 = vpop.f32.mrb[51].mxu1  ;;  %1986 = vmatmul.mubr.bf16.gmra.mrb[76].mxu0 %v1560_v50  ;;  %v1538_v62 = vmax.f32 %v1484_v53, 0.0  ;;  %v4422_v50 = vld [vmem:[%s6201_s13 + $0xf0] ss:$8 sps:$4 sm:$0xff]   ;;  %v5636_v53 = vrot.slane %v2036_v52, %v5135_v16 }
 0x438   :  { %v1490_v61 = vadd.f32 %v1489_v60, %v5585_v56  ;;  %v1539_v1 = vmax.f32 %v1486_v57, 0.0 }
 0x439   :  { %v1540_v63 = vmax.f32 %v1488_v59, 0.0 }
 0x43a   :  { %v1541_v2 = vmax.f32 %v1490_v61, 0.0 }
 0x43b   :  { %v1562_v3 = vpack.c.bf16 %v1540_v63, %v1538_v62 }
 0x43c   :  { %v1563_v4 = vpack.c.bf16 %v1541_v2, %v1539_v1  ;;  %v1493_v5 = vpop.f32.mrb[52].mxu1 }
 0x43d   :  { %v1494_v6 = vadd.f32 %v1493_v5, %v5582_v55  ;;  %v1495_v7 = vpop.f32.mrb[53].mxu1 }
 0x43e   :  { %v1496_v8 = vadd.f32 %v1495_v7, %v5585_v56  ;;  %v1497_v9 = vpop.f32.mrb[54].mxu1  ;;  %1995 = vmatprep.mubr.bf16.mxu0 %v1563_v4 }
 0x43f   :  { %v1498_v10 = vadd.f32 %v1497_v9, %v5582_v55  ;;  %v1499_v11 = vpop.f32.mrb[55].mxu1  ;;  %1996 = vmatmul.mubr.bf16.gmra.mrb[80].mxu0 %v1562_v3  ;;  %v1542_v20 = vmax.f32 %v1494_v6, 0.0  ;;  %v4425_v9 = vld [vmem:[%s6203_s15] ss:$8 sps:$4 sm:$0xff]  }
 0x440   :  { %v1500_v19 = vadd.f32 %v1499_v11, %v5585_v56  ;;  %v1543_v13 = vmax.f32 %v1496_v8, 0.0 }
 0x441   :  { %v1544_v12 = vmax.f32 %v1498_v10, 0.0 }
 0x442   :  { %v1545_v14 = vmax.f32 %v1500_v19, 0.0  ;;  %v4430_v19 = vld [vmem:[%s6203_s15 + $0x14] ss:$8 sps:$4 sm:$0xff]  }
 0x443   :  { %v1564_v15 = vpack.c.bf16 %v1544_v12, %v1542_v20 }
 0x444   :  { %v1565_v21 = vpack.c.bf16 %v1545_v14, %v1543_v13  ;;  %v1503_v23 = vpop.f32.mrb[56].mxu1 }
 0x445   :  { %v1504_v24 = vadd.f32 %v1503_v23, %v5582_v55  ;;  %v1505_v17 = vpop.f32.mrb[57].mxu1 }
 0x446   :  { %v1506_v22 = vadd.f32 %v1505_v17, %v5585_v56  ;;  %v1507_v25 = vpop.f32.mrb[58].mxu1  ;;  %2005 = vmatprep.mubr.bf16.mxu0 %v1565_v21  ;;  %v4428_v21 = vld [vmem:[%s6203_s15 + $0x10] ss:$8 sps:$4 sm:$0xff]   ;;  %v4433_v17 = vld [vmem:[%s6203_s15 + $0x24] ss:$8 sps:$4 sm:$0xff]  }
 0x447   :  { %v1508_v26 = vadd.f32 %v1507_v25, %v5582_v55  ;;  %v1509_v27 = vpop.f32.mrb[59].mxu1  ;;  %2006 = vmatmul.mubr.bf16.gmra.mrb[84].mxu0 %v1564_v15  ;;  %v1546_v29 = vmax.f32 %v1504_v24, 0.0 }
 0x448   :  { %v1510_v28 = vadd.f32 %v1509_v27, %v5585_v56  ;;  %v1547_v31 = vmax.f32 %v1506_v22, 0.0 }
 0x449   :  { %v1548_v30 = vmax.f32 %v1508_v26, 0.0 }
 0x44a   :  { %v1549_v32 = vmax.f32 %v1510_v28, 0.0 }
 0x44b   :  { %v1566_v33 = vpack.c.bf16 %v1548_v30, %v1546_v29  ;;  %v4431_v29 = vld [vmem:[%s6203_s15 + $0x20] ss:$8 sps:$4 sm:$0xff]  }
 0x44c   :  { %v1567_v34 = vpack.c.bf16 %v1549_v32, %v1547_v31  ;;  %v1513_v35 = vpop.f32.mrb[60].mxu1  ;;  %v4436_v32 = vld [vmem:[%s6203_s15 + $0x34] ss:$8 sps:$4 sm:$0xff]  }
 0x44d   :  { %v1514_v36 = vadd.f32 %v1513_v35, %v5582_v55  ;;  %v1515_v37 = vpop.f32.mrb[61].mxu1 }
 0x44e   :  { %v1516_v38 = vadd.f32 %v1515_v37, %v5585_v56  ;;  %v1517_v39 = vpop.f32.mrb[62].mxu1  ;;  %2015 = vmatprep.mubr.bf16.mxu0 %v1567_v34 }
 0x44f   :  { %v1518_v40 = vadd.f32 %v1517_v39, %v5582_v55  ;;  %v1519_v46 = vpop.f32.mrb[63].mxu1  ;;  %2016 = vmatmul.mubr.bf16.gmra.mrb[88].mxu0 %v1566_v33  ;;  %v1550_v41 = vmax.f32 %v1514_v36, 0.0  ;;  %v4419_v55 = vld [vmem:[%s6201_s13 + $0xe0] ss:$8 sps:$4 sm:$0xff]  }
 0x450   :  { %v1520_v47 = vadd.f32 %v1519_v46, %v5585_v56  ;;  %v1551_v43 = vmax.f32 %v1516_v38, 0.0  ;;  %2361 = vmatpush1.bf16.msra.mxu1 %v4419_v55  ;;  %v4424_v56 = vld [vmem:[%s6201_s13 + $0xf4] ss:$8 sps:$4 sm:$0xff]   ;;  %v4434_v38 = vld [vmem:[%s6203_s15 + $0x30] ss:$8 sps:$4 sm:$0xff]  }
 0x451   :  { %v1552_v42 = vmax.f32 %v1518_v40, 0.0  ;;  %2362 = vmatprep.subr.bf16.mxu1 %v4424_v56  ;;  %v4439_v46 = vld [vmem:[%s6203_s15 + $0x44] ss:$8 sps:$4 sm:$0xff]   ;;  %v4442_v55 = vld [vmem:[%s6203_s15 + $0x54] ss:$8 sps:$4 sm:$0xff]  }
 0x452   :  { %v1553_v44 = vmax.f32 %v1520_v47, 0.0 }
 0x453   :  { %v1568_v45 = vpack.c.bf16 %v1552_v42, %v1550_v41 }
 0x454   :  { %v1569_v48 = vpack.c.bf16 %v1553_v44, %v1551_v43  ;;  %2363 = vmatpush1.bf16.msra.mxu1 %v4422_v50 }
 0x455   :  { %2697 = vmatprep.subr.bf16.mxu1 %v4427_v51 }
 0x456   :  { %2025 = vmatprep.mubr.bf16.mxu0 %v1569_v48 }
 0x457   :  { %2026 = vmatmul.mubr.bf16.gmra.mrb[92].mxu0 %v1568_v45  ;;  %v4437_v45 = vld [vmem:[%s6203_s15 + $0x40] ss:$8 sps:$4 sm:$0xff]  }
 0x458   :  { %3011 = vmatprep.mubr.bf16.mxu0 %v4706_v0 }
 0x4f2   :  { %v1957_v57 = vpop.f32.mrb[64].mxu0 }
 0x4f3   :  { %v2048_v58 = vadd.f32 %v5636_v53, %v1957_v57  ;;  %v1959_v59 = vpop.f32.mrb[65].mxu0 }
 0x4f4   :  { %v2049_v60 = vadd.f32 %v5639_v54, %v1959_v59  ;;  %v1961_v61 = vpop.f32.mrb[66].mxu0 }
 0x4f5   :  { %v2050_v62 = vadd.f32 %v5636_v53, %v1961_v61  ;;  %v1963_v63 = vpop.f32.mrb[67].mxu0  ;;  %v2080_v2 = vmax.f32 %v2048_v58, 0.0  ;;  %v4440_v58 = vld [vmem:[%s6203_s15 + $0x50] ss:$8 sps:$4 sm:$0xff]   ;;  %v4445_v61 = vld [vmem:[%s6203_s15 + $0x64] ss:$8 sps:$4 sm:$0xff]  }
 0x4f6   :  { %v2051_v1 = vadd.f32 %v5639_v54, %v1963_v63  ;;  %v2081_v4 = vmax.f32 %v2049_v60, 0.0 }
 0x4f7   :  { %v2082_v3 = vmax.f32 %v2050_v62, 0.0 }
 0x4f8   :  { %v2083_v5 = vmax.f32 %v2051_v1, 0.0 }
 0x4f9   :  { %v2112_v6 = vpack.c.bf16 %v2082_v3, %v2080_v2 }
 0x4fa   :  { %v2113_v7 = vpack.c.bf16 %v2083_v5, %v2081_v4  ;;  %v1967_v8 = vpop.f32.mrb[68].mxu0  ;;  %v4443_v4 = vld [vmem:[%s6203_s15 + $0x60] ss:$8 sps:$4 sm:$0xff]  }
 0x4fb   :  { %v2052_v10 = vadd.f32 %v5636_v53, %v1967_v8  ;;  %v1969_v11 = vpop.f32.mrb[69].mxu0 }
 0x4fc   :  { %v2053_v20 = vadd.f32 %v5639_v54, %v1969_v11  ;;  %v1971_v12 = vpop.f32.mrb[70].mxu0  ;;  %2364 = vmatprep.mubr.bf16.mxu1 %v2113_v7  ;;  %v4448_v7 = vld [vmem:[%s6203_s15 + $0x74] ss:$8 sps:$4 sm:$0xff]  }
 0x4fd   :  { %v2054_v13 = vadd.f32 %v5636_v53, %v1971_v12  ;;  %v1973_v14 = vpop.f32.mrb[71].mxu0  ;;  %2365 = vmatmul.mubr.bf16.vlgmr.msra.gmra.mrb[64].mxu1 %v2112_v6  ;;  %v2084_v23 = vmax.f32 %v2052_v10, 0.0 }
 0x4fe   :  { %v2055_v15 = vadd.f32 %v5639_v54, %v1973_v14  ;;  %2698 = vmatpush1.bf16.msra.mxu1 %v4425_v9  ;;  %v2085_v22 = vmax.f32 %v2053_v20, 0.0  ;;  %v4446_v20 = vld [vmem:[%s6203_s15 + $0x70] ss:$8 sps:$4 sm:$0xff]   ;;  %v4451_v14 = vld [vmem:[%s6203_s15 + $0x84] ss:$8 sps:$4 sm:$0xff]  }
 0x4ff   :  { %v2086_v24 = vmax.f32 %v2054_v13, 0.0  ;;  %2699 = vmatprep.subr.bf16.mxu1 %v4430_v19 }
 0x500   :  { %v2087_v25 = vmax.f32 %v2055_v15, 0.0 }
 0x501   :  { %v2114_v26 = vpack.c.bf16 %v2086_v24, %v2084_v23 }
 0x502   :  { %v2115_v27 = vpack.c.bf16 %v2087_v25, %v2085_v22  ;;  %v1977_v28 = vpop.f32.mrb[72].mxu0  ;;  %2700 = vmatpush1.bf16.msra.mxu1 %v4428_v21  ;;  %v4449_v22 = vld [vmem:[%s6203_s15 + $0x80] ss:$8 sps:$4 sm:$0xff]  }
 0x503   :  { %v2056_v30 = vadd.f32 %v5636_v53, %v1977_v28  ;;  %v1979_v31 = vpop.f32.mrb[73].mxu0  ;;  %2701 = vmatprep.subr.bf16.mxu1 %v4433_v17 }
 0x504   :  { %v2057_v33 = vadd.f32 %v5639_v54, %v1979_v31  ;;  %v1981_v34 = vpop.f32.mrb[74].mxu0  ;;  %2374 = vmatprep.mubr.bf16.mxu1 %v2115_v27  ;;  %v4454_v27 = vld [vmem:[%s6203_s15 + $0x94] ss:$8 sps:$4 sm:$0xff]  }
 0x505   :  { %v2058_v35 = vadd.f32 %v5636_v53, %v1981_v34  ;;  %v1983_v36 = vpop.f32.mrb[75].mxu0  ;;  %2375 = vmatmul.mubr.bf16.gmra.mrb[68].mxu1 %v2114_v26  ;;  %v2088_v39 = vmax.f32 %v2056_v30, 0.0 }
 0x506   :  { %v2059_v37 = vadd.f32 %v5639_v54, %v1983_v36  ;;  %2702 = vmatpush1.bf16.msra.mxu1 %v4431_v29  ;;  %v2089_v47 = vmax.f32 %v2057_v33, 0.0  ;;  %v4452_v33 = vld [vmem:[%s6203_s15 + $0x90] ss:$8 sps:$4 sm:$0xff]   ;;  %v4457_v36 = vld [vmem:[%s6203_s15 + $0xa4] ss:$8 sps:$4 sm:$0xff]  }
 0x507   :  { %v2090_v40 = vmax.f32 %v2058_v35, 0.0  ;;  %2703 = vmatprep.subr.bf16.mxu1 %v4436_v32 }
 0x508   :  { %v2091_v41 = vmax.f32 %v2059_v37, 0.0 }
 0x509   :  { %v2116_v42 = vpack.c.bf16 %v2090_v40, %v2088_v39 }
 0x50a   :  { %v2117_v43 = vpack.c.bf16 %v2091_v41, %v2089_v47  ;;  %v1987_v44 = vpop.f32.mrb[76].mxu0  ;;  %2704 = vmatpush1.bf16.msra.mxu1 %v4434_v38  ;;  %v4455_v47 = vld [vmem:[%s6203_s15 + $0xa0] ss:$8 sps:$4 sm:$0xff]  }
 0x50b   :  { %v2060_v48 = vadd.f32 %v5636_v53, %v1987_v44  ;;  %v1989_v49 = vpop.f32.mrb[77].mxu0  ;;  %2705 = vmatprep.subr.bf16.mxu1 %v4439_v46 }
 0x50c   :  { %v2061_v56 = vadd.f32 %v5639_v54, %v1989_v49  ;;  %v1991_v50 = vpop.f32.mrb[78].mxu0  ;;  %2384 = vmatprep.mubr.bf16.mxu1 %v2117_v43  ;;  %v4460_v43 = vld [vmem:[%s6203_s15 + $0xb4] ss:$8 sps:$4 sm:$0xff]  }
 0x50d   :  { %v2062_v51 = vadd.f32 %v5636_v53, %v1991_v50  ;;  %v1993_v52 = vpop.f32.mrb[79].mxu0  ;;  %2385 = vmatmul.mubr.bf16.gmra.mrb[72].mxu1 %v2116_v42  ;;  %v2092_v59 = vmax.f32 %v2060_v48, 0.0 }
 0x50e   :  { %v2063_v57 = vadd.f32 %v5639_v54, %v1993_v52  ;;  %2706 = vmatpush1.bf16.msra.mxu1 %v4437_v45  ;;  %v2093_v62 = vmax.f32 %v2061_v56, 0.0  ;;  %v4458_v56 = vld [vmem:[%s6203_s15 + $0xb0] ss:$8 sps:$4 sm:$0xff]   ;;  %v4463_v52 = vld [vmem:[%s6203_s15 + $0xc4] ss:$8 sps:$4 sm:$0xff]  }
 0x50f   :  { %v2094_v60 = vmax.f32 %v2062_v51, 0.0  ;;  %2707 = vmatprep.subr.bf16.mxu1 %v4442_v55 }
 0x510   :  { %v2095_v63 = vmax.f32 %v2063_v57, 0.0 }
 0x511   :  { %v2118_v1 = vpack.c.bf16 %v2094_v60, %v2092_v59 }
 0x512   :  { %v2119_v2 = vpack.c.bf16 %v2095_v63, %v2093_v62  ;;  %v1997_v3 = vpop.f32.mrb[80].mxu0  ;;  %2708 = vmatpush1.bf16.msra.mxu1 %v4440_v58  ;;  %v4461_v62 = vld [vmem:[%s6203_s15 + $0xc0] ss:$8 sps:$4 sm:$0xff]  }
 0x513   :  { %v2064_v5 = vadd.f32 %v5636_v53, %v1997_v3  ;;  %v1999_v6 = vpop.f32.mrb[81].mxu0  ;;  %2709 = vmatprep.subr.bf16.mxu1 %v4445_v61 }
 0x514   :  { %v2065_v8 = vadd.f32 %v5639_v54, %v1999_v6  ;;  %v2001_v9 = vpop.f32.mrb[82].mxu0  ;;  %2394 = vmatprep.mubr.bf16.mxu1 %v2119_v2  ;;  %v4466_v2 = vld [vmem:[%s6203_s15 + $0xd4] ss:$8 sps:$4 sm:$0xff]  }
 0x515   :  { %v2066_v10 = vadd.f32 %v5636_v53, %v2001_v9  ;;  %v2003_v11 = vpop.f32.mrb[83].mxu0  ;;  %2395 = vmatmul.mubr.bf16.gmra.mrb[76].mxu1 %v2118_v1  ;;  %v2096_v12 = vmax.f32 %v2064_v5, 0.0 }
 0x516   :  { %v2067_v19 = vadd.f32 %v5639_v54, %v2003_v11  ;;  %2710 = vmatpush1.bf16.msra.mxu1 %v4443_v4  ;;  %v2097_v15 = vmax.f32 %v2065_v8, 0.0  ;;  %v4464_v8 = vld [vmem:[%s6203_s15 + $0xd0] ss:$8 sps:$4 sm:$0xff]  }
 0x517   :  { %v2098_v13 = vmax.f32 %v2066_v10, 0.0  ;;  %2711 = vmatprep.subr.bf16.mxu1 %v4448_v7 }
 0x518   :  { %v2099_v21 = vmax.f32 %v2067_v19, 0.0 }
 0x519   :  { %v2120_v23 = vpack.c.bf16 %v2098_v13, %v2096_v12  ;;  %v4472_v13 = vld [vmem:[%s6203_s15 + $0xf4] ss:$8 sps:$4 sm:$0xff]  }
 0x51a   :  { %v2121_v24 = vpack.c.bf16 %v2099_v21, %v2097_v15  ;;  %v2007_v17 = vpop.f32.mrb[84].mxu0  ;;  %2712 = vmatpush1.bf16.msra.mxu1 %v4446_v20  ;;  %v4473_v15 = vld [vmem:[%s6206_s18] ss:$8 sps:$4 sm:$0xff]   ;;  %v4475_v21 = vld [vmem:[%s6206_s18 + $0x4] ss:$8 sps:$4 sm:$0xff]  }
 0x51b   :  { %v2068_v25 = vadd.f32 %v5636_v53, %v2007_v17  ;;  %v2009_v26 = vpop.f32.mrb[85].mxu0  ;;  %2713 = vmatprep.subr.bf16.mxu1 %v4451_v14  ;;  %v4470_v14 = vld [vmem:[%s6203_s15 + $0xf0] ss:$8 sps:$4 sm:$0xff]   ;;  %2979 = vmatprep.subr.bf16.mxu0 %v4475_v21 }
 0x51c   :  { %v2069_v28 = vadd.f32 %v5639_v54, %v2009_v26  ;;  %v2011_v29 = vpop.f32.mrb[86].mxu0  ;;  %2404 = vmatprep.mubr.bf16.mxu1 %v2121_v24  ;;  %v4015_v24 = vld [vmem:[%s6233_s0] sm:$0xff]   ;;  %2980 = vmatpush1.bf16.msra.mxu0 %v4473_v15  ;;  %v4476_v17 = vld [vmem:[%s6206_s18 + $0x10] ss:$8 sps:$4 sm:$0xff]   ;;  %v4046_v26 = vld [vmem:[%s6233_s0 + $0x8] sm:$0xff]  }
 0x51d   :  { %v2070_v30 = vadd.f32 %v5636_v53, %v2011_v29  ;;  %v2013_v31 = vpop.f32.mrb[87].mxu0  ;;  %2405 = vmatmul.mubr.bf16.gmra.mrb[80].mxu1 %v2120_v23  ;;  %v2100_v34 = vmax.f32 %v2068_v25, 0.0  ;;  %v4478_v23 = vld [vmem:[%s6206_s18 + $0x14] ss:$8 sps:$4 sm:$0xff]   ;;  %v4017_v25 = vunpack.c.h.bf16 %v4015_v24 }
 0x51e   :  { %v2071_v32 = vadd.f32 %v5639_v54, %v2013_v31  ;;  %2714 = vmatpush1.bf16.msra.mxu1 %v4449_v22  ;;  %v2101_v37 = vmax.f32 %v2069_v28, 0.0  ;;  %v4016_v22 = vunpack.c.l.bf16 %v4015_v24  ;;  %2981 = vmatprep.subr.bf16.mxu0 %v4478_v23  ;;  %v4021_v31 = vunpack.c.h.bf16 %v4046_v26  ;;  %v4509_v24 = vld [vmem:[%s6205_s17 + $0xa0] ss:$8 sps:$4 sm:$0xff]  }
 0x51f   :  { %v2102_v35 = vmax.f32 %v2070_v30, 0.0  ;;  %2715 = vmatprep.subr.bf16.mxu1 %v4454_v27  ;;  %v4481_v27 = vld [vmem:[%s6205_s17 + $0x4] ss:$8 sps:$4 sm:$0xff]   ;;  %v2859_v29 = vmax.f32 %v4017_v25, 0.0  ;;  %v4020_v30 = vunpack.c.l.bf16 %v4046_v26  ;;  %v4512_v26 = vld [vmem:[%s6205_s17 + $0xb0] ss:$8 sps:$4 sm:$0xff]  }
 0x520   :  { %v2103_v38 = vmax.f32 %v2071_v32, 0.0  ;;  %v2858_v28 = vmax.f32 %v4016_v22, 0.0  ;;  %2982 = vmatpush1.bf16.msra.mxu0 %v4476_v17  ;;  %v4479_v32 = vld [vmem:[%s6205_s17] ss:$8 sps:$4 sm:$0xff]   ;;  %v4514_v17 = vld [vmem:[%s6205_s17 + $0xb4] ss:$8 sps:$4 sm:$0xff]  }
 0x521   :  { %v2122_v39 = vpack.c.bf16 %v2102_v35, %v2100_v34  ;;  %3252 = vmatprep.subr.bf16.mxu0 %v4481_v27  ;;  %v4484_v34 = vld [vmem:[%s6205_s17 + $0x14] ss:$8 sps:$4 sm:$0xff]   ;;  %v2860_v35 = vmax.f32 %v4020_v30, 0.0  ;;  %v4517_v27 = vld [vmem:[%s6205_s17 + $0xc4] ss:$8 sps:$4 sm:$0xff]  }
 0x522   :  { %v2123_v40 = vpack.c.bf16 %v2103_v38, %v2101_v37  ;;  %v2017_v46 = vpop.f32.mrb[88].mxu0  ;;  %2716 = vmatpush1.bf16.msra.mxu1 %v4452_v33  ;;  %v2874_v33 = vpack.c.bf16 %v2859_v29, %v2858_v28  ;;  %v4482_v37 = vld [vmem:[%s6205_s17 + $0x10] ss:$8 sps:$4 sm:$0xff]   ;;  %v2160_v29 = vld [vmem:[%s6202_s14] sm:$0x3] }
 0x523   :  { %v2072_v41 = vadd.f32 %v5636_v53, %v2017_v46  ;;  %v2019_v42 = vpop.f32.mrb[89].mxu0  ;;  %2717 = vmatprep.subr.bf16.mxu1 %v4457_v36  ;;  %v2861_v36 = vmax.f32 %v4021_v31, 0.0  ;;  %v4047_v38 = vld [vmem:[%s6233_s0 + $0x10] sm:$0xff]   ;;  %v4515_v30 = vld [vmem:[%s6205_s17 + $0xc0] ss:$8 sps:$4 sm:$0xff]  }
 0x524   :  { %v2073_v44 = vadd.f32 %v5639_v54, %v2019_v42  ;;  %v2021_v45 = vpop.f32.mrb[90].mxu0  ;;  %2414 = vmatprep.mubr.bf16.mxu1 %v2123_v40  ;;  %3957 = vmatmul.mubr.msk.bf16.vlgmr.msra.gmra.mrb[96].mxu0 %vm2954_vm1, %v2874_v33  ;;  %v4024_v46 = vunpack.c.l.bf16 %v4047_v38  ;;  %v4490_v42 = vld [vmem:[%s6205_s17 + $0x34] ss:$8 sps:$4 sm:$0xff]   ;;  %v5900_v33 = vrot.slane %v2160_v29, %v5137_v18 }
 0x525   :  { %v2074_v48 = vadd.f32 %v5636_v53, %v2021_v45  ;;  %v2023_v49 = vpop.f32.mrb[91].mxu0  ;;  %2415 = vmatmul.mubr.bf16.gmra.mrb[84].mxu1 %v2122_v39  ;;  %v2104_v50 = vmax.f32 %v2072_v41, 0.0  ;;  %3253 = vmatpush1.bf16.msra.mxu0 %v4479_v32  ;;  %v4487_v39 = vld [vmem:[%s6205_s17 + $0x24] ss:$8 sps:$4 sm:$0xff]   ;;  %v2875_v40 = vpack.c.bf16 %v2861_v36, %v2860_v35  ;;  %v4485_v41 = vld [vmem:[%s6205_s17 + $0x20] ss:$8 sps:$4 sm:$0xff]   ;;  %v5896_v32 = vrot.slane %v2160_v29, %v5135_v16 }
 0x526   :  { %v2075_v55 = vadd.f32 %v5639_v54, %v2023_v49  ;;  %2718 = vmatpush1.bf16.msra.mxu1 %v4455_v47  ;;  %v2105_v57 = vmax.f32 %v2073_v44, 0.0  ;;  %3021 = vmatprep.mubr.bf16.mxu0 %v4706_v0  ;;  %v4025_v47 = vunpack.c.h.bf16 %v4047_v38  ;;  %v4488_v45 = vld [vmem:[%s6205_s17 + $0x30] ss:$8 sps:$4 sm:$0xff]   ;;  %v4493_v49 = vld [vmem:[%s6205_s17 + $0x44] ss:$8 sps:$4 sm:$0xff]  }
 0x527   :  { %v2106_v51 = vmax.f32 %v2074_v48, 0.0  ;;  %2719 = vmatprep.subr.bf16.mxu1 %v4460_v43  ;;  %3254 = vmatprep.subr.bf16.mxu0 %v4484_v34  ;;  %v2862_v43 = vmax.f32 %v4024_v46, 0.0  ;;  %v4048_v48 = vld [vmem:[%s6233_s0 + $0x18] sm:$0xff]  }
 0x528   :  { %v2107_v58 = vmax.f32 %v2075_v55, 0.0  ;;  %v2863_v44 = vmax.f32 %v4025_v47, 0.0  ;;  %v4520_v31 = vld [vmem:[%s6205_s17 + $0xd4] ss:$8 sps:$4 sm:$0xff]   ;;  %v4518_v34 = vld [vmem:[%s6205_s17 + $0xd0] ss:$8 sps:$4 sm:$0xff]  }
 0x529   :  { %v2124_v59 = vpack.c.bf16 %v2106_v51, %v2104_v50  ;;  %3255 = vmatpush1.bf16.msra.mxu0 %v4482_v37  ;;  %v4029_v50 = vunpack.c.h.bf16 %v4048_v48  ;;  %v4491_v51 = vld [vmem:[%s6205_s17 + $0x40] ss:$8 sps:$4 sm:$0xff]  }
 0x52a   :  { %v2125_v60 = vpack.c.bf16 %v2107_v58, %v2105_v57  ;;  %v2027_v61 = vpop.f32.mrb[92].mxu0  ;;  %2720 = vmatpush1.bf16.msra.mxu1 %v4458_v56  ;;  %3256 = vmatprep.subr.bf16.mxu0 %v4487_v39  ;;  %v2876_v55 = vpack.c.bf16 %v2863_v44, %v2862_v43  ;;  %v4028_v56 = vunpack.c.l.bf16 %v4048_v48 }
 0x52b   :  { %v2076_v63 = vadd.f32 %v5636_v53, %v2027_v61  ;;  %v2029_v1 = vpop.f32.mrb[93].mxu0  ;;  %2721 = vmatprep.subr.bf16.mxu1 %v4463_v52  ;;  %v4496_v52 = vld [vmem:[%s6205_s17 + $0x54] ss:$8 sps:$4 sm:$0xff]   ;;  %v2865_v58 = vmax.f32 %v4029_v50, 0.0  ;;  %v4499_v61 = vld [vmem:[%s6205_s17 + $0x64] ss:$8 sps:$4 sm:$0xff]  }
 0x52c   :  { %v2077_v3 = vadd.f32 %v5639_v54, %v2029_v1  ;;  %v2031_v4 = vpop.f32.mrb[94].mxu0  ;;  %2424 = vmatprep.mubr.bf16.mxu1 %v2125_v60  ;;  %3958 = vmatmul.mubr.msk.bf16.gmra.mrb[100].mxu0 %vm2954_vm1, %v2875_v40  ;;  %v2864_v57 = vmax.f32 %v4028_v56, 0.0  ;;  %v4049_v60 = vld [vmem:[%s6233_s0 + $0x20] sm:$0xff]  }
 0x52d   :  { %v2078_v5 = vadd.f32 %v5636_v53, %v2031_v4  ;;  %v2033_v6 = vpop.f32.mrb[95].mxu0  ;;  %2425 = vmatmul.mubr.bf16.gmra.mrb[88].mxu1 %v2124_v59  ;;  %v2108_v9 = vmax.f32 %v2076_v63, 0.0  ;;  %v4469_v53 = vld [vmem:[%s6203_s15 + $0xe4] ss:$8 sps:$4 sm:$0xff]   ;;  %3257 = vmatpush1.bf16.msra.mxu0 %v4485_v41  ;;  %v4494_v59 = vld [vmem:[%s6205_s17 + $0x50] ss:$8 sps:$4 sm:$0xff]   ;;  %v4032_v63 = vunpack.c.l.bf16 %v4049_v60  ;;  %v4033_v1 = vunpack.c.h.bf16 %v4049_v60 }
 0x52e   :  { %v2079_v7 = vadd.f32 %v5639_v54, %v2033_v6  ;;  %2722 = vmatpush1.bf16.msra.mxu1 %v4461_v62  ;;  %v2109_v11 = vmax.f32 %v2077_v3, 0.0  ;;  %v4467_v54 = vld [vmem:[%s6203_s15 + $0xe0] ss:$8 sps:$4 sm:$0xff]   ;;  %3031 = vmatprep.mubr.bf16.mxu0 %v4706_v0  ;;  %v2877_v62 = vpack.c.bf16 %v2865_v58, %v2864_v57  ;;  %v4502_v3 = vld [vmem:[%s6205_s17 + $0x74] ss:$8 sps:$4 sm:$0xff]  }
 0x52f   :  { %v2110_v10 = vmax.f32 %v2078_v5, 0.0  ;;  %2723 = vmatprep.subr.bf16.mxu1 %v4466_v2  ;;  %3258 = vmatprep.subr.bf16.mxu0 %v4490_v42  ;;  %v4497_v2 = vld [vmem:[%s6205_s17 + $0x60] ss:$8 sps:$4 sm:$0xff]   ;;  %v2866_v4 = vmax.f32 %v4032_v63, 0.0  ;;  %v2867_v5 = vmax.f32 %v4033_v1, 0.0 }
 0x530   :  { %v2111_v19 = vmax.f32 %v2079_v7, 0.0  ;;  %v4500_v6 = vld [vmem:[%s6205_s17 + $0x70] ss:$8 sps:$4 sm:$0xff]   ;;  %v4050_v7 = vld [vmem:[%s6233_s0 + $0x28] sm:$0xff]  }
 0x531   :  { %v2126_v20 = vpack.c.bf16 %v2110_v10, %v2108_v9  ;;  %3259 = vmatpush1.bf16.msra.mxu0 %v4488_v45  ;;  %v2878_v9 = vpack.c.bf16 %v2867_v5, %v2866_v4  ;;  %v4036_v10 = vunpack.c.l.bf16 %v4050_v7 }
 0x532   :  { %v2127_v12 = vpack.c.bf16 %v2111_v19, %v2109_v11  ;;  %2724 = vmatpush1.bf16.msra.mxu1 %v4464_v8  ;;  %3260 = vmatprep.subr.bf16.mxu0 %v4493_v49  ;;  %v4505_v8 = vld [vmem:[%s6205_s17 + $0x84] ss:$8 sps:$4 sm:$0xff]   ;;  %v4037_v11 = vunpack.c.h.bf16 %v4050_v7  ;;  %v4503_v19 = vld [vmem:[%s6205_s17 + $0x80] ss:$8 sps:$4 sm:$0xff]  }
 0x533   :  { %2725 = vmatprep.subr.bf16.mxu1 %v4469_v53 }
 0x534   :  { %2434 = vmatprep.mubr.bf16.mxu1 %v2127_v12  ;;  %3959 = vmatmul.mubr.msk.bf16.gmra.mrb[104].mxu0 %vm2954_vm1, %v2876_v55  ;;  %v2868_v12 = vmax.f32 %v4036_v10, 0.0  ;;  %v2869_v53 = vmax.f32 %v4037_v11, 0.0 }
 0x535   :  { %2435 = vmatmul.mubr.bf16.gmra.mrb[92].mxu1 %v2126_v20  ;;  %3261 = vmatpush1.bf16.msra.mxu0 %v4491_v51  ;;  %v4508_v20 = vld [vmem:[%s6205_s17 + $0x94] ss:$8 sps:$4 sm:$0xff]  }
 0x536   :  { %2726 = vmatpush1.bf16.msra.mxu1 %v4467_v54  ;;  %3041 = vmatprep.mubr.bf16.mxu0 %v4706_v0  ;;  %v4506_v54 = vld [vmem:[%s6205_s17 + $0x90] ss:$8 sps:$4 sm:$0xff]   ;;  %v2879_v15 = vpack.c.bf16 %v2869_v53, %v2868_v12 }
 0x537   :  { %2727 = vmatprep.subr.bf16.mxu1 %v4472_v13  ;;  %3262 = vmatprep.subr.bf16.mxu0 %v4496_v52  ;;  %v4051_v13 = vld [vmem:[%s6233_s0 + $0x30] sm:$0xff]  }
 0x538   :  { %v4040_v21 = vunpack.c.l.bf16 %v4051_v13  ;;  %v4041_v23 = vunpack.c.h.bf16 %v4051_v13 }
 0x539   :  { %3263 = vmatpush1.bf16.msra.mxu0 %v4494_v59 }
 0x53a   :  { %2728 = vmatpush1.bf16.msra.mxu1 %v4470_v14  ;;  %3264 = vmatprep.subr.bf16.mxu0 %v4499_v61  ;;  %v4511_v14 = vld [vmem:[%s6205_s17 + $0xa4] ss:$8 sps:$4 sm:$0xff]   ;;  %v2870_v22 = vmax.f32 %v4040_v21, 0.0  ;;  %v2871_v25 = vmax.f32 %v4041_v23, 0.0 }
 0x53c   :  { %3960 = vmatmul.mubr.msk.bf16.gmra.mrb[108].mxu0 %vm2954_vm1, %v2877_v62  ;;  %v2880_v28 = vpack.c.bf16 %v2871_v25, %v2870_v22 }
 0x53d   :  { %3265 = vmatpush1.bf16.msra.mxu0 %v4497_v2  ;;  %3051 = vmatprep.mubr.bf16.mxu0 %v4706_v0 }
 0x53e   :  { %3266 = vmatprep.subr.bf16.mxu0 %v4502_v3 }
 0x541   :  { %3267 = vmatpush1.bf16.msra.mxu0 %v4500_v6 }
 0x542   :  { %3268 = vmatprep.subr.bf16.mxu0 %v4505_v8 }
 0x544   :  { %3961 = vmatmul.mubr.msk.bf16.gmra.mrb[112].mxu0 %vm2954_vm1, %v2878_v9 }
 0x545   :  { %3269 = vmatpush1.bf16.msra.mxu0 %v4503_v19  ;;  %3061 = vmatprep.mubr.bf16.mxu0 %v4706_v0 }
 0x546   :  { %3270 = vmatprep.subr.bf16.mxu0 %v4508_v20 }
 0x549   :  { %3271 = vmatpush1.bf16.msra.mxu0 %v4506_v54 }
 0x54a   :  { %3272 = vmatprep.subr.bf16.mxu0 %v4511_v14 }
 0x54c   :  { %3962 = vmatmul.mubr.msk.bf16.gmra.mrb[116].mxu0 %vm2954_vm1, %v2879_v15 }
 0x54d   :  { %3273 = vmatpush1.bf16.msra.mxu0 %v4509_v24  ;;  %3071 = vmatprep.mubr.bf16.mxu0 %v4706_v0 }
 0x54e   :  { %3274 = vmatprep.subr.bf16.mxu0 %v4514_v17 }
 0x551   :  { %3275 = vmatpush1.bf16.msra.mxu0 %v4512_v26 }
 0x552   :  { %3276 = vmatprep.subr.bf16.mxu0 %v4517_v27 }
 0x554   :  { %3963 = vmatmul.mubr.msk.bf16.gmra.mrb[120].mxu0 %vm2954_vm1, %v2880_v28 }
 0x555   :  { %3277 = vmatpush1.bf16.msra.mxu0 %v4515_v30  ;;  %3081 = vmatprep.mubr.bf16.mxu0 %v4706_v0 }
 0x556   :  { %3278 = vmatprep.subr.bf16.mxu0 %v4520_v31 }
 0x559   :  { %3279 = vmatpush1.bf16.msra.mxu0 %v4518_v34 }
 0x5d0   :  { %v2366_v35 = vpop.f32.mrb[64].mxu1 }
 0x5d1   :  { %v2367_v36 = vadd.f32 %v2366_v35, %v5896_v32  ;;  %v2368_v37 = vpop.f32.mrb[65].mxu1 }
 0x5d2   :  { %v2369_v38 = vadd.f32 %v2368_v37, %v5900_v33  ;;  %v2370_v39 = vpop.f32.mrb[66].mxu1 }
 0x5d3   :  { %v2371_v40 = vadd.f32 %v2370_v39, %v5896_v32  ;;  %v2372_v46 = vpop.f32.mrb[67].mxu1  ;;  %v2445_v41 = vmax.f32 %v2367_v36, 0.0 }
 0x5d4   :  { %v2373_v47 = vadd.f32 %v2372_v46, %v5900_v33  ;;  %v2446_v43 = vmax.f32 %v2369_v38, 0.0 }
 0x5d5   :  { %v2447_v42 = vmax.f32 %v2371_v40, 0.0 }
 0x5d6   :  { %v2448_v44 = vmax.f32 %v2373_v47, 0.0 }
 0x5d7   :  { %v2477_v45 = vpack.c.bf16 %v2447_v42, %v2445_v41 }
 0x5d8   :  { %v2478_v0 = vpack.c.bf16 %v2448_v44, %v2446_v43  ;;  %v2376_v48 = vpop.f32.mrb[68].mxu1 }
 0x5d9   :  { %v2377_v49 = vadd.f32 %v2376_v48, %v5896_v32  ;;  %v2378_v55 = vpop.f32.mrb[69].mxu1 }
 0x5da   :  { %v2379_v56 = vadd.f32 %v2378_v55, %v5900_v33  ;;  %v2380_v50 = vpop.f32.mrb[70].mxu1  ;;  %2729 = vmatprep.mubr.bf16.mxu1 %v2478_v0 }
 0x5db   :  { %v2381_v51 = vadd.f32 %v2380_v50, %v5896_v32  ;;  %v2382_v52 = vpop.f32.mrb[71].mxu1  ;;  %2730 = vmatmul.mubr.bf16.vlgmr.msra.gmra.mrb[96].mxu1 %v2477_v45  ;;  %v2449_v58 = vmax.f32 %v2377_v49, 0.0 }
 0x5dc   :  { %v2383_v57 = vadd.f32 %v2382_v52, %v5900_v33  ;;  %v2450_v60 = vmax.f32 %v2379_v56, 0.0 }
 0x5dd   :  { %v2451_v59 = vmax.f32 %v2381_v51, 0.0 }
 0x5de   :  { %v2452_v61 = vmax.f32 %v2383_v57, 0.0 }
 0x5df   :  { %v2479_v62 = vpack.c.bf16 %v2451_v59, %v2449_v58 }
 0x5e0   :  { %v2480_v63 = vpack.c.bf16 %v2452_v61, %v2450_v60  ;;  %v2386_v1 = vpop.f32.mrb[72].mxu1 }
 0x5e1   :  { %v2387_v2 = vadd.f32 %v2386_v1, %v5896_v32  ;;  %v2388_v3 = vpop.f32.mrb[73].mxu1 }
 0x5e2   :  { %v2389_v4 = vadd.f32 %v2388_v3, %v5900_v33  ;;  %v2390_v5 = vpop.f32.mrb[74].mxu1  ;;  %2739 = vmatprep.mubr.bf16.mxu1 %v2480_v63 }
 0x5e3   :  { %v2391_v6 = vadd.f32 %v2390_v5, %v5896_v32  ;;  %v2392_v7 = vpop.f32.mrb[75].mxu1  ;;  %2740 = vmatmul.mubr.bf16.gmra.mrb[100].mxu1 %v2479_v62  ;;  %v2453_v9 = vmax.f32 %v2387_v2, 0.0 }
 0x5e4   :  { %v2393_v8 = vadd.f32 %v2392_v7, %v5900_v33  ;;  %v2454_v11 = vmax.f32 %v2389_v4, 0.0 }
 0x5e5   :  { %v2455_v10 = vmax.f32 %v2391_v6, 0.0 }
 0x5e6   :  { %v2456_v19 = vmax.f32 %v2393_v8, 0.0 }
 0x5e7   :  { %v2481_v20 = vpack.c.bf16 %v2455_v10, %v2453_v9 }
 0x5e8   :  { %v2482_v12 = vpack.c.bf16 %v2456_v19, %v2454_v11  ;;  %v2396_v53 = vpop.f32.mrb[76].mxu1 }
 0x5e9   :  { %v2397_v54 = vadd.f32 %v2396_v53, %v5896_v32  ;;  %v2398_v13 = vpop.f32.mrb[77].mxu1 }
 0x5ea   :  { %v2399_v14 = vadd.f32 %v2398_v13, %v5900_v33  ;;  %v2400_v15 = vpop.f32.mrb[78].mxu1  ;;  %2749 = vmatprep.mubr.bf16.mxu1 %v2482_v12 }
 0x5eb   :  { %v2401_v21 = vadd.f32 %v2400_v15, %v5896_v32  ;;  %v2402_v23 = vpop.f32.mrb[79].mxu1  ;;  %2750 = vmatmul.mubr.bf16.gmra.mrb[104].mxu1 %v2481_v20  ;;  %v2457_v17 = vmax.f32 %v2397_v54, 0.0 }
 0x5ec   :  { %v2403_v24 = vadd.f32 %v2402_v23, %v5900_v33  ;;  %v2458_v25 = vmax.f32 %v2399_v14, 0.0 }
 0x5ed   :  { %v2459_v22 = vmax.f32 %v2401_v21, 0.0 }
 0x5ee   :  { %v2460_v26 = vmax.f32 %v2403_v24, 0.0 }
 0x5ef   :  { %v2483_v27 = vpack.c.bf16 %v2459_v22, %v2457_v17 }
 0x5f0   :  { %v2484_v28 = vpack.c.bf16 %v2460_v26, %v2458_v25  ;;  %v2406_v29 = vpop.f32.mrb[80].mxu1  ;;  %v4052_v25 = vld [vmem:[%s6233_s0 + $0x38] sm:$0xff]  }
 0x5f1   :  { %v2407_v30 = vadd.f32 %v2406_v29, %v5896_v32  ;;  %v2408_v31 = vpop.f32.mrb[81].mxu1  ;;  %v4044_v26 = vunpack.c.l.bf16 %v4052_v25 }
 0x5f2   :  { %v2409_v34 = vadd.f32 %v2408_v31, %v5900_v33  ;;  %v2410_v35 = vpop.f32.mrb[82].mxu1  ;;  %2759 = vmatprep.mubr.bf16.mxu1 %v2484_v28  ;;  %v4526_v31 = vld [vmem:[%s6205_s17 + $0xf4] ss:$8 sps:$4 sm:$0xff]  }
 0x5f3   :  { %v2411_v36 = vadd.f32 %v2410_v35, %v5896_v32  ;;  %v2412_v37 = vpop.f32.mrb[83].mxu1  ;;  %2760 = vmatmul.mubr.bf16.gmra.mrb[108].mxu1 %v2483_v27  ;;  %v2461_v39 = vmax.f32 %v2407_v30, 0.0  ;;  %v4045_v27 = vunpack.c.h.bf16 %v4052_v25  ;;  %v2872_v28 = vmax.f32 %v4044_v26, 0.0  ;;  %v4521_v30 = vld [vmem:[%s6205_s17 + $0xe0] ss:$8 sps:$4 sm:$0xff]  }
 0x5f4   :  { %v2413_v38 = vadd.f32 %v2412_v37, %v5900_v33  ;;  %v2462_v46 = vmax.f32 %v2409_v34, 0.0  ;;  %v4524_v34 = vld [vmem:[%s6205_s17 + $0xf0] ss:$8 sps:$4 sm:$0xff]   ;;  %v3478_v35 = vld [vmem:[%s6208_s20] sm:$0xff] }
 0x5f5   :  { %v2463_v40 = vmax.f32 %v2411_v36, 0.0  ;;  %v3479_v36 = vld [vmem:[%s6208_s20 + $0x8] sm:$0xff]  ;;  %v3480_v37 = vld [vmem:[%s6208_s20 + $0x10] sm:$0xff] }
 0x5f6   :  { %v2464_v47 = vmax.f32 %v2413_v38, 0.0  ;;  %v4707_v38 = vmov 0.0|0.0  }
 0x5f7   :  { %v2485_v41 = vpack.c.bf16 %v2463_v40, %v2461_v39  ;;  %4053 = vmatprep.subr.bf16.mxu1 %v4707_v38  ;;  %v4054_v39 = vpack.c.bf16 %v3479_v36, %v3478_v35  ;;  %v3481_v40 = vld [vmem:[%s6208_s20 + $0x18] sm:$0xff] }
 0x5f8   :  { %v2486_v42 = vpack.c.bf16 %v2464_v47, %v2462_v46  ;;  %v2416_v43 = vpop.f32.mrb[84].mxu1  ;;  %v4057_v46 = vpack.c.bf16 %v3481_v40, %v3480_v37  ;;  %v3482_v47 = vld [vmem:[%s6208_s20 + $0x20] sm:$0xff] }
 0x5f9   :  { %v2417_v44 = vadd.f32 %v2416_v43, %v5896_v32  ;;  %v2418_v45 = vpop.f32.mrb[85].mxu1  ;;  %4055 = vmatpush1.bf16.msra.mxu1 %v4054_v39  ;;  %v3484_v43 = vld [vmem:[%s6208_s20 + $0x30] sm:$0xff] }
 0x5fa   :  { %v2419_v0 = vadd.f32 %v2418_v45, %v5900_v33  ;;  %v2420_v48 = vpop.f32.mrb[86].mxu1  ;;  %2769 = vmatprep.mubr.bf16.mxu1 %v2486_v42  ;;  %4056 = vmatprep.subr.bf16.mxu1 %v4707_v38 }
 0x5fb   :  { %v2421_v49 = vadd.f32 %v2420_v48, %v5896_v32  ;;  %v2422_v55 = vpop.f32.mrb[87].mxu1  ;;  %2770 = vmatmul.mubr.bf16.gmra.mrb[112].mxu1 %v2485_v41  ;;  %v2465_v50 = vmax.f32 %v2417_v44, 0.0  ;;  %v3483_v41 = vld [vmem:[%s6208_s20 + $0x28] sm:$0xff]  ;;  %v3485_v44 = vld [vmem:[%s6208_s20 + $0x38] sm:$0xff] }
 0x5fc   :  { %v2423_v56 = vadd.f32 %v2422_v55, %v5900_v33  ;;  %v2466_v52 = vmax.f32 %v2419_v0, 0.0  ;;  %v4060_v42 = vpack.c.bf16 %v3483_v41, %v3482_v47  ;;  %v4063_v45 = vpack.c.bf16 %v3485_v44, %v3484_v43  ;;  %v3486_v0 = vld [vmem:[%s6208_s20 + $0x40] sm:$0xff]  ;;  %v3487_v48 = vld [vmem:[%s6208_s20 + $0x48] sm:$0xff]  ;;  %v3488_v55 = vld [vmem:[%s6208_s20 + $0x50] sm:$0xff] }
 0x5fd   :  { %v2467_v51 = vmax.f32 %v2421_v49, 0.0  ;;  %4058 = vmatpush1.bf16.msra.mxu1 %v4057_v46  ;;  %v4066_v49 = vpack.c.bf16 %v3487_v48, %v3486_v0 }
 0x5fe   :  { %v2468_v57 = vmax.f32 %v2423_v56, 0.0  ;;  %4059 = vmatprep.subr.bf16.mxu1 %v4707_v38  ;;  %v3489_v56 = vld [vmem:[%s6208_s20 + $0x58] sm:$0xff] }
 0x5ff   :  { %v2487_v58 = vpack.c.bf16 %v2467_v51, %v2465_v50  ;;  %v4069_v50 = vpack.c.bf16 %v3489_v56, %v3488_v55  ;;  %v3490_v51 = vld [vmem:[%s6208_s20 + $0x60] sm:$0xff] }
 0x600   :  { %v2488_v59 = vpack.c.bf16 %v2468_v57, %v2466_v52  ;;  %v2426_v60 = vpop.f32.mrb[88].mxu1  ;;  %v3491_v52 = vld [vmem:[%s6208_s20 + $0x68] sm:$0xff] }
 0x601   :  { %v2427_v61 = vadd.f32 %v2426_v60, %v5896_v32  ;;  %v2428_v62 = vpop.f32.mrb[89].mxu1  ;;  %4061 = vmatpush1.bf16.msra.mxu1 %v4060_v42  ;;  %v4072_v57 = vpack.c.bf16 %v3491_v52, %v3490_v51 }
 0x602   :  { %v2429_v63 = vadd.f32 %v2428_v62, %v5900_v33  ;;  %v2430_v1 = vpop.f32.mrb[90].mxu1  ;;  %2779 = vmatprep.mubr.bf16.mxu1 %v2488_v59  ;;  %4062 = vmatprep.subr.bf16.mxu1 %v4707_v38  ;;  %v3493_v59 = vld [vmem:[%s6208_s20 + $0x78] sm:$0xff]  ;;  %v3494_v62 = vld [vmem:[%s6208_s20 + $0x80] sm:$0xff] }
 0x603   :  { %v2431_v2 = vadd.f32 %v2430_v1, %v5896_v32  ;;  %v2432_v3 = vpop.f32.mrb[91].mxu1  ;;  %2780 = vmatmul.mubr.bf16.gmra.mrb[116].mxu1 %v2487_v58  ;;  %v2469_v5 = vmax.f32 %v2427_v61, 0.0  ;;  %v3492_v58 = vld [vmem:[%s6208_s20 + $0x70] sm:$0xff]  ;;  %v4708_v61 = vmov 0.0  }
 0x604   :  { %v2433_v4 = vadd.f32 %v2432_v3, %v5900_v33  ;;  %v2470_v7 = vmax.f32 %v2429_v63, 0.0  ;;  %v4075_v60 = vpack.c.bf16 %v3493_v59, %v3492_v58  ;;  %v2525_v63 = vld [vmem:[%s6204_s16] sm:$0x3] }
 0x605   :  { %v2471_v6 = vmax.f32 %v2431_v2, 0.0  ;;  %4064 = vmatpush1.bf16.msra.mxu1 %v4063_v45  ;;  %v6009_v1 = vrot.slane %v2525_v63, %v5135_v16  ;;  %v6012_v2 = vrot.slane %v2525_v63, %v5137_v18 }
 0x606   :  { %v2472_v8 = vmax.f32 %v2433_v4, 0.0  ;;  %4065 = vmatprep.subr.bf16.mxu1 %v4707_v38 }
 0x607   :  { %v2489_v9 = vpack.c.bf16 %v2471_v6, %v2469_v5 }
 0x608   :  { %v2490_v10 = vpack.c.bf16 %v2472_v8, %v2470_v7  ;;  %v2436_v11 = vpop.f32.mrb[92].mxu1 }
 0x609   :  { %v2437_v19 = vadd.f32 %v2436_v11, %v5896_v32  ;;  %v2438_v20 = vpop.f32.mrb[93].mxu1  ;;  %4067 = vmatpush1.bf16.msra.mxu1 %v4066_v49 }
 0x60a   :  { %v2439_v12 = vadd.f32 %v2438_v20, %v5900_v33  ;;  %v2440_v53 = vpop.f32.mrb[94].mxu1  ;;  %2789 = vmatprep.mubr.bf16.mxu1 %v2490_v10  ;;  %4068 = vmatprep.subr.bf16.mxu1 %v4707_v38 }
 0x60b   :  { %v2441_v54 = vadd.f32 %v2440_v53, %v5896_v32  ;;  %v2442_v13 = vpop.f32.mrb[95].mxu1  ;;  %2790 = vmatmul.mubr.bf16.gmra.mrb[120].mxu1 %v2489_v9  ;;  %v2473_v15 = vmax.f32 %v2437_v19, 0.0  ;;  %v2873_v32 = vmax.f32 %v4045_v27, 0.0 }
 0x60c   :  { %v2443_v14 = vadd.f32 %v2442_v13, %v5900_v33  ;;  %v2474_v23 = vmax.f32 %v2439_v12, 0.0  ;;  %v4523_v33 = vld [vmem:[%s6205_s17 + $0xe4] ss:$8 sps:$4 sm:$0xff]  }
 0x60d   :  { %v2475_v21 = vmax.f32 %v2441_v54, 0.0  ;;  %v2881_v29 = vpack.c.bf16 %v2873_v32, %v2872_v28  ;;  %3280 = vmatprep.subr.bf16.mxu0 %v4523_v33  ;;  %4070 = vmatpush1.bf16.msra.mxu1 %v4069_v50 }
 0x60e   :  { %v2476_v24 = vmax.f32 %v2443_v14, 0.0  ;;  %3281 = vmatpush1.bf16.msra.mxu0 %v4521_v30  ;;  %4071 = vmatprep.subr.bf16.mxu1 %v4707_v38 }
 0x60f   :  { %v2491_v17 = vpack.c.bf16 %v2475_v21, %v2473_v15  ;;  %3964 = vmatmul.mubr.msk.bf16.gmra.mrb[124].mxu0 %vm2954_vm1, %v2881_v29  ;;  %3282 = vmatprep.subr.bf16.mxu0 %v4526_v31 }
 0x610   :  { %v2492_v22 = vpack.c.bf16 %v2476_v24, %v2474_v23 }
 0x611   :  { %4073 = vmatpush1.bf16.msra.mxu1 %v4072_v57 }
 0x612   :  { %2799 = vmatprep.mubr.bf16.mxu1 %v2492_v22  ;;  %3283 = vmatpush1.bf16.msra.mxu0 %v4524_v34 }
 0x613   :  { %2800 = vmatmul.mubr.bf16.gmra.mrb[124].mxu1 %v2491_v17  ;;  %4074 = vmatprep.subr.bf16.mxu1 %v4707_v38 }
 0x615   :  { %4076 = vmatpush1.bf16.msra.mxu1 %v4075_v60 }
 0x616   :  { %3583 = vmatprep.subr.mxu1 %v4708_v61 }
 0x619   :  { %3584 = vmatpush1.msra.mxu1 %v3494_v62 }
 0x6ae   :  { %v2731_v3 = vpop.f32.mrb[96].mxu1 }
 0x6af   :  { %v2732_v4 = vadd.f32 %v2731_v3, %v6009_v1  ;;  %v2733_v5 = vpop.f32.mrb[97].mxu1 }
 0x6b0   :  { %v2734_v6 = vadd.f32 %v2733_v5, %v6012_v2  ;;  %v2735_v7 = vpop.f32.mrb[98].mxu1 }
 0x6b1   :  { %v2736_v8 = vadd.f32 %v2735_v7, %v6009_v1  ;;  %v2737_v9 = vpop.f32.mrb[99].mxu1  ;;  %v2810_v11 = vmax.f32 %v2732_v4, 0.0 }
 0x6b2   :  { %v2738_v10 = vadd.f32 %v2737_v9, %v6012_v2  ;;  %v2811_v20 = vmax.f32 %v2734_v6, 0.0 }
 0x6b3   :  { %v2812_v19 = vmax.f32 %v2736_v8, 0.0 }
 0x6b4   :  { %v2813_v12 = vmax.f32 %v2738_v10, 0.0 }
 0x6b5   :  { %v2882_v53 = vpack.c.bf16 %v2812_v19, %v2810_v11 }
 0x6b6   :  { %v2883_v54 = vpack.c.bf16 %v2813_v12, %v2811_v20  ;;  %v2741_v13 = vpop.f32.mrb[100].mxu1 }
 0x6b7   :  { %v2742_v14 = vadd.f32 %v2741_v13, %v6009_v1  ;;  %v2743_v15 = vpop.f32.mrb[101].mxu1 }
 0x6b8   :  { %v2744_v21 = vadd.f32 %v2743_v15, %v6012_v2  ;;  %v2745_v23 = vpop.f32.mrb[102].mxu1  ;;  %3284 = vmatprep.mubr.bf16.mxu0 %v2883_v54 }
 0x6b9   :  { %v2746_v24 = vadd.f32 %v2745_v23, %v6009_v1  ;;  %v2747_v17 = vpop.f32.mrb[103].mxu1  ;;  %3285 = vmatmul.mubr.bf16.vlgmr.msra.gmra.mrb[96].mxu0 %v2882_v53  ;;  %v2814_v25 = vmax.f32 %v2742_v14, 0.0 }
 0x6ba   :  { %v2748_v22 = vadd.f32 %v2747_v17, %v6012_v2  ;;  %v2815_v27 = vmax.f32 %v2744_v21, 0.0 }
 0x6bb   :  { %v2816_v26 = vmax.f32 %v2746_v24, 0.0 }
 0x6bc   :  { %v2817_v28 = vmax.f32 %v2748_v22, 0.0 }
 0x6bd   :  { %v2884_v32 = vpack.c.bf16 %v2816_v26, %v2814_v25 }
 0x6be   :  { %v2885_v33 = vpack.c.bf16 %v2817_v28, %v2815_v27  ;;  %v2751_v29 = vpop.f32.mrb[104].mxu1 }
 0x6bf   :  { %v2752_v30 = vadd.f32 %v2751_v29, %v6009_v1  ;;  %v2753_v31 = vpop.f32.mrb[105].mxu1 }
 0x6c0   :  { %v2754_v34 = vadd.f32 %v2753_v31, %v6012_v2  ;;  %v2755_v35 = vpop.f32.mrb[106].mxu1  ;;  %3294 = vmatprep.mubr.bf16.mxu0 %v2885_v33 }
 0x6c1   :  { %v2756_v36 = vadd.f32 %v2755_v35, %v6009_v1  ;;  %v2757_v37 = vpop.f32.mrb[107].mxu1  ;;  %3295 = vmatmul.mubr.bf16.gmra.mrb[100].mxu0 %v2884_v32  ;;  %v2818_v39 = vmax.f32 %v2752_v30, 0.0 }
 0x6c2   :  { %v2758_v38 = vadd.f32 %v2757_v37, %v6012_v2  ;;  %v2819_v46 = vmax.f32 %v2754_v34, 0.0 }
 0x6c3   :  { %v2820_v40 = vmax.f32 %v2756_v36, 0.0 }
 0x6c4   :  { %v2821_v47 = vmax.f32 %v2758_v38, 0.0 }
 0x6c5   :  { %v2886_v41 = vpack.c.bf16 %v2820_v40, %v2818_v39 }
 0x6c6   :  { %v2887_v42 = vpack.c.bf16 %v2821_v47, %v2819_v46  ;;  %v2761_v43 = vpop.f32.mrb[108].mxu1 }
 0x6c7   :  { %v2762_v44 = vadd.f32 %v2761_v43, %v6009_v1  ;;  %v2763_v45 = vpop.f32.mrb[109].mxu1 }
 0x6c8   :  { %v2764_v0 = vadd.f32 %v2763_v45, %v6012_v2  ;;  %v2765_v48 = vpop.f32.mrb[110].mxu1  ;;  %3304 = vmatprep.mubr.bf16.mxu0 %v2887_v42 }
 0x6c9   :  { %v2766_v49 = vadd.f32 %v2765_v48, %v6009_v1  ;;  %v2767_v55 = vpop.f32.mrb[111].mxu1  ;;  %3305 = vmatmul.mubr.bf16.gmra.mrb[104].mxu0 %v2886_v41  ;;  %v2822_v50 = vmax.f32 %v2762_v44, 0.0 }
 0x6ca   :  { %v2768_v56 = vadd.f32 %v2767_v55, %v6012_v2  ;;  %v2823_v52 = vmax.f32 %v2764_v0, 0.0 }
 0x6cb   :  { %v2824_v51 = vmax.f32 %v2766_v49, 0.0 }
 0x6cc   :  { %v2825_v57 = vmax.f32 %v2768_v56, 0.0 }
 0x6cd   :  { %v2888_v58 = vpack.c.bf16 %v2824_v51, %v2822_v50 }
 0x6ce   :  { %v2889_v59 = vpack.c.bf16 %v2825_v57, %v2823_v52  ;;  %v2771_v60 = vpop.f32.mrb[112].mxu1  ;;  %v3365_v52 = vld [vmem:[%s6207_s19] sm:$0x3] }
 0x6cf   :  { %v2772_v61 = vadd.f32 %v2771_v60, %v6009_v1  ;;  %v2773_v62 = vpop.f32.mrb[113].mxu1  ;;  %v6050_v57 = vrot.slane %v3365_v52, %v5135_v16 }
 0x6d0   :  { %v2774_v63 = vadd.f32 %v2773_v62, %v6012_v2  ;;  %v2775_v3 = vpop.f32.mrb[114].mxu1  ;;  %3314 = vmatprep.mubr.bf16.mxu0 %v2889_v59 }
 0x6d1   :  { %v2776_v4 = vadd.f32 %v2775_v3, %v6009_v1  ;;  %v2777_v5 = vpop.f32.mrb[115].mxu1  ;;  %3315 = vmatmul.mubr.bf16.gmra.mrb[108].mxu0 %v2888_v58  ;;  %v2826_v7 = vmax.f32 %v2772_v61, 0.0 }
 0x6d2   :  { %v2778_v6 = vadd.f32 %v2777_v5, %v6012_v2  ;;  %v2827_v9 = vmax.f32 %v2774_v63, 0.0 }
 0x6d3   :  { %v2828_v8 = vmax.f32 %v2776_v4, 0.0 }
 0x6d4   :  { %v2829_v10 = vmax.f32 %v2778_v6, 0.0 }
 0x6d5   :  { %v2890_v11 = vpack.c.bf16 %v2828_v8, %v2826_v7 }
 0x6d6   :  { %v2891_v19 = vpack.c.bf16 %v2829_v10, %v2827_v9  ;;  %v2781_v20 = vpop.f32.mrb[116].mxu1 }
 0x6d7   :  { %v2782_v12 = vadd.f32 %v2781_v20, %v6009_v1  ;;  %v2783_v53 = vpop.f32.mrb[117].mxu1 }
 0x6d8   :  { %v2784_v54 = vadd.f32 %v2783_v53, %v6012_v2  ;;  %v2785_v13 = vpop.f32.mrb[118].mxu1  ;;  %3324 = vmatprep.mubr.bf16.mxu0 %v2891_v19 }
 0x6d9   :  { %v2786_v14 = vadd.f32 %v2785_v13, %v6009_v1  ;;  %v2787_v15 = vpop.f32.mrb[119].mxu1  ;;  %3325 = vmatmul.mubr.bf16.gmra.mrb[112].mxu0 %v2890_v11  ;;  %v2830_v23 = vmax.f32 %v2782_v12, 0.0 }
 0x6da   :  { %v2788_v21 = vadd.f32 %v2787_v15, %v6012_v2  ;;  %v2831_v17 = vmax.f32 %v2784_v54, 0.0 }
 0x6db   :  { %v2832_v24 = vmax.f32 %v2786_v14, 0.0 }
 0x6dc   :  { %v2833_v22 = vmax.f32 %v2788_v21, 0.0 }
 0x6dd   :  { %v2892_v25 = vpack.c.bf16 %v2832_v24, %v2830_v23 }
 0x6de   :  { %v2893_v26 = vpack.c.bf16 %v2833_v22, %v2831_v17  ;;  %v2791_v27 = vpop.f32.mrb[120].mxu1 }
 0x6df   :  { %v2792_v28 = vadd.f32 %v2791_v27, %v6009_v1  ;;  %v2793_v32 = vpop.f32.mrb[121].mxu1 }
 0x6e0   :  { %v2794_v33 = vadd.f32 %v2793_v32, %v6012_v2  ;;  %v2795_v29 = vpop.f32.mrb[122].mxu1  ;;  %3334 = vmatprep.mubr.bf16.mxu0 %v2893_v26 }
 0x6e1   :  { %v2796_v30 = vadd.f32 %v2795_v29, %v6009_v1  ;;  %v2797_v31 = vpop.f32.mrb[123].mxu1  ;;  %3335 = vmatmul.mubr.bf16.gmra.mrb[116].mxu0 %v2892_v25  ;;  %v2834_v35 = vmax.f32 %v2792_v28, 0.0 }
 0x6e2   :  { %v2798_v34 = vadd.f32 %v2797_v31, %v6012_v2  ;;  %v2835_v37 = vmax.f32 %v2794_v33, 0.0 }
 0x6e3   :  { %v2836_v36 = vmax.f32 %v2796_v30, 0.0 }
 0x6e4   :  { %v2837_v38 = vmax.f32 %v2798_v34, 0.0 }
 0x6e5   :  { %v2894_v39 = vpack.c.bf16 %v2836_v36, %v2834_v35 }
 0x6e6   :  { %v2895_v40 = vpack.c.bf16 %v2837_v38, %v2835_v37  ;;  %v2801_v46 = vpop.f32.mrb[124].mxu1 }
 0x6e7   :  { %v2802_v47 = vadd.f32 %v2801_v46, %v6009_v1  ;;  %v2803_v41 = vpop.f32.mrb[125].mxu1 }
 0x6e8   :  { %v2804_v42 = vadd.f32 %v2803_v41, %v6012_v2  ;;  %v2805_v43 = vpop.f32.mrb[126].mxu1  ;;  %3344 = vmatprep.mubr.bf16.mxu0 %v2895_v40 }
 0x6e9   :  { %v2806_v44 = vadd.f32 %v2805_v43, %v6009_v1  ;;  %v2807_v45 = vpop.f32.mrb[127].mxu1  ;;  %3345 = vmatmul.mubr.bf16.gmra.mrb[120].mxu0 %v2894_v39  ;;  %v2838_v48 = vmax.f32 %v2802_v47, 0.0  ;;  %v6053_v1 = vrot.slane %v3365_v52, %v5137_v18 }
 0x6ea   :  { %v2808_v0 = vadd.f32 %v2807_v45, %v6012_v2  ;;  %v2839_v55 = vmax.f32 %v2804_v42, 0.0 }
 0x6eb   :  { %v2840_v49 = vmax.f32 %v2806_v44, 0.0 }
 0x6ec   :  { %v2841_v56 = vmax.f32 %v2808_v0, 0.0 }
 0x6ed   :  { %v2896_v50 = vpack.c.bf16 %v2840_v49, %v2838_v48 }
 0x6ee   :  { %v2897_v51 = vpack.c.bf16 %v2841_v56, %v2839_v55 }
 0x6f0   :  { %3354 = vmatprep.mubr.bf16.mxu0 %v2897_v51 }
 0x6f1   :  { %3355 = vmatmul.mubr.bf16.gmra.mrb[124].mxu0 %v2896_v50 }
 0x78c   :  { %v3286_v58 = vpop.f32.mrb[96].mxu0 }
 0x78d   :  { %v3377_v2 = vadd.f32 %v6050_v57, %v3286_v58  ;;  %v3288_v59 = vpop.f32.mrb[97].mxu0 }
 0x78e   :  { %v3378_v60 = vadd.f32 %v6053_v1, %v3288_v59  ;;  %v3290_v61 = vpop.f32.mrb[98].mxu0 }
 0x78f   :  { %v3414_v62 = vmax.f32 %v3377_v2, 0.0  ;;  %v3379_v63 = vadd.f32 %v6050_v57, %v3290_v61  ;;  %v3292_v3 = vpop.f32.mrb[99].mxu0 }
 0x790   :  { %v3380_v4 = vadd.f32 %v6053_v1, %v3292_v3  ;;  %3998 = vmatprep.mubr.msk.f32.mxu1 %vm3502_vm2, %v3378_v60 }
 0x791   :  { %3616 = vmatmul.mubr.f32.vlgmr.msra.gmra.mrb[128].mxu1 %v3414_v62  ;;  %v3416_v16 = vmax.f32 %v3379_v63, 0.0 }
 0x792   :  { %3999 = vmatprep.mubr.msk.f32.mxu1 %vm3502_vm2, %v3380_v4 }
 0x794   :  { %v3296_v18 = vpop.f32.mrb[100].mxu0 }
 0x795   :  { %v3381_v5 = vadd.f32 %v6050_v57, %v3296_v18  ;;  %v3298_v6 = vpop.f32.mrb[101].mxu0  ;;  %3621 = vmatmul.mubr.f32.gmra.mrb[130].mxu1 %v3416_v16 }
 0x796   :  { %v3382_v7 = vadd.f32 %v6053_v1, %v3298_v6  ;;  %v3300_v8 = vpop.f32.mrb[102].mxu0 }
 0x797   :  { %v3418_v9 = vmax.f32 %v3381_v5, 0.0  ;;  %v3383_v10 = vadd.f32 %v6050_v57, %v3300_v8  ;;  %v3302_v11 = vpop.f32.mrb[103].mxu0 }
 0x798   :  { %v3384_v19 = vadd.f32 %v6053_v1, %v3302_v11  ;;  %4000 = vmatprep.mubr.msk.f32.mxu1 %vm3502_vm2, %v3382_v7 }
 0x799   :  { %3626 = vmatmul.mubr.f32.gmra.mrb[132].mxu1 %v3418_v9  ;;  %v3420_v20 = vmax.f32 %v3383_v10, 0.0 }
 0x79a   :  { %4001 = vmatprep.mubr.msk.f32.mxu1 %vm3502_vm2, %v3384_v19  ;;  %v6106_v19 = vld [vmem:[%s6209_s21] ss:$0 sm:$0xff] }
 0x79c   :  { %v3306_v12 = vpop.f32.mrb[104].mxu0 }
 0x79d   :  { %v3385_v53 = vadd.f32 %v6050_v57, %v3306_v12  ;;  %v3308_v54 = vpop.f32.mrb[105].mxu0  ;;  %3631 = vmatmul.mubr.f32.gmra.mrb[134].mxu1 %v3420_v20 }
 0x79e   :  { %v3386_v13 = vadd.f32 %v6053_v1, %v3308_v54  ;;  %v3310_v14 = vpop.f32.mrb[106].mxu0 }
 0x79f   :  { %v3422_v15 = vmax.f32 %v3385_v53, 0.0  ;;  %v3387_v21 = vadd.f32 %v6050_v57, %v3310_v14  ;;  %v3312_v23 = vpop.f32.mrb[107].mxu0 }
 0x7a0   :  { %v3388_v24 = vadd.f32 %v6053_v1, %v3312_v23  ;;  %4002 = vmatprep.mubr.msk.f32.mxu1 %vm3502_vm2, %v3386_v13 }
 0x7a1   :  { %3636 = vmatmul.mubr.f32.gmra.mrb[136].mxu1 %v3422_v15  ;;  %v3424_v17 = vmax.f32 %v3387_v21, 0.0 }
 0x7a2   :  { %4003 = vmatprep.mubr.msk.f32.mxu1 %vm3502_vm2, %v3388_v24 }
 0x7a4   :  { %v3316_v22 = vpop.f32.mrb[108].mxu0 }
 0x7a5   :  { %v3389_v25 = vadd.f32 %v6050_v57, %v3316_v22  ;;  %v3318_v26 = vpop.f32.mrb[109].mxu0  ;;  %3641 = vmatmul.mubr.f32.gmra.mrb[138].mxu1 %v3424_v17 }
 0x7a6   :  { %v3390_v27 = vadd.f32 %v6053_v1, %v3318_v26  ;;  %v3320_v28 = vpop.f32.mrb[110].mxu0 }
 0x7a7   :  { %v3426_v32 = vmax.f32 %v3389_v25, 0.0  ;;  %v3391_v33 = vadd.f32 %v6050_v57, %v3320_v28  ;;  %v3322_v29 = vpop.f32.mrb[111].mxu0 }
 0x7a8   :  { %v3392_v30 = vadd.f32 %v6053_v1, %v3322_v29  ;;  %4004 = vmatprep.mubr.msk.f32.mxu1 %vm3502_vm2, %v3390_v27 }
 0x7a9   :  { %3646 = vmatmul.mubr.f32.gmra.mrb[140].mxu1 %v3426_v32  ;;  %v3428_v31 = vmax.f32 %v3391_v33, 0.0 }
 0x7aa   :  { %4005 = vmatprep.mubr.msk.f32.mxu1 %vm3502_vm2, %v3392_v30 }
 0x7ac   :  { %v3326_v34 = vpop.f32.mrb[112].mxu0 }
 0x7ad   :  { %v3393_v35 = vadd.f32 %v6050_v57, %v3326_v34  ;;  %v3328_v36 = vpop.f32.mrb[113].mxu0  ;;  %3651 = vmatmul.mubr.f32.gmra.mrb[142].mxu1 %v3428_v31 }
 0x7ae   :  { %v3394_v37 = vadd.f32 %v6053_v1, %v3328_v36  ;;  %v3330_v38 = vpop.f32.mrb[114].mxu0 }
 0x7af   :  { %v3430_v39 = vmax.f32 %v3393_v35, 0.0  ;;  %v3395_v40 = vadd.f32 %v6050_v57, %v3330_v38  ;;  %v3332_v46 = vpop.f32.mrb[115].mxu0 }
 0x7b0   :  { %v3396_v47 = vadd.f32 %v6053_v1, %v3332_v46  ;;  %4006 = vmatprep.mubr.msk.f32.mxu1 %vm3502_vm2, %v3394_v37 }
 0x7b1   :  { %3656 = vmatmul.mubr.f32.gmra.mrb[144].mxu1 %v3430_v39  ;;  %v3432_v41 = vmax.f32 %v3395_v40, 0.0 }
 0x7b2   :  { %4007 = vmatprep.mubr.msk.f32.mxu1 %vm3502_vm2, %v3396_v47 }
 0x7b4   :  { %v3336_v42 = vpop.f32.mrb[116].mxu0 }
 0x7b5   :  { %v3397_v43 = vadd.f32 %v6050_v57, %v3336_v42  ;;  %v3338_v44 = vpop.f32.mrb[117].mxu0  ;;  %3661 = vmatmul.mubr.f32.gmra.mrb[146].mxu1 %v3432_v41 }
 0x7b6   :  { %v3398_v45 = vadd.f32 %v6053_v1, %v3338_v44  ;;  %v3340_v0 = vpop.f32.mrb[118].mxu0 }
 0x7b7   :  { %v3434_v48 = vmax.f32 %v3397_v43, 0.0  ;;  %v3399_v49 = vadd.f32 %v6050_v57, %v3340_v0  ;;  %v3342_v55 = vpop.f32.mrb[119].mxu0 }
 0x7b8   :  { %v3400_v56 = vadd.f32 %v6053_v1, %v3342_v55  ;;  %4008 = vmatprep.mubr.msk.f32.mxu1 %vm3502_vm2, %v3398_v45 }
 0x7b9   :  { %3666 = vmatmul.mubr.f32.gmra.mrb[148].mxu1 %v3434_v48  ;;  %v3436_v50 = vmax.f32 %v3399_v49, 0.0 }
 0x7ba   :  { %4009 = vmatprep.mubr.msk.f32.mxu1 %vm3502_vm2, %v3400_v56 }
 0x7bc   :  { %v3346_v51 = vpop.f32.mrb[120].mxu0 }
 0x7bd   :  { %v3401_v52 = vadd.f32 %v6050_v57, %v3346_v51  ;;  %v3348_v58 = vpop.f32.mrb[121].mxu0  ;;  %3671 = vmatmul.mubr.f32.gmra.mrb[150].mxu1 %v3436_v50 }
 0x7be   :  { %v3402_v2 = vadd.f32 %v6053_v1, %v3348_v58  ;;  %v3350_v59 = vpop.f32.mrb[122].mxu0 }
 0x7bf   :  { %v3438_v60 = vmax.f32 %v3401_v52, 0.0  ;;  %v3403_v61 = vadd.f32 %v6050_v57, %v3350_v59  ;;  %v3352_v62 = vpop.f32.mrb[123].mxu0 }
 0x7c0   :  { %v3404_v63 = vadd.f32 %v6053_v1, %v3352_v62  ;;  %4010 = vmatprep.mubr.msk.f32.mxu1 %vm3502_vm2, %v3402_v2 }
 0x7c1   :  { %3676 = vmatmul.mubr.f32.gmra.mrb[152].mxu1 %v3438_v60  ;;  %v3440_v3 = vmax.f32 %v3403_v61, 0.0 }
 0x7c2   :  { %4011 = vmatprep.mubr.msk.f32.mxu1 %vm3502_vm2, %v3404_v63 }
 0x7c4   :  { %v3356_v4 = vpop.f32.mrb[124].mxu0 }
 0x7c5   :  { %v3405_v16 = vadd.f32 %v6050_v57, %v3356_v4  ;;  %v3358_v18 = vpop.f32.mrb[125].mxu0  ;;  %3681 = vmatmul.mubr.f32.gmra.mrb[154].mxu1 %v3440_v3 }
 0x7c6   :  { %v3406_v5 = vadd.f32 %v6053_v1, %v3358_v18  ;;  %v3360_v6 = vpop.f32.mrb[126].mxu0 }
 0x7c7   :  { %v3442_v7 = vmax.f32 %v3405_v16, 0.0  ;;  %v3407_v8 = vadd.f32 %v6050_v57, %v3360_v6  ;;  %v3362_v9 = vpop.f32.mrb[127].mxu0 }
 0x7c8   :  { %v3408_v10 = vadd.f32 %v6053_v1, %v3362_v9  ;;  %4012 = vmatprep.mubr.msk.f32.mxu1 %vm3502_vm2, %v3406_v5 }
 0x7c9   :  { %3686 = vmatmul.mubr.f32.gmra.mrb[156].mxu1 %v3442_v7  ;;  %v3444_v11 = vmax.f32 %v3407_v8, 0.0 }
 0x7ca   :  { %4013 = vmatprep.mubr.msk.f32.mxu1 %vm3502_vm2, %v3408_v10 }
 0x7cd   :  { %3691 = vmatmul.mubr.f32.gmra.mrb[158].mxu1 %v3444_v11 }
 0x864   :  { %v3617_v20 = vpop.f32.mrb[128].mxu1 }
 0x865   :  { %v3618_v12 = vadd.f32 %v6106_v19, %v3617_v20  ;;  %v3619_v57 = vpop.f32.mrb[129].mxu1 }
 0x867   :  { %3697 = vst.msk [vmem:[%s6234_s23] sm:$0xff] %vm3696_vm3, %v3618_v12 }
 0x868   :  { %v3622_v1 = vpop.f32.mrb[130].mxu1 }
 0x869   :  { %v3623_v53 = vadd.f32 %v6106_v19, %v3622_v1  ;;  %v3624_v54 = vpop.f32.mrb[131].mxu1 }
 0x86b   :  { %3698 = vst.msk [vmem:[%s6234_s23 + $0x8] sm:$0xff] %vm3696_vm3, %v3623_v53 }
 0x86c   :  { %v3627_v13 = vpop.f32.mrb[132].mxu1 }
 0x86d   :  { %v3628_v14 = vadd.f32 %v6106_v19, %v3627_v13  ;;  %v3629_v15 = vpop.f32.mrb[133].mxu1 }
 0x86f   :  { %3699 = vst.msk [vmem:[%s6234_s23 + $0x10] sm:$0xff] %vm3696_vm3, %v3628_v14 }
 0x870   :  { %v3632_v21 = vpop.f32.mrb[134].mxu1 }
 0x871   :  { %v3633_v23 = vadd.f32 %v6106_v19, %v3632_v21  ;;  %v3634_v24 = vpop.f32.mrb[135].mxu1 }
 0x873   :  { %3700 = vst.msk [vmem:[%s6234_s23 + $0x18] sm:$0xff] %vm3696_vm3, %v3633_v23 }
 0x874   :  { %v3637_v17 = vpop.f32.mrb[136].mxu1 }
 0x875   :  { %v3638_v22 = vadd.f32 %v6106_v19, %v3637_v17  ;;  %v3639_v25 = vpop.f32.mrb[137].mxu1 }
 0x877   :  { %3701 = vst.msk [vmem:[%s6234_s23 + $0x20] sm:$0xff] %vm3696_vm3, %v3638_v22 }
 0x878   :  { %v3642_v26 = vpop.f32.mrb[138].mxu1 }
 0x879   :  { %v3643_v27 = vadd.f32 %v6106_v19, %v3642_v26  ;;  %v3644_v28 = vpop.f32.mrb[139].mxu1 }
 0x87b   :  { %3702 = vst.msk [vmem:[%s6234_s23 + $0x28] sm:$0xff] %vm3696_vm3, %v3643_v27 }
 0x87c   :  { %v3647_v32 = vpop.f32.mrb[140].mxu1 }
 0x87d   :  { %v3648_v33 = vadd.f32 %v6106_v19, %v3647_v32  ;;  %v3649_v29 = vpop.f32.mrb[141].mxu1 }
 0x87f   :  { %3703 = vst.msk [vmem:[%s6234_s23 + $0x30] sm:$0xff] %vm3696_vm3, %v3648_v33 }
 0x880   :  { %v3652_v30 = vpop.f32.mrb[142].mxu1 }
 0x881   :  { %v3653_v31 = vadd.f32 %v6106_v19, %v3652_v30  ;;  %v3654_v34 = vpop.f32.mrb[143].mxu1 }
 0x883   :  { %3704 = vst.msk [vmem:[%s6234_s23 + $0x38] sm:$0xff] %vm3696_vm3, %v3653_v31 }
 0x884   :  { %v3657_v35 = vpop.f32.mrb[144].mxu1 }
 0x885   :  { %v3658_v36 = vadd.f32 %v6106_v19, %v3657_v35  ;;  %v3659_v37 = vpop.f32.mrb[145].mxu1 }
 0x887   :  { %3705 = vst.msk [vmem:[%s6234_s23 + $0x40] sm:$0xff] %vm3696_vm3, %v3658_v36 }
 0x888   :  { %v3662_v38 = vpop.f32.mrb[146].mxu1 }
 0x889   :  { %v3663_v39 = vadd.f32 %v6106_v19, %v3662_v38  ;;  %v3664_v40 = vpop.f32.mrb[147].mxu1 }
 0x88b   :  { %3706 = vst.msk [vmem:[%s6234_s23 + $0x48] sm:$0xff] %vm3696_vm3, %v3663_v39 }
 0x88c   :  { %v3667_v46 = vpop.f32.mrb[148].mxu1 }
 0x88d   :  { %v3668_v47 = vadd.f32 %v6106_v19, %v3667_v46  ;;  %v3669_v41 = vpop.f32.mrb[149].mxu1 }
 0x88f   :  { %3707 = vst.msk [vmem:[%s6234_s23 + $0x50] sm:$0xff] %vm3696_vm3, %v3668_v47 }
 0x890   :  { %v3672_v42 = vpop.f32.mrb[150].mxu1 }
 0x891   :  { %v3673_v43 = vadd.f32 %v6106_v19, %v3672_v42  ;;  %v3674_v44 = vpop.f32.mrb[151].mxu1 }
 0x893   :  { %3708 = vst.msk [vmem:[%s6234_s23 + $0x58] sm:$0xff] %vm3696_vm3, %v3673_v43 }
 0x894   :  { %v3677_v45 = vpop.f32.mrb[152].mxu1 }
 0x895   :  { %v3678_v0 = vadd.f32 %v6106_v19, %v3677_v45  ;;  %v3679_v48 = vpop.f32.mrb[153].mxu1 }
 0x897   :  { %3709 = vst.msk [vmem:[%s6234_s23 + $0x60] sm:$0xff] %vm3696_vm3, %v3678_v0 }
 0x898   :  { %v3682_v49 = vpop.f32.mrb[154].mxu1 }
 0x899   :  { %v3683_v55 = vadd.f32 %v6106_v19, %v3682_v49  ;;  %v3684_v56 = vpop.f32.mrb[155].mxu1 }
 0x89b   :  { %3710 = vst.msk [vmem:[%s6234_s23 + $0x68] sm:$0xff] %vm3696_vm3, %v3683_v55 }
 0x89c   :  { %v3687_v50 = vpop.f32.mrb[156].mxu1 }
 0x89d   :  { %v3688_v51 = vadd.f32 %v6106_v19, %v3687_v50  ;;  %v3689_v52 = vpop.f32.mrb[157].mxu1 }
 0x89f   :  { %3711 = vst.msk [vmem:[%s6234_s23 + $0x70] sm:$0xff] %vm3696_vm3, %v3688_v51 }
 0x8a0   :  { %v3692_v58 = vpop.f32.mrb[158].mxu1 }
 0x8a1   :  { %v3693_v2 = vadd.f32 %v6106_v19, %v3692_v58  ;;  %v3694_v59 = vpop.f32.mrb[159].mxu1 }
 0x8a3   :  { %3712 = vst.msk [vmem:[%s6234_s23 + $0x78] sm:$0xff] %vm3696_vm3, %v3693_v2 }
 0x8a4   :  { %3717 = vsyncpa [#allocation3], 1 }
 0x8a5   :  { %3718 = vsyncpa [#allocation5], 1 }
 0x8a6   :  { %3719 = vsyncpa [#allocation8], 1 }
 0x8a7   :  { %3720 = vsyncpa [#allocation11], 1 }

</bundles_post_ra>
